<compile_context>
chip_gen: v7x
topology: tpu7x:2x2x1
jax: 0.10.0
libtpu: 0.0.40
codegen_flags: <defaults>
</compile_context>

<pallas_src>
import functools

import numpy as np
import jax
import jax.numpy as jnp
from jax import lax
from jax.experimental import pallas as pl
from jax.experimental.pallas import tpu as pltpu


def _line_attn_kernel(px_ref, py_ref, at_ref, *refs,
                      spatial_shapes, padded_w, num_points_list, n_heads, d_head):
    """One grid step == one (batch, query-tile); all heads + levels processed inside.

    px_ref / py_ref : (1, M*P, Lq_t)  pixel-space sampling coordinates (grid_sample convention)
    at_ref          : (1, M*P, Lq_t)  softmaxed attention weights
    refs            : n_levels value refs, each (1, M, D, H_l*Wp_l) bf16, then out_ref
    out_ref         : (1, M*D, Lq_t)
    """
    n_levels = len(spatial_shapes)
    value_refs = refs[:n_levels]
    out_ref = refs[n_levels]

    M = int(n_heads)
    D = int(d_head)
    P = int(sum(num_points_list))
    Lq = px_ref.shape[2]

    px = px_ref[0]                                  # (M*P, Lq)
    py = py_ref[0]
    att = at_ref[0]

    # ---- lane-dense per-point geometry, hoisted out of the level/head loops ----
    x0f = jnp.floor(px)
    y0f = jnp.floor(py)
    lx = px - x0f
    ly = py - y0f
    x0 = x0f.astype(jnp.int32)
    y0 = y0f.astype(jnp.int32)
    wx0 = 1.0 - lx
    wx1 = lx
    wy0 = (1.0 - ly) * att                          # attention folded into the H-axis weights
    wy1 = ly * att

    # per-head accumulators (D, Lq); concatenated into one lane-dense store at the end
    accs = [jnp.zeros((D, Lq), jnp.float32) for _ in range(M)]

    p_off = 0
    for lid, (Hl, Wl) in enumerate(spatial_shapes):
        P_l = int(num_points_list[lid])
        Wp = int(padded_w[lid])                     # W padded to a multiple of 8 (sublane tile)
        # level iotas shared by all heads (hoisted out of the head loop)
        h_iota = lax.broadcasted_iota(jnp.int32, (P_l, Hl, Lq), 1)
        w_iota = lax.broadcasted_iota(jnp.int32, (P_l, Wp, Lq), 1)

        # Heads stay statically unrolled: after the separable-mask rewrite the per-head body
        # is small, and unrolling keeps value_refs[lid][0, m] / row slices fully static.
        for m in range(M):
            r0 = m * P + p_off
            r1 = r0 + P_l
            x0_s = x0[r0:r1][:, None, :]            # (P_l, 1, Lq)
            y0_s = y0[r0:r1][:, None, :]

            # Separable two-hot bilinear masks.  OOB corners never match the iota, which is
            # exactly grid_sample(padding_mode='zeros', align_corners=False) semantics.
            cx_m = (jnp.where(w_iota == x0_s, wx0[r0:r1][:, None, :], 0.0)
                    + jnp.where(w_iota == x0_s + 1, wx1[r0:r1][:, None, :], 0.0))  # (P_l, Wp, Lq)
            by_m = (jnp.where(h_iota == y0_s, wy0[r0:r1][:, None, :], 0.0)
                    + jnp.where(h_iota == y0_s + 1, wy1[r0:r1][:, None, :], 0.0))  # (P_l, Hl, Lq)

            # Combine over the (small) point axis with outer products:
            #   A[h, w, q] = sum_p by_m[p, h, q] * cx_m[p, w, q]
            A = by_m[0][:, None, :] * cx_m[0][None, :, :]                           # (Hl, Wp, Lq)
            for p in range(1, P_l):
                A = A + by_m[p][:, None, :] * cx_m[p][None, :, :]
            # leading-dim collapse (Wp multiple of 8, Lq multiple of 128) -> layout-preserving
            A2 = A.reshape(Hl * Wp, Lq)

            # canonical MXU matmul: (D, HW) @ (HW, Lq) -> (D, Lq), bf16 in / f32 accumulate
            v_m = value_refs[lid][0, m]                                             # (D, Hl*Wp)
            accs[m] = accs[m] + lax.dot_general(
                v_m, A2.astype(v_m.dtype),
                dimension_numbers=(((1,), (0,)), ((), ())),
                preferred_element_type=jnp.float32)
        p_off += P_l

    # single lane-dense (M*D, Lq) store
    out_ref[0] = jnp.concatenate(accs, axis=0).astype(out_ref.dtype)


def ms_deform_line_attn_forward(params, query, reference_points, value,
                                value_spatial_shapes, num_points_list, n_heads):
    N, Lq, C = query.shape
    M = int(n_heads)
    P = int(sum(num_points_list))
    D = C // M
    assert reference_points.shape == (N, Lq, 1, 4), "level dim of reference_points must be 1"

    spatial_shapes = [(int(h), int(w)) for h, w in value_spatial_shapes]
    num_points_list = [int(p) for p in num_points_list]

    # ---- the module's two nn.Linear projections + per-head softmax (tiny (N,Lq,M*P) ops) ----
    ratios = jnp.einsum('nqc,oc->nqo', query, params['w_ratio']) + params['b_ratio']
    logits = jnp.einsum('nqc,oc->nqo', query, params['w_attn']) + params['b_attn']
    attn = jax.nn.softmax(logits.reshape(N, Lq, M, P), axis=-1).reshape(N, Lq, M * P)

    # ---- sampling locations -> pixel coords (same pre-processing PyTorch does before the
    #      core grid_sample call; arrays are (N, Lq, M*P), negligible next to value traffic) ----
    scale_col = np.tile(np.concatenate(
        [np.full(p_l, 0.5 / p_l, np.float32) for p_l in num_points_list]), M)          # (M*P,)
    w_col = np.tile(np.concatenate(
        [np.full(p_l, float(w), np.float32)
         for (h, w), p_l in zip(spatial_shapes, num_points_list)]), M)
    h_col = np.tile(np.concatenate(
        [np.full(p_l, float(h), np.float32)
         for (h, w), p_l in zip(spatial_shapes, num_points_list)]), M)

    rp = reference_points[:, :, 0, :]
    cx = 0.5 * (rp[..., 0:1] + rp[..., 2:3])
    cy = 0.5 * (rp[..., 1:2] + rp[..., 3:4])
    vx = rp[..., 0:1] - rp[..., 2:3]
    vy = rp[..., 1:2] - rp[..., 3:4]
    loc_x = cx + ratios * scale_col * vx                      # normalized [0,1] coords
    loc_y = cy + ratios * scale_col * vy
    px = loc_x * w_col - 0.5                                  # grid_sample(align_corners=False)
    py = loc_y * h_col - 0.5

    # ---- pad Lq to a lane-aligned multiple of 128; padded queries carry attn=0 -> zero rows ----
    LQ_ALIGN = 128
    Lq_pad = ((Lq + LQ_ALIGN - 1) // LQ_ALIGN) * LQ_ALIGN

    def _pad_q(x):
        return x if Lq_pad == Lq else jnp.pad(x, ((0, 0), (0, Lq_pad - Lq), (0, 0)))

    pxT = jnp.transpose(_pad_q(px), (0, 2, 1))                # (N, M*P, Lq_pad), query-minor
    pyT = jnp.transpose(_pad_q(py), (0, 2, 1))
    atT = jnp.transpose(_pad_q(attn), (0, 2, 1))

    # ---- value levels: (N*M, D, H*W) -> (N, M, D, H*Wp) with W padded to a sublane multiple.
    #      Zero columns never contribute (masks only hit valid/zero cells), so semantics are
    #      exact.  bf16 is expected from the producer; cast here only as a fallback. ----
    value_r = []
    padded_w = []
    for (h, w), v in zip(spatial_shapes, value):
        wp = ((w + 7) // 8) * 8
        padded_w.append(wp)
        v = v.reshape(N, M, D, h, w)
        if v.dtype != jnp.bfloat16:
            # TODO(synk): keep the multi-scale value cache in bf16 (and pre-padded) at its
            #             producer to avoid this extra per-call HBM pass.
            v = v.astype(jnp.bfloat16)
        if wp != w:
            v = jnp.pad(v, ((0, 0), (0, 0), (0, 0), (0, 0), (0, wp - w)))
        value_r.append(v.reshape(N, M, D, h * wp))

    # ---- per-generation tile / VMEM budget (v7x: 64 MiB, v5e/v6e: 128 MiB) ----
    vmem_cap = 128 * 1024 * 1024
    try:
        vmem_cap = int(getattr(pltpu.get_tpu_info(), 'vmem_capacity_bytes', vmem_cap))
    except Exception:
        pass
    LQ_TILE = 256 if (Lq_pad % 256 == 0 and vmem_cap > 96 * 1024 * 1024) else 128
    n_q = Lq_pad // LQ_TILE
    vmem_limit = int(min(vmem_cap * 3 // 4, 100 * 1024 * 1024))

    kernel = functools.partial(
        _line_attn_kernel,
        spatial_shapes=tuple(spatial_shapes),
        padded_w=tuple(padded_w),
        num_points_list=tuple(num_points_list),
        n_heads=M,
        d_head=D,
    )

    in_specs = [
        pl.BlockSpec((1, M * P, LQ_TILE), lambda n, q: (n, 0, q)),
        pl.BlockSpec((1, M * P, LQ_TILE), lambda n, q: (n, 0, q)),
        pl.BlockSpec((1, M * P, LQ_TILE), lambda n, q: (n, 0, q)),
    ] + [
        # value block index is independent of q -> stays resident in VMEM across query tiles
        pl.BlockSpec((1, M, D, h * wp), lambda n, q: (n, 0, 0, 0))
        for (h, _), wp in zip(spatial_shapes, padded_w)
    ]

    out_t = pl.pallas_call(
        kernel,
        out_shape=jax.ShapeDtypeStruct((N, C, Lq_pad), jnp.float32),
        grid_spec=pltpu.PrefetchScalarGridSpec(
            num_scalar_prefetch=0,
            grid=(N, n_q),                                    # q innermost: value stays resident
            in_specs=in_specs,
            out_specs=pl.BlockSpec((1, C, LQ_TILE), lambda n, q: (n, 0, q)),
        ),
        compiler_params=pltpu.CompilerParams(
            # both axes independent; on v7x the megacore split can land on whichever has extent>=2
            dimension_semantics=("parallel", "parallel"),
            vmem_limit_bytes=vmem_limit,
        ),
    )(pxT, pyT, atT, *value_r)

    # (N, C, Lq_pad) -> (N, Lq, C): the same trailing transpose PyTorch does, plus de-padding.
    return jnp.transpose(out_t, (0, 2, 1))[:, :Lq, :]


# ---------------- pure-JAX reference (mirrors the PyTorch math, f32) ----------------
def _reference_forward(params, query, reference_points, value,
                       value_spatial_shapes, num_points_list, n_heads):
    N, Lq, C = query.shape
    M = int(n_heads)
    P = int(sum(num_points_list))
    D = C // M
    ratios = jnp.einsum('nqc,oc->nqo', query, params['w_ratio']) + params['b_ratio']
    logits = jnp.einsum('nqc,oc->nqo', query, params['w_attn']) + params['b_attn']
    ratios = ratios.reshape(N, Lq, M, P, 1)
    logits = logits.reshape(N, Lq, M, P)
    mx = jnp.max(logits, axis=-1, keepdims=True)
    e = jnp.exp(logits - mx)
    attn = e / jnp.sum(e, axis=-1, keepdims=True)
    nps = jnp.asarray([1.0 / n for n in num_points_list for _ in range(n)],
                      jnp.float32).reshape(-1, 1)
    vector = reference_points[:, :, None, :, :2] - reference_points[:, :, None, :, 2:]
    center = 0.5 * (reference_points[:, :, None, :, :2] + reference_points[:, :, None, :, 2:])
    loc = center + ratios * nps * vector * 0.5                   # (N, Lq, M, P, 2)
    grids = 2.0 * loc - 1.0
    grids = jnp.transpose(grids, (0, 2, 1, 3, 4)).reshape(N * M, Lq, P, 2)
    attn_t = jnp.transpose(attn, (0, 2, 1, 3)).reshape(N * M, 1, Lq, P)

    sampled = []
    p_off = 0
    for lid, (H, W) in enumerate(value_spatial_shapes):
        P_l = int(num_points_list[lid])
        v = value[lid]                                           # (N*M, D, H*W)
        g = grids[:, :, p_off:p_off + P_l, :]
        gx, gy = g[..., 0], g[..., 1]
        px = (gx + 1.0) * W / 2.0 - 0.5
        py = (gy + 1.0) * H / 2.0 - 0.5
        x0 = jnp.floor(px)
        y0 = jnp.floor(py)
        lx = px - x0
        ly = py - y0
        x0i = x0.astype(jnp.int32)
        y0i = y0.astype(jnp.int32)
        out_l = jnp.zeros((N * M, D, Lq, P_l), jnp.float32)
        for dy, dx in ((0, 0), (0, 1), (1, 0), (1, 1)):
            xi = x0i + dx
            yi = y0i + dy
            wx = lx if dx == 1 else 1.0 - lx
            wy = ly if dy == 1 else 1.0 - ly
            valid = (xi >= 0) & (xi < W) & (yi >= 0) & (yi < H)
            w = jnp.where(valid, wx * wy, 0.0)
            flat = jnp.where(valid, yi * W + xi, 0)
            idx = flat.reshape(N * M, 1, Lq * P_l)
            gathered = jnp.take_along_axis(v, idx, axis=2).reshape(N * M, D, Lq, P_l)
            out_l = out_l + gathered * w[:, None, :, :]
        sampled.append(out_l)
        p_off += P_l
    sampled = jnp.concatenate(sampled, axis=-1)                  # (N*M, D, Lq, P)
    out = (sampled * attn_t).sum(-1)                             # (N*M, D, Lq)
    return out.reshape(N, M * D, Lq).transpose(0, 2, 1)


if __name__ == "__main__":
    # Small config: d_model=32, n_heads=4 (d_head=8), n_levels=2, n_points=4 per level
    d_model, n_levels, n_heads, n_points = 32, 2, 4, 4
    N, Lq = 2, 8
    spatial_shapes = [(8, 8), (4, 4)]
    num_points_list = [n_points] * n_levels
    D = d_model // n_heads
    P = sum(num_points_list)

    key = jax.random.PRNGKey(0)
    k1, k2, k3, k4, k5 = jax.random.split(key, 5)
    query = jax.random.normal(k1, (N, Lq, d_model), jnp.float32)
    reference_points = jax.random.uniform(k2, (N, Lq, 1, 4), jnp.float32)
    vkeys = jax.random.split(k3, n_levels)
    value_f32 = [jax.random.normal(vk, (N * n_heads, D, h * w), jnp.float32)
                 for vk, (h, w) in zip(vkeys, spatial_shapes)]
    # cast once where the multi-scale value memory is produced (not per forward call)
    value_bf16 = [v.astype(jnp.bfloat16) for v in value_f32]

    # Non-degenerate linear weights (the module's zero-weight/linspace-bias init is a
    # special case of this forward); nn.Linear convention: W is (out_features, in_features).
    params = {
        'w_ratio': 0.5 * jax.random.normal(k4, (n_heads * P, d_model), jnp.float32),
        'b_ratio': jnp.linspace(-1.0, 1.0, n_heads * P, dtype=jnp.float32),
        'w_attn': 0.5 * jax.random.normal(k5, (n_heads * P, d_model), jnp.float32),
        'b_attn': jnp.zeros((n_heads * P,), jnp.float32),
    }

    out = ms_deform_line_attn_forward(params, query, reference_points, value_bf16,
                                      spatial_shapes, num_points_list, n_heads)
    out = jax.block_until_ready(out)

    ref = jax.block_until_ready(
        _reference_forward(params, query, reference_points,
                           [v.astype(jnp.float32) for v in value_bf16],
                           spatial_shapes, num_points_list, n_heads))

    assert out.shape == (N, Lq, d_model)
    # only remaining rounding sources: bf16 A on the MXU and accumulation order
    if not np.allclose(np.asarray(out), np.asarray(ref), atol=2e-2, rtol=2e-2):
        err = float(np.max(np.abs(np.asarray(out) - np.asarray(ref))))
        raise AssertionError(f"Pallas kernel output does not match reference (max abs err {err})")
    print("KERNEL_OK")
</pallas_src>

<mosaic_0001>
module attributes {stable_mosaic.version = 11 : i64} {
  func.func @_line_attn_kernel(%arg0: i32, %arg1: i32, %arg2: memref<1x32x128xf32, #tpu.memory_space<vmem>>, %arg3: memref<1x32x128xf32, #tpu.memory_space<vmem>>, %arg4: memref<1x32x128xf32, #tpu.memory_space<vmem>>, %arg5: memref<1x4x8x64xbf16, #tpu.memory_space<vmem>>, %arg6: memref<1x4x8x32xbf16, #tpu.memory_space<vmem>>, %arg7: memref<1x32x128xf32, #tpu.memory_space<vmem>>) attributes {dimension_semantics = [#tpu.dimension_semantics<parallel>, #tpu.dimension_semantics<parallel>], iteration_bounds = array<i64: 2, 1>, scalar_prefetch = 0 : i64, scratch_operands = 0 : i64, tpu.core_type = #tpu.core_type<tc>, window_params = [{transform_indices = @transform_0, window_bounds = array<i64: 1, 32, 128>}, {transform_indices = @transform_1, window_bounds = array<i64: 1, 32, 128>}, {transform_indices = @transform_2, window_bounds = array<i64: 1, 32, 128>}, {transform_indices = @transform_3, window_bounds = array<i64: 1, 4, 8, 64>}, {transform_indices = @transform_4, window_bounds = array<i64: 1, 4, 8, 32>}, {transform_indices = @transform_5, window_bounds = array<i64: 1, 32, 128>}]} {
    %c0 = arith.constant 0 : index
    %c0_0 = arith.constant 0 : index
    %c0_1 = arith.constant 0 : index
    %0 = vector.load %arg2[%c0, %c0_0, %c0_1] : memref<1x32x128xf32, #tpu.memory_space<vmem>>, vector<1x32x128xf32>
    %1 = vector.shape_cast %0 : vector<1x32x128xf32> to vector<32x128xf32>
    %c0_2 = arith.constant 0 : index
    %c0_3 = arith.constant 0 : index
    %c0_4 = arith.constant 0 : index
    %2 = vector.load %arg3[%c0_2, %c0_3, %c0_4] : memref<1x32x128xf32, #tpu.memory_space<vmem>>, vector<1x32x128xf32>
    %3 = vector.shape_cast %2 : vector<1x32x128xf32> to vector<32x128xf32>
    %c0_5 = arith.constant 0 : index
    %c0_6 = arith.constant 0 : index
    %c0_7 = arith.constant 0 : index
    %4 = vector.load %arg4[%c0_5, %c0_6, %c0_7] : memref<1x32x128xf32, #tpu.memory_space<vmem>>, vector<1x32x128xf32>
    %5 = vector.shape_cast %4 : vector<1x32x128xf32> to vector<32x128xf32>
    %6 = math.floor %1 : vector<32x128xf32>
    %7 = math.floor %3 : vector<32x128xf32>
    %8 = arith.subf %1, %6 : vector<32x128xf32>
    %9 = arith.subf %3, %7 : vector<32x128xf32>
    %10 = arith.fptosi %6 : vector<32x128xf32> to vector<32x128xi32>
    %11 = arith.fptosi %7 : vector<32x128xf32> to vector<32x128xi32>
    %cst = arith.constant 1.000000e+00 : f32
    %12 = vector.broadcast %cst : f32 to vector<32x128xf32>
    %13 = arith.subf %12, %8 : vector<32x128xf32>
    %cst_8 = arith.constant 1.000000e+00 : f32
    %14 = vector.broadcast %cst_8 : f32 to vector<32x128xf32>
    %15 = arith.subf %14, %9 : vector<32x128xf32>
    %16 = arith.mulf %15, %5 : vector<32x128xf32>
    %17 = arith.mulf %9, %5 : vector<32x128xf32>
    %cst_9 = arith.constant 0.000000e+00 : f32
    %18 = vector.broadcast %cst_9 : f32 to vector<8x128xf32>
    %cst_10 = arith.constant 0.000000e+00 : f32
    %19 = vector.broadcast %cst_10 : f32 to vector<8x128xf32>
    %cst_11 = arith.constant 0.000000e+00 : f32
    %20 = vector.broadcast %cst_11 : f32 to vector<8x128xf32>
    %cst_12 = arith.constant 0.000000e+00 : f32
    %21 = vector.broadcast %cst_12 : f32 to vector<8x128xf32>
    %22 = tpu.iota {dimensions = array<i32: 1>} : vector<4x8x128xi32>
    %23 = tpu.iota {dimensions = array<i32: 1>} : vector<4x8x128xi32>
    %24 = vector.extract_strided_slice %10 {offsets = [0, 0], sizes = [4, 128], strides = [1, 1]} : vector<32x128xi32> to vector<4x128xi32>
    %25 = vector.shape_cast %24 : vector<4x128xi32> to vector<4x1x128xi32>
    %26 = vector.extract_strided_slice %11 {offsets = [0, 0], sizes = [4, 128], strides = [1, 1]} : vector<32x128xi32> to vector<4x128xi32>
    %27 = vector.shape_cast %26 : vector<4x128xi32> to vector<4x1x128xi32>
    %28 = vector.broadcast %25 : vector<4x1x128xi32> to vector<4x8x128xi32>
    %29 = arith.cmpi eq, %23, %28 : vector<4x8x128xi32>
    %30 = vector.extract_strided_slice %13 {offsets = [0, 0], sizes = [4, 128], strides = [1, 1]} : vector<32x128xf32> to vector<4x128xf32>
    %31 = vector.shape_cast %30 : vector<4x128xf32> to vector<4x1x128xf32>
    %cst_13 = arith.constant 0.000000e+00 : f32
    %32 = vector.shape_cast %31 : vector<4x1x128xf32> to vector<4x1x128xf32>
    %33 = vector.broadcast %32 : vector<4x1x128xf32> to vector<4x8x128xf32>
    %34 = vector.broadcast %cst_13 : f32 to vector<4x8x128xf32>
    %35 = arith.select %29, %33, %34 : vector<4x8x128xi1>, vector<4x8x128xf32>
    %c1_i32 = arith.constant 1 : i32
    %36 = vector.broadcast %c1_i32 : i32 to vector<4x1x128xi32>
    %37 = arith.addi %25, %36 : vector<4x1x128xi32>
    %38 = vector.broadcast %37 : vector<4x1x128xi32> to vector<4x8x128xi32>
    %39 = arith.cmpi eq, %23, %38 : vector<4x8x128xi32>
    %40 = vector.extract_strided_slice %8 {offsets = [0, 0], sizes = [4, 128], strides = [1, 1]} : vector<32x128xf32> to vector<4x128xf32>
    %41 = vector.shape_cast %40 : vector<4x128xf32> to vector<4x1x128xf32>
    %cst_14 = arith.constant 0.000000e+00 : f32
    %42 = vector.shape_cast %41 : vector<4x1x128xf32> to vector<4x1x128xf32>
    %43 = vector.broadcast %42 : vector<4x1x128xf32> to vector<4x8x128xf32>
    %44 = vector.broadcast %cst_14 : f32 to vector<4x8x128xf32>
    %45 = arith.select %39, %43, %44 : vector<4x8x128xi1>, vector<4x8x128xf32>
    %46 = arith.addf %35, %45 : vector<4x8x128xf32>
    %47 = vector.broadcast %27 : vector<4x1x128xi32> to vector<4x8x128xi32>
    %48 = arith.cmpi eq, %22, %47 : vector<4x8x128xi32>
    %49 = vector.extract_strided_slice %16 {offsets = [0, 0], sizes = [4, 128], strides = [1, 1]} : vector<32x128xf32> to vector<4x128xf32>
    %50 = vector.shape_cast %49 : vector<4x128xf32> to vector<4x1x128xf32>
    %cst_15 = arith.constant 0.000000e+00 : f32
    %51 = vector.shape_cast %50 : vector<4x1x128xf32> to vector<4x1x128xf32>
    %52 = vector.broadcast %51 : vector<4x1x128xf32> to vector<4x8x128xf32>
    %53 = vector.broadcast %cst_15 : f32 to vector<4x8x128xf32>
    %54 = arith.select %48, %52, %53 : vector<4x8x128xi1>, vector<4x8x128xf32>
    %c1_i32_16 = arith.constant 1 : i32
    %55 = vector.broadcast %c1_i32_16 : i32 to vector<4x1x128xi32>
    %56 = arith.addi %27, %55 : vector<4x1x128xi32>
    %57 = vector.broadcast %56 : vector<4x1x128xi32> to vector<4x8x128xi32>
    %58 = arith.cmpi eq, %22, %57 : vector<4x8x128xi32>
    %59 = vector.extract_strided_slice %17 {offsets = [0, 0], sizes = [4, 128], strides = [1, 1]} : vector<32x128xf32> to vector<4x128xf32>
    %60 = vector.shape_cast %59 : vector<4x128xf32> to vector<4x1x128xf32>
    %cst_17 = arith.constant 0.000000e+00 : f32
    %61 = vector.shape_cast %60 : vector<4x1x128xf32> to vector<4x1x128xf32>
    %62 = vector.broadcast %61 : vector<4x1x128xf32> to vector<4x8x128xf32>
    %63 = vector.broadcast %cst_17 : f32 to vector<4x8x128xf32>
    %64 = arith.select %58, %62, %63 : vector<4x8x128xi1>, vector<4x8x128xf32>
    %65 = arith.addf %54, %64 : vector<4x8x128xf32>
    %66 = vector.extract_strided_slice %65 {offsets = [0, 0, 0], sizes = [1, 8, 128], strides = [1, 1, 1]} : vector<4x8x128xf32> to vector<1x8x128xf32>
    %67 = vector.shape_cast %66 : vector<1x8x128xf32> to vector<8x128xf32>
    %68 = vector.shape_cast %67 : vector<8x128xf32> to vector<8x1x128xf32>
    %69 = vector.extract_strided_slice %46 {offsets = [0, 0, 0], sizes = [1, 8, 128], strides = [1, 1, 1]} : vector<4x8x128xf32> to vector<1x8x128xf32>
    %70 = vector.shape_cast %69 : vector<1x8x128xf32> to vector<8x128xf32>
    %71 = vector.shape_cast %70 : vector<8x128xf32> to vector<1x8x128xf32>
    %72 = vector.broadcast %68 : vector<8x1x128xf32> to vector<8x8x128xf32>
    %73 = vector.broadcast %71 : vector<1x8x128xf32> to vector<8x8x128xf32>
    %74 = arith.mulf %72, %73 : vector<8x8x128xf32>
    %75 = vector.extract_strided_slice %65 {offsets = [1, 0, 0], sizes = [1, 8, 128], strides = [1, 1, 1]} : vector<4x8x128xf32> to vector<1x8x128xf32>
    %76 = vector.shape_cast %75 : vector<1x8x128xf32> to vector<8x128xf32>
    %77 = vector.shape_cast %76 : vector<8x128xf32> to vector<8x1x128xf32>
    %78 = vector.extract_strided_slice %46 {offsets = [1, 0, 0], sizes = [1, 8, 128], strides = [1, 1, 1]} : vector<4x8x128xf32> to vector<1x8x128xf32>
    %79 = vector.shape_cast %78 : vector<1x8x128xf32> to vector<8x128xf32>
    %80 = vector.shape_cast %79 : vector<8x128xf32> to vector<1x8x128xf32>
    %81 = vector.broadcast %77 : vector<8x1x128xf32> to vector<8x8x128xf32>
    %82 = vector.broadcast %80 : vector<1x8x128xf32> to vector<8x8x128xf32>
    %83 = arith.mulf %81, %82 : vector<8x8x128xf32>
    %84 = arith.addf %74, %83 : vector<8x8x128xf32>
    %85 = vector.extract_strided_slice %65 {offsets = [2, 0, 0], sizes = [1, 8, 128], strides = [1, 1, 1]} : vector<4x8x128xf32> to vector<1x8x128xf32>
    %86 = vector.shape_cast %85 : vector<1x8x128xf32> to vector<8x128xf32>
    %87 = vector.shape_cast %86 : vector<8x128xf32> to vector<8x1x128xf32>
    %88 = vector.extract_strided_slice %46 {offsets = [2, 0, 0], sizes = [1, 8, 128], strides = [1, 1, 1]} : vector<4x8x128xf32> to vector<1x8x128xf32>
    %89 = vector.shape_cast %88 : vector<1x8x128xf32> to vector<8x128xf32>
    %90 = vector.shape_cast %89 : vector<8x128xf32> to vector<1x8x128xf32>
    %91 = vector.broadcast %87 : vector<8x1x128xf32> to vector<8x8x128xf32>
    %92 = vector.broadcast %90 : vector<1x8x128xf32> to vector<8x8x128xf32>
    %93 = arith.mulf %91, %92 : vector<8x8x128xf32>
    %94 = arith.addf %84, %93 : vector<8x8x128xf32>
    %95 = vector.extract_strided_slice %65 {offsets = [3, 0, 0], sizes = [1, 8, 128], strides = [1, 1, 1]} : vector<4x8x128xf32> to vector<1x8x128xf32>
    %96 = vector.shape_cast %95 : vector<1x8x128xf32> to vector<8x128xf32>
    %97 = vector.shape_cast %96 : vector<8x128xf32> to vector<8x1x128xf32>
    %98 = vector.extract_strided_slice %46 {offsets = [3, 0, 0], sizes = [1, 8, 128], strides = [1, 1, 1]} : vector<4x8x128xf32> to vector<1x8x128xf32>
    %99 = vector.shape_cast %98 : vector<1x8x128xf32> to vector<8x128xf32>
    %100 = vector.shape_cast %99 : vector<8x128xf32> to vector<1x8x128xf32>
    %101 = vector.broadcast %97 : vector<8x1x128xf32> to vector<8x8x128xf32>
    %102 = vector.broadcast %100 : vector<1x8x128xf32> to vector<8x8x128xf32>
    %103 = arith.mulf %101, %102 : vector<8x8x128xf32>
    %104 = arith.addf %94, %103 : vector<8x8x128xf32>
    %105 = vector.shape_cast %104 : vector<8x8x128xf32> to vector<64x128xf32>
    %c0_18 = arith.constant 0 : index
    %c0_19 = arith.constant 0 : index
    %c0_20 = arith.constant 0 : index
    %c0_21 = arith.constant 0 : index
    %106 = vector.load %arg5[%c0_18, %c0_19, %c0_20, %c0_21] : memref<1x4x8x64xbf16, #tpu.memory_space<vmem>>, vector<1x1x8x64xbf16>
    %107 = vector.shape_cast %106 : vector<1x1x8x64xbf16> to vector<8x64xbf16>
    %108 = arith.truncf %105 : vector<64x128xf32> to vector<64x128xbf16>
    %cst_22 = arith.constant dense<0.000000e+00> : vector<8x128xf32>
    %109 = tpu.matmul %107, %108, %cst_22 {dimension_numbers = #tpu.dot_dimension_numbers<[1], [0], [0], [1], [0, 0, 1, 1], [], []>} : vector<8x64xbf16>, vector<64x128xbf16>, vector<8x128xf32> -> vector<8x128xf32>
    %110 = arith.addf %18, %109 : vector<8x128xf32>
    %111 = vector.extract_strided_slice %10 {offsets = [8, 0], sizes = [4, 128], strides = [1, 1]} : vector<32x128xi32> to vector<4x128xi32>
    %112 = vector.shape_cast %111 : vector<4x128xi32> to vector<4x1x128xi32>
    %113 = vector.extract_strided_slice %11 {offsets = [8, 0], sizes = [4, 128], strides = [1, 1]} : vector<32x128xi32> to vector<4x128xi32>
    %114 = vector.shape_cast %113 : vector<4x128xi32> to vector<4x1x128xi32>
    %115 = vector.broadcast %112 : vector<4x1x128xi32> to vector<4x8x128xi32>
    %116 = arith.cmpi eq, %23, %115 : vector<4x8x128xi32>
    %117 = vector.extract_strided_slice %13 {offsets = [8, 0], sizes = [4, 128], strides = [1, 1]} : vector<32x128xf32> to vector<4x128xf32>
    %118 = vector.shape_cast %117 : vector<4x128xf32> to vector<4x1x128xf32>
    %cst_23 = arith.constant 0.000000e+00 : f32
    %119 = vector.shape_cast %118 : vector<4x1x128xf32> to vector<4x1x128xf32>
    %120 = vector.broadcast %119 : vector<4x1x128xf32> to vector<4x8x128xf32>
    %121 = vector.broadcast %cst_23 : f32 to vector<4x8x128xf32>
    %122 = arith.select %116, %120, %121 : vector<4x8x128xi1>, vector<4x8x128xf32>
    %c1_i32_24 = arith.constant 1 : i32
    %123 = vector.broadcast %c1_i32_24 : i32 to vector<4x1x128xi32>
    %124 = arith.addi %112, %123 : vector<4x1x128xi32>
    %125 = vector.broadcast %124 : vector<4x1x128xi32> to vector<4x8x128xi32>
    %126 = arith.cmpi eq, %23, %125 : vector<4x8x128xi32>
    %127 = vector.extract_strided_slice %8 {offsets = [8, 0], sizes = [4, 128], strides = [1, 1]} : vector<32x128xf32> to vector<4x128xf32>
    %128 = vector.shape_cast %127 : vector<4x128xf32> to vector<4x1x128xf32>
    %cst_25 = arith.constant 0.000000e+00 : f32
    %129 = vector.shape_cast %128 : vector<4x1x128xf32> to vector<4x1x128xf32>
    %130 = vector.broadcast %129 : vector<4x1x128xf32> to vector<4x8x128xf32>
    %131 = vector.broadcast %cst_25 : f32 to vector<4x8x128xf32>
    %132 = arith.select %126, %130, %131 : vector<4x8x128xi1>, vector<4x8x128xf32>
    %133 = arith.addf %122, %132 : vector<4x8x128xf32>
    %134 = vector.broadcast %114 : vector<4x1x128xi32> to vector<4x8x128xi32>
    %135 = arith.cmpi eq, %22, %134 : vector<4x8x128xi32>
    %136 = vector.extract_strided_slice %16 {offsets = [8, 0], sizes = [4, 128], strides = [1, 1]} : vector<32x128xf32> to vector<4x128xf32>
    %137 = vector.shape_cast %136 : vector<4x128xf32> to vector<4x1x128xf32>
    %cst_26 = arith.constant 0.000000e+00 : f32
    %138 = vector.shape_cast %137 : vector<4x1x128xf32> to vector<4x1x128xf32>
    %139 = vector.broadcast %138 : vector<4x1x128xf32> to vector<4x8x128xf32>
    %140 = vector.broadcast %cst_26 : f32 to vector<4x8x128xf32>
    %141 = arith.select %135, %139, %140 : vector<4x8x128xi1>, vector<4x8x128xf32>
    %c1_i32_27 = arith.constant 1 : i32
    %142 = vector.broadcast %c1_i32_27 : i32 to vector<4x1x128xi32>
    %143 = arith.addi %114, %142 : vector<4x1x128xi32>
    %144 = vector.broadcast %143 : vector<4x1x128xi32> to vector<4x8x128xi32>
    %145 = arith.cmpi eq, %22, %144 : vector<4x8x128xi32>
    %146 = vector.extract_strided_slice %17 {offsets = [8, 0], sizes = [4, 128], strides = [1, 1]} : vector<32x128xf32> to vector<4x128xf32>
    %147 = vector.shape_cast %146 : vector<4x128xf32> to vector<4x1x128xf32>
    %cst_28 = arith.constant 0.000000e+00 : f32
    %148 = vector.shape_cast %147 : vector<4x1x128xf32> to vector<4x1x128xf32>
    %149 = vector.broadcast %148 : vector<4x1x128xf32> to vector<4x8x128xf32>
    %150 = vector.broadcast %cst_28 : f32 to vector<4x8x128xf32>
    %151 = arith.select %145, %149, %150 : vector<4x8x128xi1>, vector<4x8x128xf32>
    %152 = arith.addf %141, %151 : vector<4x8x128xf32>
    %153 = vector.extract_strided_slice %152 {offsets = [0, 0, 0], sizes = [1, 8, 128], strides = [1, 1, 1]} : vector<4x8x128xf32> to vector<1x8x128xf32>
    %154 = vector.shape_cast %153 : vector<1x8x128xf32> to vector<8x128xf32>
    %155 = vector.shape_cast %154 : vector<8x128xf32> to vector<8x1x128xf32>
    %156 = vector.extract_strided_slice %133 {offsets = [0, 0, 0], sizes = [1, 8, 128], strides = [1, 1, 1]} : vector<4x8x128xf32> to vector<1x8x128xf32>
    %157 = vector.shape_cast %156 : vector<1x8x128xf32> to vector<8x128xf32>
    %158 = vector.shape_cast %157 : vector<8x128xf32> to vector<1x8x128xf32>
    %159 = vector.broadcast %155 : vector<8x1x128xf32> to vector<8x8x128xf32>
    %160 = vector.broadcast %158 : vector<1x8x128xf32> to vector<8x8x128xf32>
    %161 = arith.mulf %159, %160 : vector<8x8x128xf32>
    %162 = vector.extract_strided_slice %152 {offsets = [1, 0, 0], sizes = [1, 8, 128], strides = [1, 1, 1]} : vector<4x8x128xf32> to vector<1x8x128xf32>
    %163 = vector.shape_cast %162 : vector<1x8x128xf32> to vector<8x128xf32>
    %164 = vector.shape_cast %163 : vector<8x128xf32> to vector<8x1x128xf32>
    %165 = vector.extract_strided_slice %133 {offsets = [1, 0, 0], sizes = [1, 8, 128], strides = [1, 1, 1]} : vector<4x8x128xf32> to vector<1x8x128xf32>
    %166 = vector.shape_cast %165 : vector<1x8x128xf32> to vector<8x128xf32>
    %167 = vector.shape_cast %166 : vector<8x128xf32> to vector<1x8x128xf32>
    %168 = vector.broadcast %164 : vector<8x1x128xf32> to vector<8x8x128xf32>
    %169 = vector.broadcast %167 : vector<1x8x128xf32> to vector<8x8x128xf32>
    %170 = arith.mulf %168, %169 : vector<8x8x128xf32>
    %171 = arith.addf %161, %170 : vector<8x8x128xf32>
    %172 = vector.extract_strided_slice %152 {offsets = [2, 0, 0], sizes = [1, 8, 128], strides = [1, 1, 1]} : vector<4x8x128xf32> to vector<1x8x128xf32>
    %173 = vector.shape_cast %172 : vector<1x8x128xf32> to vector<8x128xf32>
    %174 = vector.shape_cast %173 : vector<8x128xf32> to vector<8x1x128xf32>
    %175 = vector.extract_strided_slice %133 {offsets = [2, 0, 0], sizes = [1, 8, 128], strides = [1, 1, 1]} : vector<4x8x128xf32> to vector<1x8x128xf32>
    %176 = vector.shape_cast %175 : vector<1x8x128xf32> to vector<8x128xf32>
    %177 = vector.shape_cast %176 : vector<8x128xf32> to vector<1x8x128xf32>
    %178 = vector.broadcast %174 : vector<8x1x128xf32> to vector<8x8x128xf32>
    %179 = vector.broadcast %177 : vector<1x8x128xf32> to vector<8x8x128xf32>
    %180 = arith.mulf %178, %179 : vector<8x8x128xf32>
    %181 = arith.addf %171, %180 : vector<8x8x128xf32>
    %182 = vector.extract_strided_slice %152 {offsets = [3, 0, 0], sizes = [1, 8, 128], strides = [1, 1, 1]} : vector<4x8x128xf32> to vector<1x8x128xf32>
    %183 = vector.shape_cast %182 : vector<1x8x128xf32> to vector<8x128xf32>
    %184 = vector.shape_cast %183 : vector<8x128xf32> to vector<8x1x128xf32>
    %185 = vector.extract_strided_slice %133 {offsets = [3, 0, 0], sizes = [1, 8, 128], strides = [1, 1, 1]} : vector<4x8x128xf32> to vector<1x8x128xf32>
    %186 = vector.shape_cast %185 : vector<1x8x128xf32> to vector<8x128xf32>
    %187 = vector.shape_cast %186 : vector<8x128xf32> to vector<1x8x128xf32>
    %188 = vector.broadcast %184 : vector<8x1x128xf32> to vector<8x8x128xf32>
    %189 = vector.broadcast %187 : vector<1x8x128xf32> to vector<8x8x128xf32>
    %190 = arith.mulf %188, %189 : vector<8x8x128xf32>
    %191 = arith.addf %181, %190 : vector<8x8x128xf32>
    %192 = vector.shape_cast %191 : vector<8x8x128xf32> to vector<64x128xf32>
    %c0_29 = arith.constant 0 : index
    %c1 = arith.constant 1 : index
    %c0_30 = arith.constant 0 : index
    %c0_31 = arith.constant 0 : index
    %193 = vector.load %arg5[%c0_29, %c1, %c0_30, %c0_31] : memref<1x4x8x64xbf16, #tpu.memory_space<vmem>>, vector<1x1x8x64xbf16>
    %194 = vector.shape_cast %193 : vector<1x1x8x64xbf16> to vector<8x64xbf16>
    %195 = arith.truncf %192 : vector<64x128xf32> to vector<64x128xbf16>
    %cst_32 = arith.constant dense<0.000000e+00> : vector<8x128xf32>
    %196 = tpu.matmul %194, %195, %cst_32 {dimension_numbers = #tpu.dot_dimension_numbers<[1], [0], [0], [1], [0, 0, 1, 1], [], []>} : vector<8x64xbf16>, vector<64x128xbf16>, vector<8x128xf32> -> vector<8x128xf32>
    %197 = arith.addf %19, %196 : vector<8x128xf32>
    %198 = vector.extract_strided_slice %10 {offsets = [16, 0], sizes = [4, 128], strides = [1, 1]} : vector<32x128xi32> to vector<4x128xi32>
    %199 = vector.shape_cast %198 : vector<4x128xi32> to vector<4x1x128xi32>
    %200 = vector.extract_strided_slice %11 {offsets = [16, 0], sizes = [4, 128], strides = [1, 1]} : vector<32x128xi32> to vector<4x128xi32>
    %201 = vector.shape_cast %200 : vector<4x128xi32> to vector<4x1x128xi32>
    %202 = vector.broadcast %199 : vector<4x1x128xi32> to vector<4x8x128xi32>
    %203 = arith.cmpi eq, %23, %202 : vector<4x8x128xi32>
    %204 = vector.extract_strided_slice %13 {offsets = [16, 0], sizes = [4, 128], strides = [1, 1]} : vector<32x128xf32> to vector<4x128xf32>
    %205 = vector.shape_cast %204 : vector<4x128xf32> to vector<4x1x128xf32>
    %cst_33 = arith.constant 0.000000e+00 : f32
    %206 = vector.shape_cast %205 : vector<4x1x128xf32> to vector<4x1x128xf32>
    %207 = vector.broadcast %206 : vector<4x1x128xf32> to vector<4x8x128xf32>
    %208 = vector.broadcast %cst_33 : f32 to vector<4x8x128xf32>
    %209 = arith.select %203, %207, %208 : vector<4x8x128xi1>, vector<4x8x128xf32>
    %c1_i32_34 = arith.constant 1 : i32
    %210 = vector.broadcast %c1_i32_34 : i32 to vector<4x1x128xi32>
    %211 = arith.addi %199, %210 : vector<4x1x128xi32>
    %212 = vector.broadcast %211 : vector<4x1x128xi32> to vector<4x8x128xi32>
    %213 = arith.cmpi eq, %23, %212 : vector<4x8x128xi32>
    %214 = vector.extract_strided_slice %8 {offsets = [16, 0], sizes = [4, 128], strides = [1, 1]} : vector<32x128xf32> to vector<4x128xf32>
    %215 = vector.shape_cast %214 : vector<4x128xf32> to vector<4x1x128xf32>
    %cst_35 = arith.constant 0.000000e+00 : f32
    %216 = vector.shape_cast %215 : vector<4x1x128xf32> to vector<4x1x128xf32>
    %217 = vector.broadcast %216 : vector<4x1x128xf32> to vector<4x8x128xf32>
    %218 = vector.broadcast %cst_35 : f32 to vector<4x8x128xf32>
    %219 = arith.select %213, %217, %218 : vector<4x8x128xi1>, vector<4x8x128xf32>
    %220 = arith.addf %209, %219 : vector<4x8x128xf32>
    %221 = vector.broadcast %201 : vector<4x1x128xi32> to vector<4x8x128xi32>
    %222 = arith.cmpi eq, %22, %221 : vector<4x8x128xi32>
    %223 = vector.extract_strided_slice %16 {offsets = [16, 0], sizes = [4, 128], strides = [1, 1]} : vector<32x128xf32> to vector<4x128xf32>
    %224 = vector.shape_cast %223 : vector<4x128xf32> to vector<4x1x128xf32>
    %cst_36 = arith.constant 0.000000e+00 : f32
    %225 = vector.shape_cast %224 : vector<4x1x128xf32> to vector<4x1x128xf32>
    %226 = vector.broadcast %225 : vector<4x1x128xf32> to vector<4x8x128xf32>
    %227 = vector.broadcast %cst_36 : f32 to vector<4x8x128xf32>
    %228 = arith.select %222, %226, %227 : vector<4x8x128xi1>, vector<4x8x128xf32>
    %c1_i32_37 = arith.constant 1 : i32
    %229 = vector.broadcast %c1_i32_37 : i32 to vector<4x1x128xi32>
    %230 = arith.addi %201, %229 : vector<4x1x128xi32>
    %231 = vector.broadcast %230 : vector<4x1x128xi32> to vector<4x8x128xi32>
    %232 = arith.cmpi eq, %22, %231 : vector<4x8x128xi32>
    %233 = vector.extract_strided_slice %17 {offsets = [16, 0], sizes = [4, 128], strides = [1, 1]} : vector<32x128xf32> to vector<4x128xf32>
    %234 = vector.shape_cast %233 : vector<4x128xf32> to vector<4x1x128xf32>
    %cst_38 = arith.constant 0.000000e+00 : f32
    %235 = vector.shape_cast %234 : vector<4x1x128xf32> to vector<4x1x128xf32>
    %236 = vector.broadcast %235 : vector<4x1x128xf32> to vector<4x8x128xf32>
    %237 = vector.broadcast %cst_38 : f32 to vector<4x8x128xf32>
    %238 = arith.select %232, %236, %237 : vector<4x8x128xi1>, vector<4x8x128xf32>
    %239 = arith.addf %228, %238 : vector<4x8x128xf32>
    %240 = vector.extract_strided_slice %239 {offsets = [0, 0, 0], sizes = [1, 8, 128], strides = [1, 1, 1]} : vector<4x8x128xf32> to vector<1x8x128xf32>
    %241 = vector.shape_cast %240 : vector<1x8x128xf32> to vector<8x128xf32>
    %242 = vector.shape_cast %241 : vector<8x128xf32> to vector<8x1x128xf32>
    %243 = vector.extract_strided_slice %220 {offsets = [0, 0, 0], sizes = [1, 8, 128], strides = [1, 1, 1]} : vector<4x8x128xf32> to vector<1x8x128xf32>
    %244 = vector.shape_cast %243 : vector<1x8x128xf32> to vector<8x128xf32>
    %245 = vector.shape_cast %244 : vector<8x128xf32> to vector<1x8x128xf32>
    %246 = vector.broadcast %242 : vector<8x1x128xf32> to vector<8x8x128xf32>
    %247 = vector.broadcast %245 : vector<1x8x128xf32> to vector<8x8x128xf32>
    %248 = arith.mulf %246, %247 : vector<8x8x128xf32>
    %249 = vector.extract_strided_slice %239 {offsets = [1, 0, 0], sizes = [1, 8, 128], strides = [1, 1, 1]} : vector<4x8x128xf32> to vector<1x8x128xf32>
    %250 = vector.shape_cast %249 : vector<1x8x128xf32> to vector<8x128xf32>
    %251 = vector.shape_cast %250 : vector<8x128xf32> to vector<8x1x128xf32>
    %252 = vector.extract_strided_slice %220 {offsets = [1, 0, 0], sizes = [1, 8, 128], strides = [1, 1, 1]} : vector<4x8x128xf32> to vector<1x8x128xf32>
    %253 = vector.shape_cast %252 : vector<1x8x128xf32> to vector<8x128xf32>
    %254 = vector.shape_cast %253 : vector<8x128xf32> to vector<1x8x128xf32>
    %255 = vector.broadcast %251 : vector<8x1x128xf32> to vector<8x8x128xf32>
    %256 = vector.broadcast %254 : vector<1x8x128xf32> to vector<8x8x128xf32>
    %257 = arith.mulf %255, %256 : vector<8x8x128xf32>
    %258 = arith.addf %248, %257 : vector<8x8x128xf32>
    %259 = vector.extract_strided_slice %239 {offsets = [2, 0, 0], sizes = [1, 8, 128], strides = [1, 1, 1]} : vector<4x8x128xf32> to vector<1x8x128xf32>
    %260 = vector.shape_cast %259 : vector<1x8x128xf32> to vector<8x128xf32>
    %261 = vector.shape_cast %260 : vector<8x128xf32> to vector<8x1x128xf32>
    %262 = vector.extract_strided_slice %220 {offsets = [2, 0, 0], sizes = [1, 8, 128], strides = [1, 1, 1]} : vector<4x8x128xf32> to vector<1x8x128xf32>
    %263 = vector.shape_cast %262 : vector<1x8x128xf32> to vector<8x128xf32>
    %264 = vector.shape_cast %263 : vector<8x128xf32> to vector<1x8x128xf32>
    %265 = vector.broadcast %261 : vector<8x1x128xf32> to vector<8x8x128xf32>
    %266 = vector.broadcast %264 : vector<1x8x128xf32> to vector<8x8x128xf32>
    %267 = arith.mulf %265, %266 : vector<8x8x128xf32>
    %268 = arith.addf %258, %267 : vector<8x8x128xf32>
    %269 = vector.extract_strided_slice %239 {offsets = [3, 0, 0], sizes = [1, 8, 128], strides = [1, 1, 1]} : vector<4x8x128xf32> to vector<1x8x128xf32>
    %270 = vector.shape_cast %269 : vector<1x8x128xf32> to vector<8x128xf32>
    %271 = vector.shape_cast %270 : vector<8x128xf32> to vector<8x1x128xf32>
    %272 = vector.extract_strided_slice %220 {offsets = [3, 0, 0], sizes = [1, 8, 128], strides = [1, 1, 1]} : vector<4x8x128xf32> to vector<1x8x128xf32>
    %273 = vector.shape_cast %272 : vector<1x8x128xf32> to vector<8x128xf32>
    %274 = vector.shape_cast %273 : vector<8x128xf32> to vector<1x8x128xf32>
    %275 = vector.broadcast %271 : vector<8x1x128xf32> to vector<8x8x128xf32>
    %276 = vector.broadcast %274 : vector<1x8x128xf32> to vector<8x8x128xf32>
    %277 = arith.mulf %275, %276 : vector<8x8x128xf32>
    %278 = arith.addf %268, %277 : vector<8x8x128xf32>
    %279 = vector.shape_cast %278 : vector<8x8x128xf32> to vector<64x128xf32>
    %c0_39 = arith.constant 0 : index
    %c2 = arith.constant 2 : index
    %c0_40 = arith.constant 0 : index
    %c0_41 = arith.constant 0 : index
    %280 = vector.load %arg5[%c0_39, %c2, %c0_40, %c0_41] : memref<1x4x8x64xbf16, #tpu.memory_space<vmem>>, vector<1x1x8x64xbf16>
    %281 = vector.shape_cast %280 : vector<1x1x8x64xbf16> to vector<8x64xbf16>
    %282 = arith.truncf %279 : vector<64x128xf32> to vector<64x128xbf16>
    %cst_42 = arith.constant dense<0.000000e+00> : vector<8x128xf32>
    %283 = tpu.matmul %281, %282, %cst_42 {dimension_numbers = #tpu.dot_dimension_numbers<[1], [0], [0], [1], [0, 0, 1, 1], [], []>} : vector<8x64xbf16>, vector<64x128xbf16>, vector<8x128xf32> -> vector<8x128xf32>
    %284 = arith.addf %20, %283 : vector<8x128xf32>
    %285 = vector.extract_strided_slice %10 {offsets = [24, 0], sizes = [4, 128], strides = [1, 1]} : vector<32x128xi32> to vector<4x128xi32>
    %286 = vector.shape_cast %285 : vector<4x128xi32> to vector<4x1x128xi32>
    %287 = vector.extract_strided_slice %11 {offsets = [24, 0], sizes = [4, 128], strides = [1, 1]} : vector<32x128xi32> to vector<4x128xi32>
    %288 = vector.shape_cast %287 : vector<4x128xi32> to vector<4x1x128xi32>
    %289 = vector.broadcast %286 : vector<4x1x128xi32> to vector<4x8x128xi32>
    %290 = arith.cmpi eq, %23, %289 : vector<4x8x128xi32>
    %291 = vector.extract_strided_slice %13 {offsets = [24, 0], sizes = [4, 128], strides = [1, 1]} : vector<32x128xf32> to vector<4x128xf32>
    %292 = vector.shape_cast %291 : vector<4x128xf32> to vector<4x1x128xf32>
    %cst_43 = arith.constant 0.000000e+00 : f32
    %293 = vector.shape_cast %292 : vector<4x1x128xf32> to vector<4x1x128xf32>
    %294 = vector.broadcast %293 : vector<4x1x128xf32> to vector<4x8x128xf32>
    %295 = vector.broadcast %cst_43 : f32 to vector<4x8x128xf32>
    %296 = arith.select %290, %294, %295 : vector<4x8x128xi1>, vector<4x8x128xf32>
    %c1_i32_44 = arith.constant 1 : i32
    %297 = vector.broadcast %c1_i32_44 : i32 to vector<4x1x128xi32>
    %298 = arith.addi %286, %297 : vector<4x1x128xi32>
    %299 = vector.broadcast %298 : vector<4x1x128xi32> to vector<4x8x128xi32>
    %300 = arith.cmpi eq, %23, %299 : vector<4x8x128xi32>
    %301 = vector.extract_strided_slice %8 {offsets = [24, 0], sizes = [4, 128], strides = [1, 1]} : vector<32x128xf32> to vector<4x128xf32>
    %302 = vector.shape_cast %301 : vector<4x128xf32> to vector<4x1x128xf32>
    %cst_45 = arith.constant 0.000000e+00 : f32
    %303 = vector.shape_cast %302 : vector<4x1x128xf32> to vector<4x1x128xf32>
    %304 = vector.broadcast %303 : vector<4x1x128xf32> to vector<4x8x128xf32>
    %305 = vector.broadcast %cst_45 : f32 to vector<4x8x128xf32>
    %306 = arith.select %300, %304, %305 : vector<4x8x128xi1>, vector<4x8x128xf32>
    %307 = arith.addf %296, %306 : vector<4x8x128xf32>
    %308 = vector.broadcast %288 : vector<4x1x128xi32> to vector<4x8x128xi32>
    %309 = arith.cmpi eq, %22, %308 : vector<4x8x128xi32>
    %310 = vector.extract_strided_slice %16 {offsets = [24, 0], sizes = [4, 128], strides = [1, 1]} : vector<32x128xf32> to vector<4x128xf32>
    %311 = vector.shape_cast %310 : vector<4x128xf32> to vector<4x1x128xf32>
    %cst_46 = arith.constant 0.000000e+00 : f32
    %312 = vector.shape_cast %311 : vector<4x1x128xf32> to vector<4x1x128xf32>
    %313 = vector.broadcast %312 : vector<4x1x128xf32> to vector<4x8x128xf32>
    %314 = vector.broadcast %cst_46 : f32 to vector<4x8x128xf32>
    %315 = arith.select %309, %313, %314 : vector<4x8x128xi1>, vector<4x8x128xf32>
    %c1_i32_47 = arith.constant 1 : i32
    %316 = vector.broadcast %c1_i32_47 : i32 to vector<4x1x128xi32>
    %317 = arith.addi %288, %316 : vector<4x1x128xi32>
    %318 = vector.broadcast %317 : vector<4x1x128xi32> to vector<4x8x128xi32>
    %319 = arith.cmpi eq, %22, %318 : vector<4x8x128xi32>
    %320 = vector.extract_strided_slice %17 {offsets = [24, 0], sizes = [4, 128], strides = [1, 1]} : vector<32x128xf32> to vector<4x128xf32>
    %321 = vector.shape_cast %320 : vector<4x128xf32> to vector<4x1x128xf32>
    %cst_48 = arith.constant 0.000000e+00 : f32
    %322 = vector.shape_cast %321 : vector<4x1x128xf32> to vector<4x1x128xf32>
    %323 = vector.broadcast %322 : vector<4x1x128xf32> to vector<4x8x128xf32>
    %324 = vector.broadcast %cst_48 : f32 to vector<4x8x128xf32>
    %325 = arith.select %319, %323, %324 : vector<4x8x128xi1>, vector<4x8x128xf32>
    %326 = arith.addf %315, %325 : vector<4x8x128xf32>
    %327 = vector.extract_strided_slice %326 {offsets = [0, 0, 0], sizes = [1, 8, 128], strides = [1, 1, 1]} : vector<4x8x128xf32> to vector<1x8x128xf32>
    %328 = vector.shape_cast %327 : vector<1x8x128xf32> to vector<8x128xf32>
    %329 = vector.shape_cast %328 : vector<8x128xf32> to vector<8x1x128xf32>
    %330 = vector.extract_strided_slice %307 {offsets = [0, 0, 0], sizes = [1, 8, 128], strides = [1, 1, 1]} : vector<4x8x128xf32> to vector<1x8x128xf32>
    %331 = vector.shape_cast %330 : vector<1x8x128xf32> to vector<8x128xf32>
    %332 = vector.shape_cast %331 : vector<8x128xf32> to vector<1x8x128xf32>
    %333 = vector.broadcast %329 : vector<8x1x128xf32> to vector<8x8x128xf32>
    %334 = vector.broadcast %332 : vector<1x8x128xf32> to vector<8x8x128xf32>
    %335 = arith.mulf %333, %334 : vector<8x8x128xf32>
    %336 = vector.extract_strided_slice %326 {offsets = [1, 0, 0], sizes = [1, 8, 128], strides = [1, 1, 1]} : vector<4x8x128xf32> to vector<1x8x128xf32>
    %337 = vector.shape_cast %336 : vector<1x8x128xf32> to vector<8x128xf32>
    %338 = vector.shape_cast %337 : vector<8x128xf32> to vector<8x1x128xf32>
    %339 = vector.extract_strided_slice %307 {offsets = [1, 0, 0], sizes = [1, 8, 128], strides = [1, 1, 1]} : vector<4x8x128xf32> to vector<1x8x128xf32>
    %340 = vector.shape_cast %339 : vector<1x8x128xf32> to vector<8x128xf32>
    %341 = vector.shape_cast %340 : vector<8x128xf32> to vector<1x8x128xf32>
    %342 = vector.broadcast %338 : vector<8x1x128xf32> to vector<8x8x128xf32>
    %343 = vector.broadcast %341 : vector<1x8x128xf32> to vector<8x8x128xf32>
    %344 = arith.mulf %342, %343 : vector<8x8x128xf32>
    %345 = arith.addf %335, %344 : vector<8x8x128xf32>
    %346 = vector.extract_strided_slice %326 {offsets = [2, 0, 0], sizes = [1, 8, 128], strides = [1, 1, 1]} : vector<4x8x128xf32> to vector<1x8x128xf32>
    %347 = vector.shape_cast %346 : vector<1x8x128xf32> to vector<8x128xf32>
    %348 = vector.shape_cast %347 : vector<8x128xf32> to vector<8x1x128xf32>
    %349 = vector.extract_strided_slice %307 {offsets = [2, 0, 0], sizes = [1, 8, 128], strides = [1, 1, 1]} : vector<4x8x128xf32> to vector<1x8x128xf32>
    %350 = vector.shape_cast %349 : vector<1x8x128xf32> to vector<8x128xf32>
    %351 = vector.shape_cast %350 : vector<8x128xf32> to vector<1x8x128xf32>
    %352 = vector.broadcast %348 : vector<8x1x128xf32> to vector<8x8x128xf32>
    %353 = vector.broadcast %351 : vector<1x8x128xf32> to vector<8x8x128xf32>
    %354 = arith.mulf %352, %353 : vector<8x8x128xf32>
    %355 = arith.addf %345, %354 : vector<8x8x128xf32>
    %356 = vector.extract_strided_slice %326 {offsets = [3, 0, 0], sizes = [1, 8, 128], strides = [1, 1, 1]} : vector<4x8x128xf32> to vector<1x8x128xf32>
    %357 = vector.shape_cast %356 : vector<1x8x128xf32> to vector<8x128xf32>
    %358 = vector.shape_cast %357 : vector<8x128xf32> to vector<8x1x128xf32>
    %359 = vector.extract_strided_slice %307 {offsets = [3, 0, 0], sizes = [1, 8, 128], strides = [1, 1, 1]} : vector<4x8x128xf32> to vector<1x8x128xf32>
    %360 = vector.shape_cast %359 : vector<1x8x128xf32> to vector<8x128xf32>
    %361 = vector.shape_cast %360 : vector<8x128xf32> to vector<1x8x128xf32>
    %362 = vector.broadcast %358 : vector<8x1x128xf32> to vector<8x8x128xf32>
    %363 = vector.broadcast %361 : vector<1x8x128xf32> to vector<8x8x128xf32>
    %364 = arith.mulf %362, %363 : vector<8x8x128xf32>
    %365 = arith.addf %355, %364 : vector<8x8x128xf32>
    %366 = vector.shape_cast %365 : vector<8x8x128xf32> to vector<64x128xf32>
    %c0_49 = arith.constant 0 : index
    %c3 = arith.constant 3 : index
    %c0_50 = arith.constant 0 : index
    %c0_51 = arith.constant 0 : index
    %367 = vector.load %arg5[%c0_49, %c3, %c0_50, %c0_51] : memref<1x4x8x64xbf16, #tpu.memory_space<vmem>>, vector<1x1x8x64xbf16>
    %368 = vector.shape_cast %367 : vector<1x1x8x64xbf16> to vector<8x64xbf16>
    %369 = arith.truncf %366 : vector<64x128xf32> to vector<64x128xbf16>
    %cst_52 = arith.constant dense<0.000000e+00> : vector<8x128xf32>
    %370 = tpu.matmul %368, %369, %cst_52 {dimension_numbers = #tpu.dot_dimension_numbers<[1], [0], [0], [1], [0, 0, 1, 1], [], []>} : vector<8x64xbf16>, vector<64x128xbf16>, vector<8x128xf32> -> vector<8x128xf32>
    %371 = arith.addf %21, %370 : vector<8x128xf32>
    %372 = tpu.iota {dimensions = array<i32: 1>} : vector<4x4x128xi32>
    %373 = tpu.iota {dimensions = array<i32: 1>} : vector<4x8x128xi32>
    %374 = vector.extract_strided_slice %10 {offsets = [4, 0], sizes = [4, 128], strides = [1, 1]} : vector<32x128xi32> to vector<4x128xi32>
    %375 = vector.shape_cast %374 : vector<4x128xi32> to vector<4x1x128xi32>
    %376 = vector.extract_strided_slice %11 {offsets = [4, 0], sizes = [4, 128], strides = [1, 1]} : vector<32x128xi32> to vector<4x128xi32>
    %377 = vector.shape_cast %376 : vector<4x128xi32> to vector<4x1x128xi32>
    %378 = vector.broadcast %375 : vector<4x1x128xi32> to vector<4x8x128xi32>
    %379 = arith.cmpi eq, %373, %378 : vector<4x8x128xi32>
    %380 = vector.extract_strided_slice %13 {offsets = [4, 0], sizes = [4, 128], strides = [1, 1]} : vector<32x128xf32> to vector<4x128xf32>
    %381 = vector.shape_cast %380 : vector<4x128xf32> to vector<4x1x128xf32>
    %cst_53 = arith.constant 0.000000e+00 : f32
    %382 = vector.shape_cast %381 : vector<4x1x128xf32> to vector<4x1x128xf32>
    %383 = vector.broadcast %382 : vector<4x1x128xf32> to vector<4x8x128xf32>
    %384 = vector.broadcast %cst_53 : f32 to vector<4x8x128xf32>
    %385 = arith.select %379, %383, %384 : vector<4x8x128xi1>, vector<4x8x128xf32>
    %c1_i32_54 = arith.constant 1 : i32
    %386 = vector.broadcast %c1_i32_54 : i32 to vector<4x1x128xi32>
    %387 = arith.addi %375, %386 : vector<4x1x128xi32>
    %388 = vector.broadcast %387 : vector<4x1x128xi32> to vector<4x8x128xi32>
    %389 = arith.cmpi eq, %373, %388 : vector<4x8x128xi32>
    %390 = vector.extract_strided_slice %8 {offsets = [4, 0], sizes = [4, 128], strides = [1, 1]} : vector<32x128xf32> to vector<4x128xf32>
    %391 = vector.shape_cast %390 : vector<4x128xf32> to vector<4x1x128xf32>
    %cst_55 = arith.constant 0.000000e+00 : f32
    %392 = vector.shape_cast %391 : vector<4x1x128xf32> to vector<4x1x128xf32>
    %393 = vector.broadcast %392 : vector<4x1x128xf32> to vector<4x8x128xf32>
    %394 = vector.broadcast %cst_55 : f32 to vector<4x8x128xf32>
    %395 = arith.select %389, %393, %394 : vector<4x8x128xi1>, vector<4x8x128xf32>
    %396 = arith.addf %385, %395 : vector<4x8x128xf32>
    %397 = vector.broadcast %377 : vector<4x1x128xi32> to vector<4x4x128xi32>
    %398 = arith.cmpi eq, %372, %397 : vector<4x4x128xi32>
    %399 = vector.extract_strided_slice %16 {offsets = [4, 0], sizes = [4, 128], strides = [1, 1]} : vector<32x128xf32> to vector<4x128xf32>
    %400 = vector.shape_cast %399 : vector<4x128xf32> to vector<4x1x128xf32>
    %cst_56 = arith.constant 0.000000e+00 : f32
    %401 = vector.shape_cast %400 : vector<4x1x128xf32> to vector<4x1x128xf32>
    %402 = vector.broadcast %401 : vector<4x1x128xf32> to vector<4x4x128xf32>
    %403 = vector.broadcast %cst_56 : f32 to vector<4x4x128xf32>
    %404 = arith.select %398, %402, %403 : vector<4x4x128xi1>, vector<4x4x128xf32>
    %c1_i32_57 = arith.constant 1 : i32
    %405 = vector.broadcast %c1_i32_57 : i32 to vector<4x1x128xi32>
    %406 = arith.addi %377, %405 : vector<4x1x128xi32>
    %407 = vector.broadcast %406 : vector<4x1x128xi32> to vector<4x4x128xi32>
    %408 = arith.cmpi eq, %372, %407 : vector<4x4x128xi32>
    %409 = vector.extract_strided_slice %17 {offsets = [4, 0], sizes = [4, 128], strides = [1, 1]} : vector<32x128xf32> to vector<4x128xf32>
    %410 = vector.shape_cast %409 : vector<4x128xf32> to vector<4x1x128xf32>
    %cst_58 = arith.constant 0.000000e+00 : f32
    %411 = vector.shape_cast %410 : vector<4x1x128xf32> to vector<4x1x128xf32>
    %412 = vector.broadcast %411 : vector<4x1x128xf32> to vector<4x4x128xf32>
    %413 = vector.broadcast %cst_58 : f32 to vector<4x4x128xf32>
    %414 = arith.select %408, %412, %413 : vector<4x4x128xi1>, vector<4x4x128xf32>
    %415 = arith.addf %404, %414 : vector<4x4x128xf32>
    %416 = vector.extract_strided_slice %415 {offsets = [0, 0, 0], sizes = [1, 4, 128], strides = [1, 1, 1]} : vector<4x4x128xf32> to vector<1x4x128xf32>
    %417 = vector.shape_cast %416 : vector<1x4x128xf32> to vector<4x128xf32>
    %418 = vector.shape_cast %417 : vector<4x128xf32> to vector<4x1x128xf32>
    %419 = vector.extract_strided_slice %396 {offsets = [0, 0, 0], sizes = [1, 8, 128], strides = [1, 1, 1]} : vector<4x8x128xf32> to vector<1x8x128xf32>
    %420 = vector.shape_cast %419 : vector<1x8x128xf32> to vector<8x128xf32>
    %421 = vector.shape_cast %420 : vector<8x128xf32> to vector<1x8x128xf32>
    %422 = vector.broadcast %418 : vector<4x1x128xf32> to vector<4x8x128xf32>
    %423 = vector.broadcast %421 : vector<1x8x128xf32> to vector<4x8x128xf32>
    %424 = arith.mulf %422, %423 : vector<4x8x128xf32>
    %425 = vector.extract_strided_slice %415 {offsets = [1, 0, 0], sizes = [1, 4, 128], strides = [1, 1, 1]} : vector<4x4x128xf32> to vector<1x4x128xf32>
    %426 = vector.shape_cast %425 : vector<1x4x128xf32> to vector<4x128xf32>
    %427 = vector.shape_cast %426 : vector<4x128xf32> to vector<4x1x128xf32>
    %428 = vector.extract_strided_slice %396 {offsets = [1, 0, 0], sizes = [1, 8, 128], strides = [1, 1, 1]} : vector<4x8x128xf32> to vector<1x8x128xf32>
    %429 = vector.shape_cast %428 : vector<1x8x128xf32> to vector<8x128xf32>
    %430 = vector.shape_cast %429 : vector<8x128xf32> to vector<1x8x128xf32>
    %431 = vector.broadcast %427 : vector<4x1x128xf32> to vector<4x8x128xf32>
    %432 = vector.broadcast %430 : vector<1x8x128xf32> to vector<4x8x128xf32>
    %433 = arith.mulf %431, %432 : vector<4x8x128xf32>
    %434 = arith.addf %424, %433 : vector<4x8x128xf32>
    %435 = vector.extract_strided_slice %415 {offsets = [2, 0, 0], sizes = [1, 4, 128], strides = [1, 1, 1]} : vector<4x4x128xf32> to vector<1x4x128xf32>
    %436 = vector.shape_cast %435 : vector<1x4x128xf32> to vector<4x128xf32>
    %437 = vector.shape_cast %436 : vector<4x128xf32> to vector<4x1x128xf32>
    %438 = vector.extract_strided_slice %396 {offsets = [2, 0, 0], sizes = [1, 8, 128], strides = [1, 1, 1]} : vector<4x8x128xf32> to vector<1x8x128xf32>
    %439 = vector.shape_cast %438 : vector<1x8x128xf32> to vector<8x128xf32>
    %440 = vector.shape_cast %439 : vector<8x128xf32> to vector<1x8x128xf32>
    %441 = vector.broadcast %437 : vector<4x1x128xf32> to vector<4x8x128xf32>
    %442 = vector.broadcast %440 : vector<1x8x128xf32> to vector<4x8x128xf32>
    %443 = arith.mulf %441, %442 : vector<4x8x128xf32>
    %444 = arith.addf %434, %443 : vector<4x8x128xf32>
    %445 = vector.extract_strided_slice %415 {offsets = [3, 0, 0], sizes = [1, 4, 128], strides = [1, 1, 1]} : vector<4x4x128xf32> to vector<1x4x128xf32>
    %446 = vector.shape_cast %445 : vector<1x4x128xf32> to vector<4x128xf32>
    %447 = vector.shape_cast %446 : vector<4x128xf32> to vector<4x1x128xf32>
    %448 = vector.extract_strided_slice %396 {offsets = [3, 0, 0], sizes = [1, 8, 128], strides = [1, 1, 1]} : vector<4x8x128xf32> to vector<1x8x128xf32>
    %449 = vector.shape_cast %448 : vector<1x8x128xf32> to vector<8x128xf32>
    %450 = vector.shape_cast %449 : vector<8x128xf32> to vector<1x8x128xf32>
    %451 = vector.broadcast %447 : vector<4x1x128xf32> to vector<4x8x128xf32>
    %452 = vector.broadcast %450 : vector<1x8x128xf32> to vector<4x8x128xf32>
    %453 = arith.mulf %451, %452 : vector<4x8x128xf32>
    %454 = arith.addf %444, %453 : vector<4x8x128xf32>
    %455 = vector.shape_cast %454 : vector<4x8x128xf32> to vector<32x128xf32>
    %c0_59 = arith.constant 0 : index
    %c0_60 = arith.constant 0 : index
    %c0_61 = arith.constant 0 : index
    %c0_62 = arith.constant 0 : index
    %456 = vector.load %arg6[%c0_59, %c0_60, %c0_61, %c0_62] : memref<1x4x8x32xbf16, #tpu.memory_space<vmem>>, vector<1x1x8x32xbf16>
    %457 = vector.shape_cast %456 : vector<1x1x8x32xbf16> to vector<8x32xbf16>
    %458 = arith.truncf %455 : vector<32x128xf32> to vector<32x128xbf16>
    %cst_63 = arith.constant dense<0.000000e+00> : vector<8x128xf32>
    %459 = tpu.matmul %457, %458, %cst_63 {dimension_numbers = #tpu.dot_dimension_numbers<[1], [0], [0], [1], [0, 0, 1, 1], [], []>} : vector<8x32xbf16>, vector<32x128xbf16>, vector<8x128xf32> -> vector<8x128xf32>
    %460 = arith.addf %110, %459 : vector<8x128xf32>
    %461 = vector.extract_strided_slice %10 {offsets = [12, 0], sizes = [4, 128], strides = [1, 1]} : vector<32x128xi32> to vector<4x128xi32>
    %462 = vector.shape_cast %461 : vector<4x128xi32> to vector<4x1x128xi32>
    %463 = vector.extract_strided_slice %11 {offsets = [12, 0], sizes = [4, 128], strides = [1, 1]} : vector<32x128xi32> to vector<4x128xi32>
    %464 = vector.shape_cast %463 : vector<4x128xi32> to vector<4x1x128xi32>
    %465 = vector.broadcast %462 : vector<4x1x128xi32> to vector<4x8x128xi32>
    %466 = arith.cmpi eq, %373, %465 : vector<4x8x128xi32>
    %467 = vector.extract_strided_slice %13 {offsets = [12, 0], sizes = [4, 128], strides = [1, 1]} : vector<32x128xf32> to vector<4x128xf32>
    %468 = vector.shape_cast %467 : vector<4x128xf32> to vector<4x1x128xf32>
    %cst_64 = arith.constant 0.000000e+00 : f32
    %469 = vector.shape_cast %468 : vector<4x1x128xf32> to vector<4x1x128xf32>
    %470 = vector.broadcast %469 : vector<4x1x128xf32> to vector<4x8x128xf32>
    %471 = vector.broadcast %cst_64 : f32 to vector<4x8x128xf32>
    %472 = arith.select %466, %470, %471 : vector<4x8x128xi1>, vector<4x8x128xf32>
    %c1_i32_65 = arith.constant 1 : i32
    %473 = vector.broadcast %c1_i32_65 : i32 to vector<4x1x128xi32>
    %474 = arith.addi %462, %473 : vector<4x1x128xi32>
    %475 = vector.broadcast %474 : vector<4x1x128xi32> to vector<4x8x128xi32>
    %476 = arith.cmpi eq, %373, %475 : vector<4x8x128xi32>
    %477 = vector.extract_strided_slice %8 {offsets = [12, 0], sizes = [4, 128], strides = [1, 1]} : vector<32x128xf32> to vector<4x128xf32>
    %478 = vector.shape_cast %477 : vector<4x128xf32> to vector<4x1x128xf32>
    %cst_66 = arith.constant 0.000000e+00 : f32
    %479 = vector.shape_cast %478 : vector<4x1x128xf32> to vector<4x1x128xf32>
    %480 = vector.broadcast %479 : vector<4x1x128xf32> to vector<4x8x128xf32>
    %481 = vector.broadcast %cst_66 : f32 to vector<4x8x128xf32>
    %482 = arith.select %476, %480, %481 : vector<4x8x128xi1>, vector<4x8x128xf32>
    %483 = arith.addf %472, %482 : vector<4x8x128xf32>
    %484 = vector.broadcast %464 : vector<4x1x128xi32> to vector<4x4x128xi32>
    %485 = arith.cmpi eq, %372, %484 : vector<4x4x128xi32>
    %486 = vector.extract_strided_slice %16 {offsets = [12, 0], sizes = [4, 128], strides = [1, 1]} : vector<32x128xf32> to vector<4x128xf32>
    %487 = vector.shape_cast %486 : vector<4x128xf32> to vector<4x1x128xf32>
    %cst_67 = arith.constant 0.000000e+00 : f32
    %488 = vector.shape_cast %487 : vector<4x1x128xf32> to vector<4x1x128xf32>
    %489 = vector.broadcast %488 : vector<4x1x128xf32> to vector<4x4x128xf32>
    %490 = vector.broadcast %cst_67 : f32 to vector<4x4x128xf32>
    %491 = arith.select %485, %489, %490 : vector<4x4x128xi1>, vector<4x4x128xf32>
    %c1_i32_68 = arith.constant 1 : i32
    %492 = vector.broadcast %c1_i32_68 : i32 to vector<4x1x128xi32>
    %493 = arith.addi %464, %492 : vector<4x1x128xi32>
    %494 = vector.broadcast %493 : vector<4x1x128xi32> to vector<4x4x128xi32>
    %495 = arith.cmpi eq, %372, %494 : vector<4x4x128xi32>
    %496 = vector.extract_strided_slice %17 {offsets = [12, 0], sizes = [4, 128], strides = [1, 1]} : vector<32x128xf32> to vector<4x128xf32>
    %497 = vector.shape_cast %496 : vector<4x128xf32> to vector<4x1x128xf32>
    %cst_69 = arith.constant 0.000000e+00 : f32
    %498 = vector.shape_cast %497 : vector<4x1x128xf32> to vector<4x1x128xf32>
    %499 = vector.broadcast %498 : vector<4x1x128xf32> to vector<4x4x128xf32>
    %500 = vector.broadcast %cst_69 : f32 to vector<4x4x128xf32>
    %501 = arith.select %495, %499, %500 : vector<4x4x128xi1>, vector<4x4x128xf32>
    %502 = arith.addf %491, %501 : vector<4x4x128xf32>
    %503 = vector.extract_strided_slice %502 {offsets = [0, 0, 0], sizes = [1, 4, 128], strides = [1, 1, 1]} : vector<4x4x128xf32> to vector<1x4x128xf32>
    %504 = vector.shape_cast %503 : vector<1x4x128xf32> to vector<4x128xf32>
    %505 = vector.shape_cast %504 : vector<4x128xf32> to vector<4x1x128xf32>
    %506 = vector.extract_strided_slice %483 {offsets = [0, 0, 0], sizes = [1, 8, 128], strides = [1, 1, 1]} : vector<4x8x128xf32> to vector<1x8x128xf32>
    %507 = vector.shape_cast %506 : vector<1x8x128xf32> to vector<8x128xf32>
    %508 = vector.shape_cast %507 : vector<8x128xf32> to vector<1x8x128xf32>
    %509 = vector.broadcast %505 : vector<4x1x128xf32> to vector<4x8x128xf32>
    %510 = vector.broadcast %508 : vector<1x8x128xf32> to vector<4x8x128xf32>
    %511 = arith.mulf %509, %510 : vector<4x8x128xf32>
    %512 = vector.extract_strided_slice %502 {offsets = [1, 0, 0], sizes = [1, 4, 128], strides = [1, 1, 1]} : vector<4x4x128xf32> to vector<1x4x128xf32>
    %513 = vector.shape_cast %512 : vector<1x4x128xf32> to vector<4x128xf32>
    %514 = vector.shape_cast %513 : vector<4x128xf32> to vector<4x1x128xf32>
    %515 = vector.extract_strided_slice %483 {offsets = [1, 0, 0], sizes = [1, 8, 128], strides = [1, 1, 1]} : vector<4x8x128xf32> to vector<1x8x128xf32>
    %516 = vector.shape_cast %515 : vector<1x8x128xf32> to vector<8x128xf32>
    %517 = vector.shape_cast %516 : vector<8x128xf32> to vector<1x8x128xf32>
    %518 = vector.broadcast %514 : vector<4x1x128xf32> to vector<4x8x128xf32>
    %519 = vector.broadcast %517 : vector<1x8x128xf32> to vector<4x8x128xf32>
    %520 = arith.mulf %518, %519 : vector<4x8x128xf32>
    %521 = arith.addf %511, %520 : vector<4x8x128xf32>
    %522 = vector.extract_strided_slice %502 {offsets = [2, 0, 0], sizes = [1, 4, 128], strides = [1, 1, 1]} : vector<4x4x128xf32> to vector<1x4x128xf32>
    %523 = vector.shape_cast %522 : vector<1x4x128xf32> to vector<4x128xf32>
    %524 = vector.shape_cast %523 : vector<4x128xf32> to vector<4x1x128xf32>
    %525 = vector.extract_strided_slice %483 {offsets = [2, 0, 0], sizes = [1, 8, 128], strides = [1, 1, 1]} : vector<4x8x128xf32> to vector<1x8x128xf32>
    %526 = vector.shape_cast %525 : vector<1x8x128xf32> to vector<8x128xf32>
    %527 = vector.shape_cast %526 : vector<8x128xf32> to vector<1x8x128xf32>
    %528 = vector.broadcast %524 : vector<4x1x128xf32> to vector<4x8x128xf32>
    %529 = vector.broadcast %527 : vector<1x8x128xf32> to vector<4x8x128xf32>
    %530 = arith.mulf %528, %529 : vector<4x8x128xf32>
    %531 = arith.addf %521, %530 : vector<4x8x128xf32>
    %532 = vector.extract_strided_slice %502 {offsets = [3, 0, 0], sizes = [1, 4, 128], strides = [1, 1, 1]} : vector<4x4x128xf32> to vector<1x4x128xf32>
    %533 = vector.shape_cast %532 : vector<1x4x128xf32> to vector<4x128xf32>
    %534 = vector.shape_cast %533 : vector<4x128xf32> to vector<4x1x128xf32>
    %535 = vector.extract_strided_slice %483 {offsets = [3, 0, 0], sizes = [1, 8, 128], strides = [1, 1, 1]} : vector<4x8x128xf32> to vector<1x8x128xf32>
    %536 = vector.shape_cast %535 : vector<1x8x128xf32> to vector<8x128xf32>
    %537 = vector.shape_cast %536 : vector<8x128xf32> to vector<1x8x128xf32>
    %538 = vector.broadcast %534 : vector<4x1x128xf32> to vector<4x8x128xf32>
    %539 = vector.broadcast %537 : vector<1x8x128xf32> to vector<4x8x128xf32>
    %540 = arith.mulf %538, %539 : vector<4x8x128xf32>
    %541 = arith.addf %531, %540 : vector<4x8x128xf32>
    %542 = vector.shape_cast %541 : vector<4x8x128xf32> to vector<32x128xf32>
    %c0_70 = arith.constant 0 : index
    %c1_71 = arith.constant 1 : index
    %c0_72 = arith.constant 0 : index
    %c0_73 = arith.constant 0 : index
    %543 = vector.load %arg6[%c0_70, %c1_71, %c0_72, %c0_73] : memref<1x4x8x32xbf16, #tpu.memory_space<vmem>>, vector<1x1x8x32xbf16>
    %544 = vector.shape_cast %543 : vector<1x1x8x32xbf16> to vector<8x32xbf16>
    %545 = arith.truncf %542 : vector<32x128xf32> to vector<32x128xbf16>
    %cst_74 = arith.constant dense<0.000000e+00> : vector<8x128xf32>
    %546 = tpu.matmul %544, %545, %cst_74 {dimension_numbers = #tpu.dot_dimension_numbers<[1], [0], [0], [1], [0, 0, 1, 1], [], []>} : vector<8x32xbf16>, vector<32x128xbf16>, vector<8x128xf32> -> vector<8x128xf32>
    %547 = arith.addf %197, %546 : vector<8x128xf32>
    %548 = vector.extract_strided_slice %10 {offsets = [20, 0], sizes = [4, 128], strides = [1, 1]} : vector<32x128xi32> to vector<4x128xi32>
    %549 = vector.shape_cast %548 : vector<4x128xi32> to vector<4x1x128xi32>
    %550 = vector.extract_strided_slice %11 {offsets = [20, 0], sizes = [4, 128], strides = [1, 1]} : vector<32x128xi32> to vector<4x128xi32>
    %551 = vector.shape_cast %550 : vector<4x128xi32> to vector<4x1x128xi32>
    %552 = vector.broadcast %549 : vector<4x1x128xi32> to vector<4x8x128xi32>
    %553 = arith.cmpi eq, %373, %552 : vector<4x8x128xi32>
    %554 = vector.extract_strided_slice %13 {offsets = [20, 0], sizes = [4, 128], strides = [1, 1]} : vector<32x128xf32> to vector<4x128xf32>
    %555 = vector.shape_cast %554 : vector<4x128xf32> to vector<4x1x128xf32>
    %cst_75 = arith.constant 0.000000e+00 : f32
    %556 = vector.shape_cast %555 : vector<4x1x128xf32> to vector<4x1x128xf32>
    %557 = vector.broadcast %556 : vector<4x1x128xf32> to vector<4x8x128xf32>
    %558 = vector.broadcast %cst_75 : f32 to vector<4x8x128xf32>
    %559 = arith.select %553, %557, %558 : vector<4x8x128xi1>, vector<4x8x128xf32>
    %c1_i32_76 = arith.constant 1 : i32
    %560 = vector.broadcast %c1_i32_76 : i32 to vector<4x1x128xi32>
    %561 = arith.addi %549, %560 : vector<4x1x128xi32>
    %562 = vector.broadcast %561 : vector<4x1x128xi32> to vector<4x8x128xi32>
    %563 = arith.cmpi eq, %373, %562 : vector<4x8x128xi32>
    %564 = vector.extract_strided_slice %8 {offsets = [20, 0], sizes = [4, 128], strides = [1, 1]} : vector<32x128xf32> to vector<4x128xf32>
    %565 = vector.shape_cast %564 : vector<4x128xf32> to vector<4x1x128xf32>
    %cst_77 = arith.constant 0.000000e+00 : f32
    %566 = vector.shape_cast %565 : vector<4x1x128xf32> to vector<4x1x128xf32>
    %567 = vector.broadcast %566 : vector<4x1x128xf32> to vector<4x8x128xf32>
    %568 = vector.broadcast %cst_77 : f32 to vector<4x8x128xf32>
    %569 = arith.select %563, %567, %568 : vector<4x8x128xi1>, vector<4x8x128xf32>
    %570 = arith.addf %559, %569 : vector<4x8x128xf32>
    %571 = vector.broadcast %551 : vector<4x1x128xi32> to vector<4x4x128xi32>
    %572 = arith.cmpi eq, %372, %571 : vector<4x4x128xi32>
    %573 = vector.extract_strided_slice %16 {offsets = [20, 0], sizes = [4, 128], strides = [1, 1]} : vector<32x128xf32> to vector<4x128xf32>
    %574 = vector.shape_cast %573 : vector<4x128xf32> to vector<4x1x128xf32>
    %cst_78 = arith.constant 0.000000e+00 : f32
    %575 = vector.shape_cast %574 : vector<4x1x128xf32> to vector<4x1x128xf32>
    %576 = vector.broadcast %575 : vector<4x1x128xf32> to vector<4x4x128xf32>
    %577 = vector.broadcast %cst_78 : f32 to vector<4x4x128xf32>
    %578 = arith.select %572, %576, %577 : vector<4x4x128xi1>, vector<4x4x128xf32>
    %c1_i32_79 = arith.constant 1 : i32
    %579 = vector.broadcast %c1_i32_79 : i32 to vector<4x1x128xi32>
    %580 = arith.addi %551, %579 : vector<4x1x128xi32>
    %581 = vector.broadcast %580 : vector<4x1x128xi32> to vector<4x4x128xi32>
    %582 = arith.cmpi eq, %372, %581 : vector<4x4x128xi32>
    %583 = vector.extract_strided_slice %17 {offsets = [20, 0], sizes = [4, 128], strides = [1, 1]} : vector<32x128xf32> to vector<4x128xf32>
    %584 = vector.shape_cast %583 : vector<4x128xf32> to vector<4x1x128xf32>
    %cst_80 = arith.constant 0.000000e+00 : f32
    %585 = vector.shape_cast %584 : vector<4x1x128xf32> to vector<4x1x128xf32>
    %586 = vector.broadcast %585 : vector<4x1x128xf32> to vector<4x4x128xf32>
    %587 = vector.broadcast %cst_80 : f32 to vector<4x4x128xf32>
    %588 = arith.select %582, %586, %587 : vector<4x4x128xi1>, vector<4x4x128xf32>
    %589 = arith.addf %578, %588 : vector<4x4x128xf32>
    %590 = vector.extract_strided_slice %589 {offsets = [0, 0, 0], sizes = [1, 4, 128], strides = [1, 1, 1]} : vector<4x4x128xf32> to vector<1x4x128xf32>
    %591 = vector.shape_cast %590 : vector<1x4x128xf32> to vector<4x128xf32>
    %592 = vector.shape_cast %591 : vector<4x128xf32> to vector<4x1x128xf32>
    %593 = vector.extract_strided_slice %570 {offsets = [0, 0, 0], sizes = [1, 8, 128], strides = [1, 1, 1]} : vector<4x8x128xf32> to vector<1x8x128xf32>
    %594 = vector.shape_cast %593 : vector<1x8x128xf32> to vector<8x128xf32>
    %595 = vector.shape_cast %594 : vector<8x128xf32> to vector<1x8x128xf32>
    %596 = vector.broadcast %592 : vector<4x1x128xf32> to vector<4x8x128xf32>
    %597 = vector.broadcast %595 : vector<1x8x128xf32> to vector<4x8x128xf32>
    %598 = arith.mulf %596, %597 : vector<4x8x128xf32>
    %599 = vector.extract_strided_slice %589 {offsets = [1, 0, 0], sizes = [1, 4, 128], strides = [1, 1, 1]} : vector<4x4x128xf32> to vector<1x4x128xf32>
    %600 = vector.shape_cast %599 : vector<1x4x128xf32> to vector<4x128xf32>
    %601 = vector.shape_cast %600 : vector<4x128xf32> to vector<4x1x128xf32>
    %602 = vector.extract_strided_slice %570 {offsets = [1, 0, 0], sizes = [1, 8, 128], strides = [1, 1, 1]} : vector<4x8x128xf32> to vector<1x8x128xf32>
    %603 = vector.shape_cast %602 : vector<1x8x128xf32> to vector<8x128xf32>
    %604 = vector.shape_cast %603 : vector<8x128xf32> to vector<1x8x128xf32>
    %605 = vector.broadcast %601 : vector<4x1x128xf32> to vector<4x8x128xf32>
    %606 = vector.broadcast %604 : vector<1x8x128xf32> to vector<4x8x128xf32>
    %607 = arith.mulf %605, %606 : vector<4x8x128xf32>
    %608 = arith.addf %598, %607 : vector<4x8x128xf32>
    %609 = vector.extract_strided_slice %589 {offsets = [2, 0, 0], sizes = [1, 4, 128], strides = [1, 1, 1]} : vector<4x4x128xf32> to vector<1x4x128xf32>
    %610 = vector.shape_cast %609 : vector<1x4x128xf32> to vector<4x128xf32>
    %611 = vector.shape_cast %610 : vector<4x128xf32> to vector<4x1x128xf32>
    %612 = vector.extract_strided_slice %570 {offsets = [2, 0, 0], sizes = [1, 8, 128], strides = [1, 1, 1]} : vector<4x8x128xf32> to vector<1x8x128xf32>
    %613 = vector.shape_cast %612 : vector<1x8x128xf32> to vector<8x128xf32>
    %614 = vector.shape_cast %613 : vector<8x128xf32> to vector<1x8x128xf32>
    %615 = vector.broadcast %611 : vector<4x1x128xf32> to vector<4x8x128xf32>
    %616 = vector.broadcast %614 : vector<1x8x128xf32> to vector<4x8x128xf32>
    %617 = arith.mulf %615, %616 : vector<4x8x128xf32>
    %618 = arith.addf %608, %617 : vector<4x8x128xf32>
    %619 = vector.extract_strided_slice %589 {offsets = [3, 0, 0], sizes = [1, 4, 128], strides = [1, 1, 1]} : vector<4x4x128xf32> to vector<1x4x128xf32>
    %620 = vector.shape_cast %619 : vector<1x4x128xf32> to vector<4x128xf32>
    %621 = vector.shape_cast %620 : vector<4x128xf32> to vector<4x1x128xf32>
    %622 = vector.extract_strided_slice %570 {offsets = [3, 0, 0], sizes = [1, 8, 128], strides = [1, 1, 1]} : vector<4x8x128xf32> to vector<1x8x128xf32>
    %623 = vector.shape_cast %622 : vector<1x8x128xf32> to vector<8x128xf32>
    %624 = vector.shape_cast %623 : vector<8x128xf32> to vector<1x8x128xf32>
    %625 = vector.broadcast %621 : vector<4x1x128xf32> to vector<4x8x128xf32>
    %626 = vector.broadcast %624 : vector<1x8x128xf32> to vector<4x8x128xf32>
    %627 = arith.mulf %625, %626 : vector<4x8x128xf32>
    %628 = arith.addf %618, %627 : vector<4x8x128xf32>
    %629 = vector.shape_cast %628 : vector<4x8x128xf32> to vector<32x128xf32>
    %c0_81 = arith.constant 0 : index
    %c2_82 = arith.constant 2 : index
    %c0_83 = arith.constant 0 : index
    %c0_84 = arith.constant 0 : index
    %630 = vector.load %arg6[%c0_81, %c2_82, %c0_83, %c0_84] : memref<1x4x8x32xbf16, #tpu.memory_space<vmem>>, vector<1x1x8x32xbf16>
    %631 = vector.shape_cast %630 : vector<1x1x8x32xbf16> to vector<8x32xbf16>
    %632 = arith.truncf %629 : vector<32x128xf32> to vector<32x128xbf16>
    %cst_85 = arith.constant dense<0.000000e+00> : vector<8x128xf32>
    %633 = tpu.matmul %631, %632, %cst_85 {dimension_numbers = #tpu.dot_dimension_numbers<[1], [0], [0], [1], [0, 0, 1, 1], [], []>} : vector<8x32xbf16>, vector<32x128xbf16>, vector<8x128xf32> -> vector<8x128xf32>
    %634 = arith.addf %284, %633 : vector<8x128xf32>
    %635 = vector.extract_strided_slice %10 {offsets = [28, 0], sizes = [4, 128], strides = [1, 1]} : vector<32x128xi32> to vector<4x128xi32>
    %636 = vector.shape_cast %635 : vector<4x128xi32> to vector<4x1x128xi32>
    %637 = vector.extract_strided_slice %11 {offsets = [28, 0], sizes = [4, 128], strides = [1, 1]} : vector<32x128xi32> to vector<4x128xi32>
    %638 = vector.shape_cast %637 : vector<4x128xi32> to vector<4x1x128xi32>
    %639 = vector.broadcast %636 : vector<4x1x128xi32> to vector<4x8x128xi32>
    %640 = arith.cmpi eq, %373, %639 : vector<4x8x128xi32>
    %641 = vector.extract_strided_slice %13 {offsets = [28, 0], sizes = [4, 128], strides = [1, 1]} : vector<32x128xf32> to vector<4x128xf32>
    %642 = vector.shape_cast %641 : vector<4x128xf32> to vector<4x1x128xf32>
    %cst_86 = arith.constant 0.000000e+00 : f32
    %643 = vector.shape_cast %642 : vector<4x1x128xf32> to vector<4x1x128xf32>
    %644 = vector.broadcast %643 : vector<4x1x128xf32> to vector<4x8x128xf32>
    %645 = vector.broadcast %cst_86 : f32 to vector<4x8x128xf32>
    %646 = arith.select %640, %644, %645 : vector<4x8x128xi1>, vector<4x8x128xf32>
    %c1_i32_87 = arith.constant 1 : i32
    %647 = vector.broadcast %c1_i32_87 : i32 to vector<4x1x128xi32>
    %648 = arith.addi %636, %647 : vector<4x1x128xi32>
    %649 = vector.broadcast %648 : vector<4x1x128xi32> to vector<4x8x128xi32>
    %650 = arith.cmpi eq, %373, %649 : vector<4x8x128xi32>
    %651 = vector.extract_strided_slice %8 {offsets = [28, 0], sizes = [4, 128], strides = [1, 1]} : vector<32x128xf32> to vector<4x128xf32>
    %652 = vector.shape_cast %651 : vector<4x128xf32> to vector<4x1x128xf32>
    %cst_88 = arith.constant 0.000000e+00 : f32
    %653 = vector.shape_cast %652 : vector<4x1x128xf32> to vector<4x1x128xf32>
    %654 = vector.broadcast %653 : vector<4x1x128xf32> to vector<4x8x128xf32>
    %655 = vector.broadcast %cst_88 : f32 to vector<4x8x128xf32>
    %656 = arith.select %650, %654, %655 : vector<4x8x128xi1>, vector<4x8x128xf32>
    %657 = arith.addf %646, %656 : vector<4x8x128xf32>
    %658 = vector.broadcast %638 : vector<4x1x128xi32> to vector<4x4x128xi32>
    %659 = arith.cmpi eq, %372, %658 : vector<4x4x128xi32>
    %660 = vector.extract_strided_slice %16 {offsets = [28, 0], sizes = [4, 128], strides = [1, 1]} : vector<32x128xf32> to vector<4x128xf32>
    %661 = vector.shape_cast %660 : vector<4x128xf32> to vector<4x1x128xf32>
    %cst_89 = arith.constant 0.000000e+00 : f32
    %662 = vector.shape_cast %661 : vector<4x1x128xf32> to vector<4x1x128xf32>
    %663 = vector.broadcast %662 : vector<4x1x128xf32> to vector<4x4x128xf32>
    %664 = vector.broadcast %cst_89 : f32 to vector<4x4x128xf32>
    %665 = arith.select %659, %663, %664 : vector<4x4x128xi1>, vector<4x4x128xf32>
    %c1_i32_90 = arith.constant 1 : i32
    %666 = vector.broadcast %c1_i32_90 : i32 to vector<4x1x128xi32>
    %667 = arith.addi %638, %666 : vector<4x1x128xi32>
    %668 = vector.broadcast %667 : vector<4x1x128xi32> to vector<4x4x128xi32>
    %669 = arith.cmpi eq, %372, %668 : vector<4x4x128xi32>
    %670 = vector.extract_strided_slice %17 {offsets = [28, 0], sizes = [4, 128], strides = [1, 1]} : vector<32x128xf32> to vector<4x128xf32>
    %671 = vector.shape_cast %670 : vector<4x128xf32> to vector<4x1x128xf32>
    %cst_91 = arith.constant 0.000000e+00 : f32
    %672 = vector.shape_cast %671 : vector<4x1x128xf32> to vector<4x1x128xf32>
    %673 = vector.broadcast %672 : vector<4x1x128xf32> to vector<4x4x128xf32>
    %674 = vector.broadcast %cst_91 : f32 to vector<4x4x128xf32>
    %675 = arith.select %669, %673, %674 : vector<4x4x128xi1>, vector<4x4x128xf32>
    %676 = arith.addf %665, %675 : vector<4x4x128xf32>
    %677 = vector.extract_strided_slice %676 {offsets = [0, 0, 0], sizes = [1, 4, 128], strides = [1, 1, 1]} : vector<4x4x128xf32> to vector<1x4x128xf32>
    %678 = vector.shape_cast %677 : vector<1x4x128xf32> to vector<4x128xf32>
    %679 = vector.shape_cast %678 : vector<4x128xf32> to vector<4x1x128xf32>
    %680 = vector.extract_strided_slice %657 {offsets = [0, 0, 0], sizes = [1, 8, 128], strides = [1, 1, 1]} : vector<4x8x128xf32> to vector<1x8x128xf32>
    %681 = vector.shape_cast %680 : vector<1x8x128xf32> to vector<8x128xf32>
    %682 = vector.shape_cast %681 : vector<8x128xf32> to vector<1x8x128xf32>
    %683 = vector.broadcast %679 : vector<4x1x128xf32> to vector<4x8x128xf32>
    %684 = vector.broadcast %682 : vector<1x8x128xf32> to vector<4x8x128xf32>
    %685 = arith.mulf %683, %684 : vector<4x8x128xf32>
    %686 = vector.extract_strided_slice %676 {offsets = [1, 0, 0], sizes = [1, 4, 128], strides = [1, 1, 1]} : vector<4x4x128xf32> to vector<1x4x128xf32>
    %687 = vector.shape_cast %686 : vector<1x4x128xf32> to vector<4x128xf32>
    %688 = vector.shape_cast %687 : vector<4x128xf32> to vector<4x1x128xf32>
    %689 = vector.extract_strided_slice %657 {offsets = [1, 0, 0], sizes = [1, 8, 128], strides = [1, 1, 1]} : vector<4x8x128xf32> to vector<1x8x128xf32>
    %690 = vector.shape_cast %689 : vector<1x8x128xf32> to vector<8x128xf32>
    %691 = vector.shape_cast %690 : vector<8x128xf32> to vector<1x8x128xf32>
    %692 = vector.broadcast %688 : vector<4x1x128xf32> to vector<4x8x128xf32>
    %693 = vector.broadcast %691 : vector<1x8x128xf32> to vector<4x8x128xf32>
    %694 = arith.mulf %692, %693 : vector<4x8x128xf32>
    %695 = arith.addf %685, %694 : vector<4x8x128xf32>
    %696 = vector.extract_strided_slice %676 {offsets = [2, 0, 0], sizes = [1, 4, 128], strides = [1, 1, 1]} : vector<4x4x128xf32> to vector<1x4x128xf32>
    %697 = vector.shape_cast %696 : vector<1x4x128xf32> to vector<4x128xf32>
    %698 = vector.shape_cast %697 : vector<4x128xf32> to vector<4x1x128xf32>
    %699 = vector.extract_strided_slice %657 {offsets = [2, 0, 0], sizes = [1, 8, 128], strides = [1, 1, 1]} : vector<4x8x128xf32> to vector<1x8x128xf32>
    %700 = vector.shape_cast %699 : vector<1x8x128xf32> to vector<8x128xf32>
    %701 = vector.shape_cast %700 : vector<8x128xf32> to vector<1x8x128xf32>
    %702 = vector.broadcast %698 : vector<4x1x128xf32> to vector<4x8x128xf32>
    %703 = vector.broadcast %701 : vector<1x8x128xf32> to vector<4x8x128xf32>
    %704 = arith.mulf %702, %703 : vector<4x8x128xf32>
    %705 = arith.addf %695, %704 : vector<4x8x128xf32>
    %706 = vector.extract_strided_slice %676 {offsets = [3, 0, 0], sizes = [1, 4, 128], strides = [1, 1, 1]} : vector<4x4x128xf32> to vector<1x4x128xf32>
    %707 = vector.shape_cast %706 : vector<1x4x128xf32> to vector<4x128xf32>
    %708 = vector.shape_cast %707 : vector<4x128xf32> to vector<4x1x128xf32>
    %709 = vector.extract_strided_slice %657 {offsets = [3, 0, 0], sizes = [1, 8, 128], strides = [1, 1, 1]} : vector<4x8x128xf32> to vector<1x8x128xf32>
    %710 = vector.shape_cast %709 : vector<1x8x128xf32> to vector<8x128xf32>
    %711 = vector.shape_cast %710 : vector<8x128xf32> to vector<1x8x128xf32>
    %712 = vector.broadcast %708 : vector<4x1x128xf32> to vector<4x8x128xf32>
    %713 = vector.broadcast %711 : vector<1x8x128xf32> to vector<4x8x128xf32>
    %714 = arith.mulf %712, %713 : vector<4x8x128xf32>
    %715 = arith.addf %705, %714 : vector<4x8x128xf32>
    %716 = vector.shape_cast %715 : vector<4x8x128xf32> to vector<32x128xf32>
    %c0_92 = arith.constant 0 : index
    %c3_93 = arith.constant 3 : index
    %c0_94 = arith.constant 0 : index
    %c0_95 = arith.constant 0 : index
    %717 = vector.load %arg6[%c0_92, %c3_93, %c0_94, %c0_95] : memref<1x4x8x32xbf16, #tpu.memory_space<vmem>>, vector<1x1x8x32xbf16>
    %718 = vector.shape_cast %717 : vector<1x1x8x32xbf16> to vector<8x32xbf16>
    %719 = arith.truncf %716 : vector<32x128xf32> to vector<32x128xbf16>
    %cst_96 = arith.constant dense<0.000000e+00> : vector<8x128xf32>
    %720 = tpu.matmul %718, %719, %cst_96 {dimension_numbers = #tpu.dot_dimension_numbers<[1], [0], [0], [1], [0, 0, 1, 1], [], []>} : vector<8x32xbf16>, vector<32x128xbf16>, vector<8x128xf32> -> vector<8x128xf32>
    %721 = arith.addf %371, %720 : vector<8x128xf32>
    %722 = tpu.concatenate %460, %547, %634, %721 in 0 : vector<8x128xf32>, vector<8x128xf32>, vector<8x128xf32>, vector<8x128xf32> -> vector<32x128xf32>
    %c0_97 = arith.constant 0 : index
    %c0_98 = arith.constant 0 : index
    %c0_99 = arith.constant 0 : index
    %723 = vector.load %arg7[%c0_97, %c0_98, %c0_99] : memref<1x32x128xf32, #tpu.memory_space<vmem>>, vector<1x32x128xf32>
    %724 = vector.shape_cast %723 : vector<1x32x128xf32> to vector<32x128xf32>
    %725 = vector.shape_cast %722 : vector<32x128xf32> to vector<1x32x128xf32>
    tpu.vector_store %arg7[%c0_97, %c0_98, %c0_99], %725 {strides = array<i32>} : memref<1x32x128xf32, #tpu.memory_space<vmem>>, vector<1x32x128xf32>,
    return
  }
  func.func @transform_0(%arg0: i32, %arg1: i32) -> (i32, i32, i32) {
    %c0_i32 = arith.constant 0 : i32
    %c0_i32_0 = arith.constant 0 : i32
    return %arg0, %c0_i32, %arg1 : i32, i32, i32
  }
  func.func @transform_1(%arg0: i32, %arg1: i32) -> (i32, i32, i32) {
    %c0_i32 = arith.constant 0 : i32
    %c0_i32_0 = arith.constant 0 : i32
    return %arg0, %c0_i32, %arg1 : i32, i32, i32
  }
  func.func @transform_2(%arg0: i32, %arg1: i32) -> (i32, i32, i32) {
    %c0_i32 = arith.constant 0 : i32
    %c0_i32_0 = arith.constant 0 : i32
    return %arg0, %c0_i32, %arg1 : i32, i32, i32
  }
  func.func @transform_3(%arg0: i32, %arg1: i32) -> (i32, i32, i32, i32) {
    %c0_i32 = arith.constant 0 : i32
    %c0_i32_0 = arith.constant 0 : i32
    %c0_i32_1 = arith.constant 0 : i32
    %c0_i32_2 = arith.constant 0 : i32
    return %arg0, %c0_i32, %c0_i32_0, %c0_i32_1 : i32, i32, i32, i32
  }
  func.func @transform_4(%arg0: i32, %arg1: i32) -> (i32, i32, i32, i32) {
    %c0_i32 = arith.constant 0 : i32
    %c0_i32_0 = arith.constant 0 : i32
    %c0_i32_1 = arith.constant 0 : i32
    %c0_i32_2 = arith.constant 0 : i32
    return %arg0, %c0_i32, %c0_i32_0, %c0_i32_1 : i32, i32, i32, i32
  }
  func.func @transform_5(%arg0: i32, %arg1: i32) -> (i32, i32, i32) {
    %c0_i32 = arith.constant 0 : i32
    %c0_i32_0 = arith.constant 0 : i32
    return %arg0, %c0_i32, %arg1 : i32, i32, i32
  }
}

</mosaic_0001>

<bundles_post_ra>
// kernel: tpu_custom_call.1
= control target key start
LH: loop header
LB: loop body
LE: loop exit
PB: predicated region body
PF: predicated region fallthrough
CT: control target
= control target key end

     0   :  { %s9798_s0 = inlined_call_operand.hbm [shape: f32[2,32,128], index: 0, kind: input, shape index: {}]   ;;  %s9799_s1 = inlined_call_operand.hbm [shape: f32[2,32,128], index: 1, kind: input, shape index: {}]   ;;  %s9800_s2 = inlined_call_operand.hbm [shape: f32[2,32,128], index: 2, kind: input, shape index: {}]   ;;  %s9801_s3 = inlined_call_operand.hbm [shape: bf16[2,4,8,64], index: 3, kind: input, shape index: {}]   ;;  %s9802_s4 = inlined_call_operand.hbm [shape: bf16[2,4,8,32], index: 4, kind: input, shape index: {}]   ;;  %s9803_s5 = inlined_call_operand.hbm [shape: f32[2,32,128], index: 5, kind: output, shape index: {}]  }
   0x1   :  { %9829 = sst [smem:[#allocation30_spill]] %s9799_s1 }
   0x2   :  { %9830 = sst [smem:[#allocation31_spill]] %s9801_s3 }
   0x3   :  { %9831 = sst [smem:[#allocation32_spill]] %s9803_s5 }
   0x4   :  { %10 = vsyncpa [#allocation3], 0 }
   0x5   :  { %12 = vsyncpa [#allocation3 + $0x1], 0 }
   0x6   :  { %13 = vsyncpa [#allocation6], 0 }
   0x7   :  { %15 = vsyncpa [#allocation6 + $0x1], 0 }
   0x8   :  { %16 = vsyncpa [#allocation9], 0 }
   0x9   :  { %18 = vsyncpa [#allocation9 + $0x1], 0 }
   0xa   :  { %19 = vsyncpa [#allocation4], 0 }
   0xb   :  { %21 = vsyncpa [#allocation4 + $0x1], 0  ;;  %s6850_s18 = smov 0   ;;  %s6852_s19 = smov 0  }
   0xc   :  { %s6854_s20 = smov 0   ;;  %s6856_s21 = smov 0  }
   0xd   :  { %s6858_s22 = smov 0   ;;  %s6860_s23 = smov 0  }
   0xe LB: > { %9832 = sst [smem:[#allocation16_spill]] %s6783_s18  ;;  %s6881_s24 = sadd.s32 4294967295, %s6803_s23   ;;  %s6803_s23 = sphi %s6860_s23, %s27_s23   ;;  %s6799_s22 = sphi %s6858_s22, %s10109_s22   ;;  %s6795_s21 = sphi %s6856_s21, %s10108_s21   ;;  %s6791_s20 = sphi %s6854_s20, %s10104_s20   ;;  %s6787_s19 = sphi %s6852_s19, %s10107_s19   ;;  %s6783_s18 = sphi %s6850_s18, %s10106_s18  }
   0xf   : > { %9833 = sst [smem:[#allocation17_spill]] %s6791_s20  ;;  %s6278_s25 = sadd.s32 4294967294, %s6803_s23  }
  0x10   : > { %9834 = sst [smem:[#allocation18_spill]] %s6803_s23  ;;  %s39_s26 = sadd.s32 1, %s6799_s22 }
  0x11   : > { %s48_s27 = sadd.s32 1, %s6791_s20  ;;  %p41_p0 = scmp.ge.s32.totalorder %s39_s26, 2 }
  0x12   : > { %p55_p1 = scmp.ne.s32.totalorder %s6791_s20, %s6787_s19  ;;  %p56_p2 = scmp.eq.s32.totalorder %s6803_s23, 0 }
  0x13   : > { %p61_p3 = scmp.ne.s32.totalorder %s6787_s19, %s6783_s18  ;;  %s10111_s26 = smov (%p41_p0, %s39_s26), 0 }
  0x14   : > { %9835 = sst [smem:[#allocation19_spill]] %s10111_s26  ;;  %p6893_p4 = por %p56_p2, %p55_p1 }
  0x15   : > { %p62_p5 = scmp.eq.s32.totalorder %s6881_s24, 0  ;;  %s43_s29 = ssub.s32 %s6799_s22, %s10111_s26 }
  0x16   : > { %p195_p6 = scmp.eq.s32.totalorder %s6881_s24, 1  ;;  %p46_p7 = scmp.eq.s32.totalorder %s43_s29, 0 }
  0x17   : > { %p6901_p8 = por %p62_p5, %p61_p3  ;;  %p201_p10 = scmp.eq.s32.totalorder %s6278_s25, 1 }
  0x18   : > { %p6905_p9 = por %p195_p6, %p55_p1  ;;  %p6504_p13 = scmp.lt.s32.totalorder %s6803_s23, 2 }
  0x19   : > { %s9837_s30 = scalar_select %p6901_p8, 1, 0 }
  0x1a   : > { %s9838_s6 = scalar_select %p6905_p9, 1, 0 }
  0x1b   : > { %s6910_s7 = scalar_select %p46_p7, %s6791_s20, %s48_s27  }
  0x1c   : > { %p6912_p11 = por %p201_p10, %p61_p3  ;;  %s6919_s9 = sand.u32 1, %s6791_s20  }
  0x1d   : > { %9839 = sst [smem:[#allocation20_spill]] %s6910_s7  ;;  %s6922_s10 = sshll.u32 %s6919_s9, 5 }
  0x1e   : > { %s9840_s8 = scalar_select %p6912_p11, 1, 0 }
  0x1f   : > { %s6925_s11 = sshll.u32 %s6799_s22, 9  ;;  %p6929_p0 = pnand %p6504_p13, %p6893_p4 }
  0x20   : > { %9841 = sst [smem:[#allocation21_spill]] %s9840_s8  ;;  %s9805_s13 = sand.u32 1, %s6803_s23  }
  0x21   : > { %s9843_s1 = sld [smem:[#allocation30_spill]]  ;;  %s247_s17 = scalar_lea.vmem [#allocation5], %s6922_s10 }
  0x22   : > { %s255_s25 = sshll.u32 %s247_s17, 4  ;;  %s6947_s27 = scalar_lea.sflag [#allocation6], %s9805_s13  ;;  %s6942_s25 = int_to_ptr.vmem [resolvable:$true] %s255_s25 }
  0x23   : > { %p6953_p4 = pneg %p6929_p0 }
  0x27   : > { %s6938_s16 = scalar_lea.hbm %s9843_s1, %s6925_s11  ;;  %s6568_s17 = scalar_lea.hbm %s9843_s1, 1024 }
  0x28   : > { %s6563_s28 = scalar_lea.hbm %s6938_s16, 512  ;;  %p6569_p7 = scmp.lt.u32.totalorder %s6938_s16, %s9843_s1 }
  0x29   : > { %p6564_p3 = scmp.ne.s32.totalorder %s6938_s16, %s6563_s28  ;;  %p6570_p10 = scmp.lt.u32.totalorder %s6568_s17, %s6563_s28 }
  0x2a   : > { %p6572_p12 = scmp.lt.u32.totalorder %s6563_s28, %s6938_s16 }
  0x2b   : > { %p6566_p5 = pnand %p6953_p4, %p6564_p3  ;;  %p6571_p13 = por %p6570_p10, %p6569_p7 }
  0x2d   : > { %p6567_p6 = pneg %p6566_p5  ;;  %p6573_p1 = por %p6572_p12, %p6571_p13 }
  0x2f   : > { %p6574_p2 = pnand %p6573_p1, %p6567_p6 }
  0x31   : > { %6577 = shalt.err (!%p6574_p2)
}
  0x32   : > { %s6578_s13 = scalar_lea.vmem %s6942_s25, 512  ;;  %s6805_s14 = smov [#allocation5]  }
  0x33   : > { %p6579_p3 = scmp.ne.s32.totalorder %s6942_s25, %s6578_s13  ;;  %s6583_s15 = sshll.u32 %s6805_s14, 4  ;;  %s6584_s15 = int_to_ptr.vmem [resolvable:$false] %s6583_s15 }
  0x34   : > { %s6585_s26 = scalar_lea.vmem %s6584_s15, 1024  ;;  %p6586_p9 = scmp.lt.s32.totalorder %s6942_s25, %s6584_s15 }
  0x35   : > { %p6581_p5 = pnand %p6579_p3, %p6953_p4  ;;  %p6587_p8 = scmp.lt.s32.totalorder %s6585_s26, %s6578_s13 }
  0x37   : > { %p6582_p11 = pneg %p6581_p5  ;;  %p6588_p7 = por %p6587_p8, %p6586_p9 }
  0x39   : > { %p6589_p10 = pnand %p6588_p7, %p6582_p11 }
  0x3b   : > { %6592 = shalt.err (!%p6589_p10)
}
  0x3c   : > { %s9808_s7 = smov 128   ;;  %s9810_s28 = smov 8  }
  0x3d   : > { %6490 = dma.hbm_to_vmem [thread:$0]  (!%p6929_p0), %s6938_s16, 512, %s6942_s25, %s6947_s27, %s9808_s7, %s9808_s7, %s9810_s28  }
  0x3e   : > { %p9845_p8 = scmp.lt.s32.totalorder %s6803_s23, 3  ;;  %p9846_p9 = scmp.ge.s32.totalorder %s6803_s23, 1 }
  0x3f   : > { %s6290_s17 = sshll.u32 %s6919_s9, 4  ;;  %s9813_s14 = sshll.u32 %s6799_s22, 8 }
  0x40   : > { %p6984_p11 = pnand %p9846_p9, %p9845_p8  ;;  %s9848_s3 = sld [smem:[#allocation31_spill]] }
  0x41   : > { %s291_s16 = scalar_lea.vmem [#allocation8], %s6290_s17  ;;  %s9849_s7 = sand.u32 1, %s6803_s23  }
  0x42   : > { %s9847_s13 = scalar_select %p6984_p11, 1, 0 }
  0x43   : > { %s298_s25 = sshll.u32 %s291_s16, 4  ;;  %s7003_s28 = scalar_lea.sflag [#allocation9], %s9849_s7  ;;  %s6999_s25 = int_to_ptr.vmem [resolvable:$true] %s298_s25 }
  0x46   : > { %s6995_s1 = scalar_lea.hbm %s9848_s3, %s9813_s14  ;;  %s6598_s14 = scalar_lea.hbm %s9848_s3, 512 }
  0x47   : > { %s6593_s20 = scalar_lea.hbm %s6995_s1, 256  ;;  %p6599_p6 = scmp.lt.u32.totalorder %s6995_s1, %s9848_s3 }
  0x48   : > { %p6594_p12 = scmp.ne.s32.totalorder %s6995_s1, %s6593_s20  ;;  %p6600_p13 = scmp.lt.u32.totalorder %s6598_s14, %s6593_s20 }
  0x49   : > { %p6602_p5 = scmp.lt.u32.totalorder %s6593_s20, %s6995_s1 }
  0x4a   : > { %p6596_p1 = pnand %p6594_p12, %p6953_p4  ;;  %p6601_p3 = por %p6600_p13, %p6599_p6 }
  0x4c   : > { %p6597_p2 = pneg %p6596_p1  ;;  %p6603_p7 = por %p6602_p5, %p6601_p3 }
  0x4e   : > { %p6604_p10 = pnand %p6603_p7, %p6597_p2 }
  0x50   : > { %6607 = shalt.err (!%p6604_p10)
}
  0x51   : > { %s6608_s7 = scalar_lea.vmem %s6999_s25, 256  ;;  %s6808_s16 = smov [#allocation8]  }
  0x52   : > { %p6609_p8 = scmp.ne.s32.totalorder %s6999_s25, %s6608_s7  ;;  %s6613_s15 = sshll.u32 %s6808_s16, 4  ;;  %s6614_s15 = int_to_ptr.vmem [resolvable:$false] %s6613_s15 }
  0x53   : > { %s6615_s18 = scalar_lea.vmem %s6614_s15, 512  ;;  %p6616_p1 = scmp.lt.s32.totalorder %s6999_s25, %s6614_s15 }
  0x54   : > { %p6611_p9 = pnand %p6609_p8, %p6953_p4  ;;  %p6617_p11 = scmp.lt.s32.totalorder %s6615_s18, %s6608_s7 }
  0x56   : > { %p6612_p12 = pneg %p6611_p9  ;;  %p6618_p6 = por %p6617_p11, %p6616_p1 }
  0x58   : > { %p6619_p13 = pnand %p6618_p6, %p6612_p12 }
  0x5a   : > { %6622 = shalt.err (!%p6619_p13)
}
  0x5b   : > { %s9819_s20 = smov 64   ;;  %s6810_s8 = smov 4  }
  0x5c   : > { %6496 = dma.hbm_to_vmem [thread:$0]  (!%p6929_p0), %s6995_s1, 256, %s6999_s25, %s7003_s28, %s9819_s20, %s9819_s20, %s6810_s8  }
  0x5d   : > { %s9850_s14 = sshll.u32 %s6799_s22, 8  ;;  %s312_s15 = scalar_lea.vmem [#allocation10], %s6290_s17 }
  0x5e   : > { %s7035_s16 = scalar_lea.hbm %s9802_s4, %s9850_s14  ;;  %s319_s18 = sshll.u32 %s312_s15, 4  ;;  %s7039_s18 = int_to_ptr.vmem [resolvable:$true] %s319_s18 }
  0x5f   : > { %s7045_s5 = scalar_lea.hbm %s9798_s0, %s6925_s11  ;;  %s225_s1 = scalar_lea.vmem [#allocation2], %s6922_s10 }
  0x60   : > { %s233_s25 = sshll.u32 %s225_s1, 4  ;;  %s222_s14 = scalar_lea.sflag [#allocation3], %s6919_s9  ;;  %s7048_s25 = int_to_ptr.vmem [resolvable:$true] %s233_s25 }
  0x61   : > { %s6623_s26 = scalar_lea.hbm %s7045_s5, 512  ;;  %s6628_s3 = scalar_lea.hbm %s9798_s0, 1024 }
  0x62   : > { %p6624_p11 = scmp.ne.s32.totalorder %s7045_s5, %s6623_s26  ;;  %p6629_p5 = scmp.lt.u32.totalorder %s7045_s5, %s9798_s0 }
  0x63   : > { %p6630_p7 = scmp.lt.u32.totalorder %s6628_s3, %s6623_s26  ;;  %p6632_p8 = scmp.lt.u32.totalorder %s6623_s26, %s7045_s5 }
  0x64   : > { %p6626_p2 = pnand %p6624_p11, %p6953_p4 }
  0x65   : > { %p6631_p10 = por %p6630_p7, %p6629_p5 }
  0x66   : > { %p6627_p3 = pneg %p6626_p2 }
  0x67   : > { %p6633_p9 = por %p6632_p8, %p6631_p10 }
  0x69   : > { %p6634_p12 = pnand %p6633_p9, %p6627_p3 }
  0x6b   : > { %6637 = shalt.err (!%p6634_p12)
}
  0x6c   : > { %s6638_s1 = scalar_lea.vmem %s7048_s25, 512  ;;  %s6811_s17 = smov [#allocation2]  }
  0x6d   : > { %p6639_p1 = scmp.ne.s32.totalorder %s7048_s25, %s6638_s1  ;;  %s6643_s7 = sshll.u32 %s6811_s17, 4  ;;  %s6644_s7 = int_to_ptr.vmem [resolvable:$false] %s6643_s7 }
  0x6e   : > { %s6645_s23 = scalar_lea.vmem %s6644_s7, 1024  ;;  %p6646_p11 = scmp.lt.s32.totalorder %s7048_s25, %s6644_s7 }
  0x6f   : > { %p6641_p6 = pnand %p6639_p1, %p6953_p4  ;;  %p6647_p2 = scmp.lt.s32.totalorder %s6645_s23, %s6638_s1 }
  0x71   : > { %p6642_p13 = pneg %p6641_p6  ;;  %p6648_p5 = por %p6647_p2, %p6646_p11 }
  0x73   : > { %p6649_p7 = pnand %p6648_p5, %p6642_p13 }
  0x75   : > { %6652 = shalt.err (!%p6649_p7)
}
  0x76   : > { %s9851_s26 = smov 8   ;;  %s9852_s3 = smov 128  }
  0x77   : > { %6487 = dma.hbm_to_vmem [thread:$0]  (!%p6929_p0), %s7045_s5, 512, %s7048_s25, %s222_s14, %s9852_s3, %s9852_s3, %s9851_s26  }
  0x78   : > { %s7081_s1 = scalar_lea.hbm %s9800_s2, %s6925_s11  ;;  %s269_s7 = scalar_lea.vmem [#allocation7], %s6922_s10 }
  0x79   : > { %s277_s23 = sshll.u32 %s269_s7, 4  ;;  %s6653_s9 = scalar_lea.hbm %s7081_s1, 512  ;;  %s7084_s23 = int_to_ptr.vmem [resolvable:$true] %s277_s23 }
  0x7a   : > { %p6654_p3 = scmp.ne.s32.totalorder %s7081_s1, %s6653_s9  ;;  %s6658_s25 = scalar_lea.hbm %s9800_s2, 1024 }
  0x7b   : > { %p6659_p9 = scmp.lt.u32.totalorder %s7081_s1, %s9800_s2  ;;  %p6660_p12 = scmp.lt.u32.totalorder %s6658_s25, %s6653_s9 }
  0x7c   : > { %p6656_p10 = pnand %p6654_p3, %p6953_p4  ;;  %p6662_p6 = scmp.lt.u32.totalorder %s6653_s9, %s7081_s1 }
  0x7d   : > { %p6661_p1 = por %p6660_p12, %p6659_p9 }
  0x7e   : > { %p6657_p8 = pneg %p6656_p10 }
  0x7f   : > { %p6663_p13 = por %p6662_p6, %p6661_p1 }
  0x81   : > { %p6664_p11 = pnand %p6663_p13, %p6657_p8 }
  0x83   : > { %6667 = shalt.err (!%p6664_p11)
}
  0x84   : > { %s6668_s10 = scalar_lea.vmem %s7084_s23, 512  ;;  %s6812_s20 = smov [#allocation7]  }
  0x85   : > { %p6669_p2 = scmp.ne.s32.totalorder %s7084_s23, %s6668_s10  ;;  %s6673_s15 = sshll.u32 %s6812_s20, 4  ;;  %s6674_s15 = int_to_ptr.vmem [resolvable:$false] %s6673_s15 }
  0x86   : > { %s6675_s17 = scalar_lea.vmem %s6674_s15, 1024  ;;  %p6676_p3 = scmp.lt.s32.totalorder %s7084_s23, %s6674_s15 }
  0x87   : > { %p6671_p5 = pnand %p6669_p2, %p6953_p4  ;;  %p6677_p10 = scmp.lt.s32.totalorder %s6675_s17, %s6668_s10 }
  0x89   : > { %p6672_p7 = pneg %p6671_p5  ;;  %p6678_p9 = por %p6677_p10, %p6676_p3 }
  0x8b   : > { %p6679_p12 = pnand %p6678_p9, %p6672_p7 }
  0x8d   : > { %6682 = shalt.err (!%p6679_p12)
}
  0x8e   : > { %6493 = dma.hbm_to_vmem [thread:$0]  (!%p6929_p0), %s7081_s1, 512, %s7084_s23, %s6947_s27, %s9852_s3, %s9852_s3, %s9851_s26  }
  0x8f   : > { %s6683_s7 = scalar_lea.hbm %s7035_s16, 256  ;;  %s6688_s25 = scalar_lea.hbm %s9802_s4, 512 }
  0x90   : > { %p6684_p8 = scmp.ne.s32.totalorder %s7035_s16, %s6683_s7  ;;  %p6689_p13 = scmp.lt.u32.totalorder %s7035_s16, %s9802_s4 }
  0x91   : > { %p6690_p11 = scmp.lt.u32.totalorder %s6688_s25, %s6683_s7  ;;  %p6692_p5 = scmp.lt.u32.totalorder %s6683_s7, %s7035_s16 }
  0x92   : > { %p6686_p1 = pnand %p6684_p8, %p6953_p4 }
  0x93   : > { %p6691_p2 = por %p6690_p11, %p6689_p13 }
  0x94   : > { %p6687_p6 = pneg %p6686_p1 }
  0x95   : > { %p6693_p7 = por %p6692_p5, %p6691_p2 }
  0x97   : > { %p6694_p3 = pnand %p6693_p7, %p6687_p6 }
  0x99   : > { %6697 = shalt.err (!%p6694_p3)
}
  0x9a   : > { %s6698_s27 = scalar_lea.vmem %s7039_s18, 256  ;;  %s6813_s26 = smov [#allocation10]  }
  0x9b   : > { %p6699_p10 = scmp.ne.s32.totalorder %s7039_s18, %s6698_s27  ;;  %s6703_s3 = sshll.u32 %s6813_s26, 4  ;;  %s6704_s3 = int_to_ptr.vmem [resolvable:$false] %s6703_s3 }
  0x9c   : > { %s6705_s1 = scalar_lea.vmem %s6704_s3, 512  ;;  %p6706_p8 = scmp.lt.s32.totalorder %s7039_s18, %s6704_s3 }
  0x9d   : > { %p6701_p9 = pnand %p6699_p10, %p6953_p4  ;;  %p6707_p1 = scmp.lt.s32.totalorder %s6705_s1, %s6698_s27 }
  0x9f   : > { %p6702_p12 = pneg %p6701_p9  ;;  %p6708_p13 = por %p6707_p1, %p6706_p8 }
  0xa1   : > { %p6709_p11 = pnand %p6708_p13, %p6702_p12 }
  0xa3   : > { %6712 = shalt.err (!%p6709_p11)
}
  0xa4   : > { %s9853_s23 = smov 64   ;;  %p9854_p4 = scmp.ne.s32.totalorder %s9847_s13, 0 }
  0xa5   : > { %6499 = dma.hbm_to_vmem [thread:$0]  (!%p6929_p0), %s7035_s16, 256, %s7039_s18, %s7003_s28, %s9853_s23, %s9853_s23, %s6810_s8  }
  0xa6   : > { %331 = sbr.rel (%p9854_p4) target bundleno = 889 (0x379), region = 40 }
  0xad   : > { %s7139_s29 = sand.u32 1, %s6787_s19   ;;  %p9855_p6 = scmp.ne.s32.totalorder %s9837_s30, 0 }
  0xae   : > { %s7142_s10 = sshll.u32 %s7139_s29, 5  ;;  %s334_s12 = scalar_lea.sflag [#allocation3], %s7139_s29 }
  0xaf   : > { %s7146_s20 = scalar_lea.vmem [#allocation2], %s7142_s10 }
  0xb0   : > { %6766 = dma.done.wait (%p9855_p6), %s334_s12, 512  }
  0xb1   : > { %6768 = vsyncadd (%p9855_p6), %s334_s12, 4294966784  ;;  %s342_s28 = sand.u32 1, %s6881_s24   ;;  %s7154_s8 = scalar_lea.vmem [#allocation5], %s7142_s10 }
  0xb2   : > { %s343_s13 = scalar_lea.sflag [#allocation6], %s342_s28 }
  0xb3   : > { %6770 = dma.done.wait (%p9855_p6), %s343_s13, 1024  }
  0xb4   : > { %6772 = vsyncadd (%p9855_p6), %s343_s13, 4294966272  ;;  %s6300_s16 = sshll.u32 %s7139_s29, 4  ;;  %s7162_s18 = scalar_lea.vmem [#allocation7], %s7142_s10 }
  0xb5   : > { %s361_s15 = scalar_lea.sflag [#allocation9], %s342_s28  ;;  %s7166_s17 = scalar_lea.vmem [#allocation8], %s6300_s16 }
  0xb6   : > { %6774 = dma.done.wait (%p9855_p6), %s361_s15, 512  }
  0xb7   : > { %6776 = vsyncadd (%p9855_p6), %s361_s15, 4294966784  ;;  %v9820_v0 = vmov 0.0   ;;  %v473_v1 = vlaneseq  ;;  %v6815_v2 = vmov 1966171168   ;;  %v421_v4 = vld [vmem:[%s7146_s20] sm:$0xff]  ;;  %v422_v10 = vld [vmem:[%s7146_s20 + $0x8] sm:$0xff] }
  0xb8   : > { %6360 = vmatprep.subr.bf16.mxu0 %v9820_v0  ;;  %6380 = vmatprep.subr.bf16.mxu1 %v9820_v0  ;;  %v476_v3 = vunpack.c.l.s4 %v6815_v2  ;;  %v425_v5 = vld [vmem:[%s7154_s8] sm:$0xff]  ;;  %v433_v8 = vfloor.f32 %v421_v4  ;;  %v426_v11 = vld [vmem:[%s7154_s8 + $0x8] sm:$0xff]  ;;  %v434_v12 = vfloor.f32 %v422_v10  ;;  %s7926_s24 = scalar_lea.vmem [#allocation10], %s6300_s16  ;;  %s9657_s30 = scalar_lea.vmem [#allocation11], %s7142_s10 }
  0xb9   : > { %v7176_v6 = vshrl.u32 %v473_v1, 7  ;;  %v437_v9 = vfloor.f32 %v425_v5  ;;  %v438_v13 = vfloor.f32 %v426_v11  ;;  %v7181_v14 = vld [vmem:[%s7162_s18] sm:$0xff]  ;;  %s6102_s7 = sshll.u32 %s9657_s30, 4  ;;  %s6327_s9 = sshll.u32 %s6795_s21, 9  ;;  %s9743_s7 = int_to_ptr.vmem [resolvable:$true] %s6102_s7 }
  0xba   : > { %v477_v7 = vunpack.c.0.s8 %v476_v3  ;;  %v7183_v15 = vsub.f32 %v421_v4, %v433_v8  ;;  %v6456_v17 = vtrunc.f32 %v433_v8  ;;  %v7193_v21 = vsub.f32 %v422_v10, %v434_v12  ;;  %s10096_s14 = sld [smem:[#allocation32_spill]]  ;;  %s6088_s27 = scalar_lea.sflag [#allocation4], %s7139_s29 }
  0xbb   : > { %v7185_v16 = vsub.f32 %v425_v5, %v437_v9  ;;  %v6464_v18 = vtrunc.f32 %v437_v9  ;;  %v7191_v20 = vsub.s32 0, %v7176_v6  ;;  %v7195_v22 = vsub.f32 %v426_v11, %v438_v13  ;;  %s6713_s26 = scalar_lea.vmem %s9743_s7, 512  ;;  %p10097_p2 = scmp.ne.s32.totalorder %s9838_s6, 0 }
  0xbc   : > { %v7188_v19 = vsub.s32 %v477_v7, %v7176_v6  ;;  %v6457_v23 = vcvt.f32.s32 %v6456_v17  ;;  %v7200_v25 = vsub.f32 1.0, %v7183_v15  ;;  %v7202_v26 = vtrunc.f32 %v434_v12  ;;  %p6714_p0 = scmp.ne.s32.totalorder %s9743_s7, %s6713_s26  ;;  %s6817_s21 = smov [#allocation11]  }
  0xbd   : > { %v7197_v24 = vcvt.f32.s32 %v6464_v18  ;;  %v461_v27 = vsub.f32 1.0, %v7185_v16  ;;  %v7207_v28 = vmul.f32 %v7185_v16, %v7181_v14  ;;  %v7211_v30 = vtrunc.f32 %v438_v13  ;;  %s6717_s3 = sshll.u32 %s6817_s21, 4  ;;  %s6718_s3 = int_to_ptr.vmem [resolvable:$false] %s6717_s3 }
  0xbe   : > { %v623_v29 = vrot.slane %v7183_v15, %v7188_v19  ;;  %v481_v31 = vrot.slane %v6457_v23, %v7188_v19  ;;  %v550_v32 = vrot.slane %v7200_v25, %v7188_v19  ;;  %v3522_v33 = vcombine.high %v6457_v23, %v6457_v23  ;;  %p6715_p5 = pnand %p6714_p0, %p10097_p2  ;;  %s6719_s1 = scalar_lea.vmem %s6718_s3, 1024 }
  0xbf   : > { %v3665_v34 = vcombine.high %v7183_v15, %v7183_v15  ;;  %v3547_v37 = vcombine.high %v7197_v24, %v7197_v24  ;;  %v3592_v38 = vcombine.high %v7200_v25, %v7200_v25  ;;  %p6720_p3 = scmp.lt.s32.totalorder %s9743_s7, %s6718_s3  ;;  %p6721_p10 = scmp.lt.s32.totalorder %s6719_s1, %s6713_s26 }
  0xc0   : > { %v624_v35 = vcombine.high %v623_v29, %v623_v29  ;;  %v631_v36 = vrot.slane %v623_v29, %v7188_v19  ;;  %v482_v39 = vcombine.high %v481_v31, %v481_v31  ;;  %v489_v40 = vrot.slane %v481_v31, %v7188_v19  ;;  %s9748_s11 = scalar_lea.hbm %s10096_s14, %s6327_s9  ;;  %p6716_p7 = pneg %p6715_p5 }
  0xc1   : > { %v551_v41 = vcombine.high %v550_v32, %v550_v32  ;;  %v558_v42 = vrot.slane %v550_v32, %v7188_v19  ;;  %v3529_v46 = vrot.slane %v3522_v33, %v7188_v19  ;;  %p6722_p9 = por %p6721_p10, %p6720_p3 }
  0xc2   : > { %v638_v43 = vrot.slane %v624_v35, %v7188_v19  ;;  %v639_v44 = vcombine.high %v631_v36, %v631_v36  ;;  %v644_v45 = vrot.slane %v631_v36, %v7191_v20  ;;  %v496_v47 = vrot.slane %v482_v39, %v7188_v19 }
  0xc3   : > { %v497_v48 = vcombine.high %v489_v40, %v489_v40  ;;  %v526_v49 = vrot.slane %v489_v40, %v7191_v20  ;;  %v565_v50 = vrot.slane %v551_v41, %v7188_v19  ;;  %v566_v51 = vcombine.high %v558_v42, %v558_v42  ;;  %p6723_p12 = pnand %p6722_p9, %p6716_p7 }
  0xc4   : > { %v571_v52 = vrot.slane %v558_v42, %v7191_v20  ;;  %v592_v53 = vadd.s32 1, %v489_v40  ;;  %v640_v54 = vcombine.high %v638_v43, %v638_v43  ;;  %v498_v55 = vcombine.high %v496_v47, %v496_v47 }
  0xc5   : > { %v530_v56 = vrot.slane %v496_v47, %v7191_v20  ;;  %v534_v57 = vrot.slane %v497_v48, %v7191_v20  ;;  %vm539_vm0 = vcmp.eq.s32.totalorder %v7176_v6, %v526_v49  ;;  %v567_v58 = vcombine.high %v565_v50, %v565_v50 }
  0xc6   : > { %v575_v59 = vrot.slane %v565_v50, %v7191_v20  ;;  %v579_v60 = vrot.slane %v566_v51, %v7191_v20  ;;  %v588_v61 = vsel %vm539_vm0, %v571_v52, 0.0  ;;  %v538_v62 = vrot.slane %v498_v55, %v7191_v20 }
  0xc7   : > { %vm540_vm1 = vcmp.eq.s32.totalorder %v7176_v6, %v530_v56  ;;  %vm7240_vm2 = vcmp.eq.s32.totalorder %v7176_v6, %v534_v57  ;;  %v593_v1 = vadd.s32 1, %v496_v47  ;;  %v583_v2 = vrot.slane %v567_v58, %v7191_v20 }
  0xc8   : > { %v589_v3 = vsel %vm540_vm1, %v575_v59, 0.0  ;;  %v590_v4 = vsel %vm7240_vm2, %v579_v60, 0.0  ;;  %v594_v5 = vadd.s32 1, %v497_v48  ;;  %vm7248_vm3 = vcmp.eq.s32.totalorder %v7176_v6, %v538_v62 }
  0xc9   : > { %v595_v8 = vadd.s32 1, %v498_v55  ;;  %v599_v9 = vrot.slane %v592_v53, %v7191_v20  ;;  %v603_v10 = vrot.slane %v593_v1, %v7191_v20  ;;  %v591_v11 = vsel %vm7248_vm3, %v583_v2, 0.0 }
  0xca   : > { %v607_v12 = vrot.slane %v594_v5, %v7191_v20  ;;  %v648_v13 = vrot.slane %v638_v43, %v7191_v20  ;;  %v652_v17 = vrot.slane %v639_v44, %v7191_v20  ;;  %v656_v23 = vrot.slane %v640_v54, %v7191_v20 }
  0xcb   : > { %v611_v18 = vrot.slane %v595_v8, %v7191_v20  ;;  %vm612_vm4 = vcmp.eq.s32.totalorder %v7176_v6, %v599_v9  ;;  %vm613_vm5 = vcmp.eq.s32.totalorder %v7176_v6, %v603_v10  ;;  %v3530_v31 = vcombine.high %v3529_v46, %v3529_v46 }
  0xcc   : > { %vm614_vm6 = vcmp.eq.s32.totalorder %v7176_v6, %v607_v12  ;;  %v661_v25 = vsel %vm612_vm4, %v644_v45, 0.0  ;;  %v662_v29 = vsel %vm613_vm5, %v648_v13, 0.0  ;;  %v3537_v40 = vrot.slane %v3529_v46, %v7188_v19 }
  0xcd   : > { %vm615_vm7 = vcmp.eq.s32.totalorder %v7176_v6, %v611_v18  ;;  %v663_v32 = vsel %vm614_vm6, %v652_v17, 0.0  ;;  %v7265_v33 = vadd.f32 %v661_v25, %v588_v61  ;;  %v7267_v35 = vadd.f32 %v662_v29, %v589_v3 }
  0xce   : > { %v664_v36 = vsel %vm615_vm7, %v656_v23, 0.0  ;;  %v7269_v39 = vadd.f32 %v663_v32, %v590_v4  ;;  %v3544_v41 = vrot.slane %v3530_v31, %v7188_v19  ;;  %v3554_v43 = vrot.slane %v3547_v37, %v7188_v19 }
  0xcf   : > { %v7273_v42 = vadd.f32 %v664_v36, %v591_v11  ;;  %v3599_v44 = vrot.slane %v3592_v38, %v7188_v19  ;;  %v7278_v45 = vcvt.f32.s32 %v7202_v26  ;;  %v3545_v47 = vcombine.high %v3537_v40, %v3537_v40 }
  0xd0   : > { %v3546_v48 = vcombine.high %v3544_v41, %v3544_v41  ;;  %v3575_v49 = vrot.slane %v3537_v40, %v7191_v20  ;;  %v3579_v50 = vrot.slane %v3544_v41, %v7191_v20  ;;  %v3555_v51 = vcombine.high %v3554_v43, %v3554_v43 }
  0xd1   : > { %v3562_v46 = vrot.slane %v3554_v43, %v7188_v19  ;;  %v3600_v52 = vcombine.high %v3599_v44, %v3599_v44  ;;  %v3607_v53 = vrot.slane %v3599_v44, %v7188_v19  ;;  %v7287_v37 = vmul.f32 %v461_v27, %v7181_v14 }
  0xd2   : > { %v3583_v26 = vrot.slane %v3545_v47, %v7191_v20  ;;  %v3587_v38 = vrot.slane %v3546_v48, %v7191_v20  ;;  %v3672_v54 = vrot.slane %v3665_v34, %v7188_v19  ;;  %vm7296_vm8 = vcmp.eq.s32.totalorder %v7176_v6, %v3575_v49 }
  0xd3   : > { %vm7301_vm9 = vcmp.eq.s32.totalorder %v7176_v6, %v3579_v50  ;;  %v3614_v14 = vrot.slane %v3600_v52, %v7188_v19  ;;  %v3615_v16 = vcombine.high %v3607_v53, %v3607_v53  ;;  %v3569_v27 = vrot.slane %v3555_v51, %v7188_v19 }
  0xd4   : > { %v3570_v57 = vcombine.high %v3562_v46, %v3562_v46  ;;  %v3620_v58 = vrot.slane %v3607_v53, %v7191_v20  ;;  %v3641_v15 = vadd.s32 1, %v3537_v40  ;;  %vm7309_vm10 = vcmp.eq.s32.totalorder %v7176_v6, %v3583_v26 }
  0xd5   : > { %v3616_v59 = vcombine.high %v3614_v14, %v3614_v14  ;;  %v3624_v60 = vrot.slane %v3614_v14, %v7191_v20  ;;  %v3628_v61 = vrot.slane %v3615_v16, %v7191_v20  ;;  %vm7316_vm11 = vcmp.eq.s32.totalorder %v7176_v6, %v3587_v38 }
  0xd6   : > { %v3642_v63 = vadd.s32 1, %v3544_v41  ;;  %v3643_v1 = vadd.s32 1, %v3545_v47  ;;  %v3644_v2 = vadd.s32 1, %v3546_v48  ;;  %v3571_v3 = vcombine.high %v3569_v27, %v3569_v27 }
  0xd7   : > { %v3632_v4 = vrot.slane %v3616_v59, %v7191_v20  ;;  %v3637_v5 = vsel %vm7296_vm8, %v3620_v58, 0.0  ;;  %v3648_v7 = vrot.slane %v3641_v15, %v7191_v20  ;;  %v3638_v8 = vsel %vm7301_vm9, %v3624_v60, 0.0 }
  0xd8   : > { %v3652_v9 = vrot.slane %v3642_v63, %v7191_v20  ;;  %v3656_v10 = vrot.slane %v3643_v1, %v7191_v20  ;;  %v3673_v11 = vcombine.high %v3672_v54, %v3672_v54  ;;  %v3639_v12 = vsel %vm7309_vm10, %v3628_v61, 0.0 }
  0xd9   : > { %v3660_v13 = vrot.slane %v3644_v2, %v7191_v20  ;;  %v3680_v17 = vrot.slane %v3672_v54, %v7188_v19  ;;  %v3721_v18 = vrot.slane %v3562_v46, %v7191_v20  ;;  %v3640_v23 = vsel %vm7316_vm11, %v3632_v4, 0.0 }
  0xda   : > { %vm3661_vm12 = vcmp.eq.s32.totalorder %v7176_v6, %v3648_v7  ;;  %vm3662_vm13 = vcmp.eq.s32.totalorder %v7176_v6, %v3652_v9  ;;  %v3687_v25 = vrot.slane %v3673_v11, %v7188_v19  ;;  %v3725_v32 = vrot.slane %v3569_v27, %v7191_v20 }
  0xdb   : > { %v3688_v29 = vcombine.high %v3680_v17, %v3680_v17  ;;  %v3693_v31 = vrot.slane %v3680_v17, %v7191_v20  ;;  %v3729_v36 = vrot.slane %v3570_v57, %v7191_v20  ;;  %vm7342_vm14 = vcmp.eq.s32.totalorder %v7176_v6, %v3656_v10  ;;  %v430_v10 = vld [vmem:[%s7162_s18 + $0x8] sm:$0xff] }
  0xdc   : > { %v3689_v41 = vcombine.high %v3687_v25, %v3687_v25  ;;  %v3697_v43 = vrot.slane %v3687_v25, %v7191_v20  ;;  %v3733_v44 = vrot.slane %v3571_v3, %v7191_v20  ;;  %vm7349_vm15 = vcmp.eq.s32.totalorder %v7176_v6, %v3660_v13 }
  0xdd   : > { %v3701_v48 = vrot.slane %v3688_v29, %v7191_v20  ;;  %v3710_v49 = vsel %vm3661_vm12, %v3693_v31, 0.0  ;;  %vm7355_vm0 = vcmp.eq.s32.totalorder %v7176_v6, %v3721_v18  ;;  %vm7361_vm1 = vcmp.eq.s32.totalorder %v7176_v6, %v3725_v32 }
  0xde   : > { %v3705_v51 = vrot.slane %v3689_v41, %v7191_v20  ;;  %v3711_v52 = vsel %vm3662_vm13, %v3697_v43, 0.0  ;;  %vm7366_vm2 = vcmp.eq.s32.totalorder %v7176_v6, %v3729_v36  ;;  %v7372_v54 = vadd.f32 %v3710_v49, %v3637_v5 }
  0xdf   : > { %v3712_v38 = vsel %vm7342_vm14, %v3701_v48, 0.0  ;;  %v3738_v55 = vcombine.high %v7287_v37, %v7287_v37  ;;  %v3787_v56 = vadd.s32 1, %v3562_v46  ;;  %v7378_v16 = vadd.f32 %v3711_v52, %v3638_v8 }
  0xe0   : > { %v3713_v14 = vsel %vm7349_vm15, %v3705_v51, 0.0  ;;  %vm7381_vm3 = vcmp.eq.s32.totalorder %v7176_v6, %v3733_v44  ;;  %v3788_v15 = vadd.s32 1, %v3569_v27  ;;  %v3789_v34 = vadd.s32 1, %v3570_v57 }
  0xe1   : > { %v7385_v59 = vadd.f32 %v3712_v38, %v3639_v12  ;;  %v3745_v60 = vrot.slane %v3738_v55, %v7188_v19  ;;  %v3790_v61 = vadd.s32 1, %v3571_v3  ;;  %v3794_v46 = vrot.slane %v3787_v56, %v7191_v20 }
  0xe2   : > { %v7389_v62 = vadd.f32 %v3713_v14, %v3640_v23  ;;  %v3798_v63 = vrot.slane %v3788_v15, %v7191_v20  ;;  %v3802_v1 = vrot.slane %v3789_v34, %v7191_v20  ;;  %v3811_v2 = vcombine.high %v7207_v28, %v7207_v28 }
  0xe3   : > { %v3746_v4 = vcombine.high %v3745_v60, %v3745_v60  ;;  %v3753_v27 = vrot.slane %v3745_v60, %v7188_v19  ;;  %v3806_v57 = vrot.slane %v3790_v61, %v7191_v20  ;;  %v7398_v5 = vcvt.f32.s32 %v7211_v30 }
  0xe4   : > { %vm7401_vm4 = vcmp.eq.s32.totalorder %v7176_v6, %v3794_v46  ;;  %vm7406_vm5 = vcmp.eq.s32.totalorder %v7176_v6, %v3798_v63  ;;  %vm7411_vm6 = vcmp.eq.s32.totalorder %v7176_v6, %v3802_v1  ;;  %v3818_v9 = vrot.slane %v3811_v2, %v7188_v19 }
  0xe5   : > { %v3760_v30 = vrot.slane %v3746_v4, %v7188_v19  ;;  %v3761_v11 = vcombine.high %v3753_v27, %v3753_v27  ;;  %v3766_v12 = vrot.slane %v3753_v27, %v7191_v20  ;;  %v7420_v13 = vsub.f32 1.0, %v7193_v21 }
  0xe6   : > { %vm7423_vm7 = vcmp.eq.s32.totalorder %v7176_v6, %v3806_v57  ;;  %v3819_v18 = vcombine.high %v3818_v9, %v3818_v9  ;;  %v3826_v23 = vrot.slane %v3818_v9, %v7188_v19  ;;  %v462_v25 = vsub.f32 1.0, %v7195_v22 }
  0xe7   : > { %v3762_v29 = vcombine.high %v3760_v30, %v3760_v30  ;;  %v3770_v31 = vrot.slane %v3760_v30, %v7191_v20  ;;  %v3774_v32 = vrot.slane %v3761_v11, %v7191_v20  ;;  %v7432_v36 = vmul.f32 %v7195_v22, %v430_v10 }
  0xe8   : > { %v3783_v40 = vsel %vm7355_vm0, %v3766_v12, 0.0  ;;  %v3833_v41 = vrot.slane %v3819_v18, %v7188_v19  ;;  %v3834_v43 = vcombine.high %v3826_v23, %v3826_v23  ;;  %v3839_v44 = vrot.slane %v3826_v23, %v7191_v20 }
  0xe9   : > { %v3778_v47 = vrot.slane %v3762_v29, %v7191_v20  ;;  %v3784_v48 = vsel %vm7361_vm1, %v3770_v31, 0.0  ;;  %v3785_v49 = vsel %vm7366_vm2, %v3774_v32, 0.0  ;;  %v1242_v22 = vrot.slane %v7278_v45, %v7188_v19 }
  0xea   : > { %v3835_v51 = vcombine.high %v3833_v41, %v3833_v41  ;;  %v3843_v50 = vrot.slane %v3833_v41, %v7191_v20  ;;  %v3847_v52 = vrot.slane %v3834_v43, %v7191_v20  ;;  %v3856_v38 = vsel %vm7401_vm4, %v3839_v44, 0.0 }
  0xeb   : > { %v3786_v55 = vsel %vm7381_vm3, %v3778_v47, 0.0  ;;  %v3860_v56 = vadd.f32 %v3856_v38, %v3783_v40  ;;  %v1243_v53 = vcombine.high %v1242_v22, %v1242_v22  ;;  %v7452_v14 = vrot.slane %v1242_v22, %v7188_v19 }
  0xec   : > { %v3851_v26 = vrot.slane %v3835_v51, %v7191_v20  ;;  %v3857_v15 = vsel %vm7406_vm5, %v3843_v50, 0.0  ;;  %v3858_v34 = vsel %vm7411_vm6, %v3847_v52, 0.0  ;;  %v7461_v60 = vrot.slane %v7420_v13, %v7188_v19 }
  0xed   : > { %v3861_v61 = vadd.f32 %v3857_v15, %v3784_v48  ;;  %v3862_v58 = vadd.f32 %v3858_v34, %v3785_v49  ;;  %v3871_v46 = vrot.slane %v3860_v56, %v7188_v19  ;;  %v7464_v63 = vmul.f32 %v462_v25, %v430_v10 }
  0xee   : > { %v3859_v1 = vsel %vm7423_vm7, %v3851_v26, 0.0  ;;  %v1257_v2 = vrot.slane %v1243_v53, %v7188_v19  ;;  %v1258_v4 = vcombine.high %v7452_v14, %v7452_v14  ;;  %v1287_v27 = vrot.slane %v7452_v14, %v7191_v20 }
  0xef   : > { %v3863_v57 = vadd.f32 %v3859_v1, %v3786_v55  ;;  %v3872_v3 = vcombine.high %v3871_v46, %v3871_v46  ;;  %v7474_v7 = vrot.slane %v3871_v46, %v7188_v19  ;;  %v3920_v8 = vrot.slane %v3861_v61, %v7188_v19 }
  0xf0   : > { %v3973_v9 = vrot.slane %v3862_v58, %v7188_v19  ;;  %v1259_v10 = vcombine.high %v1257_v2, %v1257_v2  ;;  %v1291_v30 = vrot.slane %v1257_v2, %v7191_v20  ;;  %v1312_v11 = vcombine.high %v7461_v60, %v7461_v60 }
  0xf1   : > { %v7482_v12 = vrot.slane %v3872_v3, %v7188_v19  ;;  %v3892_v17 = vrot.slane %v7474_v7, %v7191_v20  ;;  %v3921_v18 = vcombine.high %v3920_v8, %v3920_v8  ;;  %v1295_v23 = vrot.slane %v1258_v4, %v7191_v20 }
  0xf2   : > { %v7488_v25 = vrot.slane %v3920_v8, %v7188_v19  ;;  %v3974_v29 = vcombine.high %v3973_v9, %v3973_v9  ;;  %v7491_v31 = vrot.slane %v3973_v9, %v7188_v19  ;;  %v4026_v32 = vrot.slane %v3863_v57, %v7188_v19 }
  0xf3   : > { %v3887_v40 = vcombine.high %v7474_v7, %v7474_v7  ;;  %v3888_v41 = vcombine.high %v7482_v12, %v7482_v12  ;;  %v3896_v43 = vrot.slane %v7482_v12, %v7191_v20  ;;  %v7501_v44 = vrot.slane %v3921_v18, %v7188_v19 }
  0xf4   : > { %v3909_v47 = vmul.f32 %v3892_v17, %v7372_v54  ;;  %v3936_v48 = vcombine.high %v7488_v25, %v7488_v25  ;;  %v3941_v49 = vrot.slane %v7488_v25, %v7191_v20  ;;  %v7509_v22 = vrot.slane %v3974_v29, %v7188_v19 }
  0xf5   : > { %v3910_v51 = vmul.f32 %v3896_v43, %v7372_v54  ;;  %v3945_v50 = vrot.slane %v7501_v44, %v7191_v20  ;;  %v3994_v38 = vrot.slane %v7491_v31, %v7191_v20  ;;  %v4027_v26 = vcombine.high %v4026_v32, %v4026_v32 }
  0xf6   : > { %v3958_v56 = vmul.f32 %v3941_v49, %v7378_v16  ;;  %v3998_v53 = vrot.slane %v7509_v22, %v7191_v20  ;;  %v7526_v61 = vrot.slane %v4026_v32, %v7188_v19  ;;  %v1299_v58 = vrot.slane %v1259_v10, %v7191_v20 }
  0xf7   : > { %v3959_v15 = vmul.f32 %v3945_v50, %v7378_v16  ;;  %v4011_v34 = vmul.f32 %v3994_v38, %v7385_v59  ;;  %v7533_v3 = vrot.slane %v4027_v26, %v7188_v19  ;;  %vm7540_vm8 = vcmp.eq.s32.totalorder %v7176_v6, %v1287_v27 }
  0xf8   : > { %v3962_v46 = vadd.f32 %v3958_v56, %v3909_v47  ;;  %v4012_v57 = vmul.f32 %v3998_v53, %v7385_v59  ;;  %v4047_v17 = vrot.slane %v7526_v61, %v7191_v20  ;;  %vm7547_vm9 = vcmp.eq.s32.totalorder %v7176_v6, %v1291_v30 }
  0xf9   : > { %v3963_v8 = vadd.f32 %v3959_v15, %v3910_v51  ;;  %v4051_v32 = vrot.slane %v7533_v3, %v7191_v20  ;;  %vm7552_vm10 = vcmp.eq.s32.totalorder %v7176_v6, %v1295_v23  ;;  %vm7558_vm11 = vcmp.eq.s32.totalorder %v7176_v6, %v1299_v58 }
  0xfa   : > { %v4015_v29 = vadd.f32 %v4011_v34, %v3962_v46  ;;  %v4064_v27 = vmul.f32 %v4047_v17, %v7389_v62  ;;  %v1319_v50 = vrot.slane %v7461_v60, %v7188_v19  ;;  %v1326_v38 = vrot.slane %v1312_v11, %v7188_v19 }
  0xfb   : > { %v4016_v49 = vadd.f32 %v4012_v57, %v3963_v8  ;;  %v4065_v30 = vmul.f32 %v4051_v32, %v7389_v62  ;;  %v1353_v23 = vadd.s32 1, %v7452_v14  ;;  %v1354_v56 = vadd.s32 1, %v1257_v2 }
  0xfc   : > { %v4068_v53 = vadd.f32 %v4064_v27, %v4015_v29  ;;  %v1327_v26 = vcombine.high %v1319_v50, %v1319_v50  ;;  %v1332_v15 = vrot.slane %v1319_v50, %v7191_v20  ;;  %v1355_v34 = vadd.s32 1, %v1258_v4 }
  0xfd   : > { %v4069_v46 = vadd.f32 %v4065_v30, %v4016_v49  ;;  %v1328_v58 = vcombine.high %v1326_v38, %v1326_v38  ;;  %v1336_v57 = vrot.slane %v1326_v38, %v7191_v20  ;;  %v1356_v8 = vadd.s32 1, %v1259_v10 }
  0xfe   : > { %v1340_v17 = vrot.slane %v1327_v26, %v7191_v20  ;;  %v1349_v60 = vsel %vm7540_vm8, %v1332_v15, 0.0  ;;  %v1360_v11 = vrot.slane %v1353_v23, %v7191_v20  ;;  %v1364_v14 = vrot.slane %v1354_v56, %v7191_v20 }
  0xff   : > { %v4073_v2 = vpack.c.bf16 %v4069_v46, %v4068_v53  ;;  %v1344_v29 = vrot.slane %v1328_v58, %v7191_v20  ;;  %v1350_v4 = vsel %vm7547_vm9, %v1336_v57, 0.0  ;;  %v1368_v32 = vrot.slane %v1355_v34, %v7191_v20 }
 0x100   : > { %v1351_v49 = vsel %vm7552_vm10, %v1340_v17, 0.0  ;;  %v1372_v18 = vrot.slane %v1356_v8, %v7191_v20  ;;  %vm7584_vm12 = vcmp.eq.s32.totalorder %v7176_v6, %v1360_v11  ;;  %vm7591_vm13 = vcmp.eq.s32.totalorder %v7176_v6, %v1364_v14 }
 0x101   : > { %6361 = vmatpush3.bf16.msra.mxu0 %v4073_v2  ;;  %v1352_v43 = vsel %vm7558_vm11, %v1344_v29, 0.0  ;;  %v1384_v47 = vrot.slane %v7193_v21, %v7188_v19  ;;  %v4163_v30 = vcombine.high %v7278_v45, %v7278_v45  ;;  %vm7600_vm14 = vcmp.eq.s32.totalorder %v7176_v6, %v1368_v32 }
 0x102   : > { %v4188_v51 = vcombine.high %v7398_v5, %v7398_v5  ;;  %v4233_v23 = vcombine.high %v7420_v13, %v7420_v13  ;;  %v4306_v56 = vcombine.high %v7193_v21, %v7193_v21  ;;  %6362 = vmatprep.subr.bf16.mxu0 %v9820_v0  ;;  %vm7612_vm15 = vcmp.eq.s32.totalorder %v7176_v6, %v1372_v18 }
 0x103   : > { %v1385_v45 = vcombine.high %v1384_v47, %v1384_v47  ;;  %v1392_v26 = vrot.slane %v1384_v47, %v7188_v19  ;;  %v4170_v15 = vrot.slane %v4163_v30, %v7188_v19  ;;  %v4379_v21 = vcombine.high %v7464_v63, %v7464_v63 }
 0x104   : > { %v4195_v34 = vrot.slane %v4188_v51, %v7188_v19  ;;  %v4240_v46 = vrot.slane %v4233_v23, %v7188_v19  ;;  %v7621_v13 = vrot.slane %v4306_v56, %v7188_v19  ;;  %v4452_v29 = vcombine.high %v7432_v36, %v7432_v36 }
 0x105   : > { %v1399_v58 = vrot.slane %v1385_v45, %v7188_v19  ;;  %v1400_v57 = vcombine.high %v1392_v26, %v1392_v26  ;;  %v1405_v8 = vrot.slane %v1392_v26, %v7191_v20  ;;  %v4171_v17 = vcombine.high %v4170_v15, %v4170_v15 }
 0x106   : > { %v4178_v11 = vrot.slane %v4170_v15, %v7188_v19  ;;  %v4196_v14 = vcombine.high %v4195_v34, %v4195_v34  ;;  %v7629_v2 = vrot.slane %v4195_v34, %v7188_v19  ;;  %v4241_v45 = vcombine.high %v4240_v46, %v4240_v46 }
 0x107   : > { %v1401_v32 = vcombine.high %v1399_v58, %v1399_v58  ;;  %v1409_v18 = vrot.slane %v1399_v58, %v7191_v20  ;;  %v1413_v47 = vrot.slane %v1400_v57, %v7191_v20  ;;  %v1422_v30 = vsel %vm7584_vm12, %v1405_v8, 0.0 }
 0x108   : > { %v7637_v51 = vadd.f32 %v1422_v30, %v1349_v60  ;;  %v4185_v23 = vrot.slane %v4171_v17, %v7188_v19  ;;  %v4186_v56 = vcombine.high %v4178_v11, %v4178_v11  ;;  %v7646_v58 = vrot.slane %v4196_v14, %v7188_v19 }
 0x109   : > { %v1417_v26 = vrot.slane %v1401_v32, %v7191_v20  ;;  %v1423_v15 = vsel %vm7591_vm13, %v1409_v18, 0.0  ;;  %v1424_v34 = vsel %vm7600_vm14, %v1413_v47, 0.0  ;;  %v7654_v8 = vcombine.high %v7629_v2, %v7629_v2 }
 0x10a   : > { %v7648_v57 = vadd.f32 %v1423_v15, %v1350_v4  ;;  %v7650_v27 = vadd.f32 %v1424_v34, %v1351_v49  ;;  %v4187_v60 = vcombine.high %v4185_v23, %v4185_v23  ;;  %v4216_v50 = vrot.slane %v4178_v11, %v7191_v20 }
 0x10b   : > { %v1425_v17 = vsel %vm7612_vm15, %v1417_v26, 0.0  ;;  %v4220_v38 = vrot.slane %v4185_v23, %v7191_v20  ;;  %v4224_v32 = vrot.slane %v4186_v56, %v7191_v20  ;;  %v4248_v49 = vrot.slane %v4240_v46, %v7188_v19 }
 0x10c   : > { %v7661_v14 = vadd.f32 %v1425_v17, %v1352_v43  ;;  %v4228_v4 = vrot.slane %v4187_v60, %v7191_v20  ;;  %v4255_v18 = vrot.slane %v4241_v45, %v7188_v19  ;;  %vm7667_vm0 = vcmp.eq.s32.totalorder %v7176_v6, %v4216_v50 }
 0x10d   : > { %vm7672_vm1 = vcmp.eq.s32.totalorder %v7176_v6, %v4220_v38  ;;  %vm7677_vm2 = vcmp.eq.s32.totalorder %v7176_v6, %v4224_v32  ;;  %v4282_v30 = vadd.s32 1, %v4178_v11  ;;  %v4256_v45 = vcombine.high %v4248_v49, %v4248_v49 }
 0x10e   : > { %vm7682_vm3 = vcmp.eq.s32.totalorder %v7176_v6, %v4228_v4  ;;  %v4257_v26 = vcombine.high %v4255_v18, %v4255_v18  ;;  %v4261_v15 = vrot.slane %v4248_v49, %v7191_v20  ;;  %v4265_v34 = vrot.slane %v4255_v18, %v7191_v20 }
 0x10f   : > { %v4283_v17 = vadd.s32 1, %v4185_v23  ;;  %v4284_v50 = vadd.s32 1, %v4186_v56  ;;  %v4285_v38 = vadd.s32 1, %v4187_v60  ;;  %v4212_v32 = vcombine.high %v7646_v58, %v7646_v58 }
 0x110   : > { %v4269_v0 = vrot.slane %v4256_v45, %v7191_v20  ;;  %v7692_v11 = vrot.slane %v4257_v26, %v7191_v20  ;;  %v4289_v4 = vrot.slane %v4282_v30, %v7191_v20  ;;  %v4278_v10 = vsel %vm7667_vm0, %v4261_v15, 0.0 }
 0x111   : > { %v4279_v49 = vsel %vm7672_vm1, %v4265_v34, 0.0  ;;  %v4293_v23 = vrot.slane %v4283_v17, %v7191_v20  ;;  %v4297_v56 = vrot.slane %v4284_v50, %v7191_v20  ;;  %v4301_v45 = vrot.slane %v4285_v38, %v7191_v20 }
 0x112   : > { %v4280_v60 = vsel %vm7677_vm2, %v4269_v0, 0.0  ;;  %v4314_v47 = vcombine.high %v7621_v13, %v7621_v13  ;;  %vm7710_vm4 = vcmp.eq.s32.totalorder %v7176_v6, %v4289_v4  ;;  %v4321_v43 = vrot.slane %v7621_v13, %v7188_v19 }
 0x113   : > { %vm7715_vm5 = vcmp.eq.s32.totalorder %v7176_v6, %v4293_v23  ;;  %vm7720_vm6 = vcmp.eq.s32.totalorder %v7176_v6, %v4297_v56  ;;  %v4362_v15 = vrot.slane %v7629_v2, %v7191_v20  ;;  %v4366_v34 = vrot.slane %v7646_v58, %v7191_v20 }
 0x114   : > { %v4328_v26 = vrot.slane %v4314_v47, %v7188_v19  ;;  %v4370_v17 = vrot.slane %v7654_v8, %v7191_v20  ;;  %v4329_v50 = vcombine.high %v4321_v43, %v4321_v43  ;;  %v4334_v38 = vrot.slane %v4321_v43, %v7191_v20 }
 0x115   : > { %v4374_v4 = vrot.slane %v4212_v32, %v7191_v20  ;;  %v4386_v13 = vrot.slane %v4379_v21, %v7188_v19  ;;  %vm7740_vm7 = vcmp.eq.s32.totalorder %v7176_v6, %v4301_v45  ;;  %vm7746_vm8 = vcmp.eq.s32.totalorder %v7176_v6, %v4362_v15 }
 0x116   : > { %v4330_v56 = vcombine.high %v4328_v26, %v4328_v26  ;;  %v4338_v47 = vrot.slane %v4328_v26, %v7191_v20  ;;  %v4342_v43 = vrot.slane %v4329_v50, %v7191_v20  ;;  %v4351_v9 = vsel %vm7710_vm4, %v4334_v38, 0.0 }
 0x117   : > { %vm7754_vm9 = vcmp.eq.s32.totalorder %v7176_v6, %v4366_v34  ;;  %vm7759_vm10 = vcmp.eq.s32.totalorder %v7176_v6, %v4370_v17  ;;  %vm7769_vm11 = vcmp.eq.s32.totalorder %v7176_v6, %v4374_v4  ;;  %v4387_v34 = vcombine.high %v4386_v13, %v4386_v13 }
 0x118   : > { %v7764_v26 = vrot.slane %v4330_v56, %v7191_v20  ;;  %v4352_v15 = vsel %vm7715_vm5, %v4338_v47, 0.0  ;;  %v4353_v50 = vsel %vm7720_vm6, %v4342_v43, 0.0  ;;  %v7775_v38 = vadd.f32 %v4351_v9, %v4278_v10 }
 0x119   : > { %v4394_v17 = vrot.slane %v4386_v13, %v7188_v19  ;;  %v4428_v1 = vadd.s32 1, %v7629_v2  ;;  %v7782_v56 = vadd.f32 %v4352_v15, %v4279_v49  ;;  %v4401_v4 = vrot.slane %v4387_v34, %v7188_v19 }
 0x11a   : > { %v4354_v30 = vsel %vm7740_vm7, %v7764_v26, 0.0  ;;  %v4429_v47 = vadd.s32 1, %v7646_v58  ;;  %v7786_v52 = vadd.f32 %v4353_v50, %v4280_v60  ;;  %v4430_v10 = vadd.s32 1, %v7654_v8 }
 0x11b   : > { %v4402_v0 = vcombine.high %v4394_v17, %v4394_v17  ;;  %v4407_v9 = vrot.slane %v4394_v17, %v7191_v20  ;;  %v4403_v13 = vcombine.high %v4401_v4, %v4401_v4  ;;  %v4411_v2 = vrot.slane %v4401_v4, %v7191_v20 }
 0x11c   : > { %v4431_v43 = vadd.s32 1, %v4212_v32  ;;  %v4435_v55 = vrot.slane %v4428_v1, %v7191_v20  ;;  %v4439_v58 = vrot.slane %v4429_v47, %v7191_v20  ;;  %v4443_v60 = vrot.slane %v4430_v10, %v7191_v20 }
 0x11d   : > { %v4415_v49 = vrot.slane %v4402_v0, %v7191_v20  ;;  %v4424_v15 = vsel %vm7746_vm8, %v4407_v9, 0.0  ;;  %v4419_v34 = vrot.slane %v4403_v13, %v7191_v20  ;;  %v4425_v8 = vsel %vm7754_vm9, %v4411_v2, 0.0 }
 0x11e   : > { %v4447_v50 = vrot.slane %v4431_v43, %v7191_v20  ;;  %vm7802_vm12 = vcmp.eq.s32.totalorder %v7176_v6, %v4435_v55  ;;  %vm7809_vm13 = vcmp.eq.s32.totalorder %v7176_v6, %v4439_v58  ;;  %vm7814_vm14 = vcmp.eq.s32.totalorder %v7176_v6, %v4443_v60 }
 0x11f   : > { %v4426_v1 = vsel %vm7759_vm10, %v4415_v49, 0.0  ;;  %v4459_v55 = vrot.slane %v4452_v29, %v7188_v19  ;;  %v4427_v21 = vsel %vm7769_vm11, %v4419_v34, 0.0  ;;  %v3900_v4 = vrot.slane %v3887_v40, %v7191_v20 }
 0x120   : > { %vm7825_vm15 = vcmp.eq.s32.totalorder %v7176_v6, %v4447_v50  ;;  %v3904_v47 = vrot.slane %v3888_v41, %v7191_v20  ;;  %v3949_v53 = vrot.slane %v3936_v48, %v7191_v20  ;;  %v9936_v9 = vcombine.high %v7501_v44, %v7501_v44 }
 0x121   : > { %v4460_v0 = vcombine.high %v4459_v55, %v4459_v55  ;;  %v4467_v29 = vrot.slane %v4459_v55, %v7188_v19  ;;  %v3911_v7 = vmul.f32 %v3900_v4, %v7372_v54  ;;  %v9937_v12 = vcombine.high %v7491_v31, %v7491_v31 }
 0x122   : > { %v3953_v10 = vrot.slane %v9936_v9, %v7191_v20  ;;  %v3912_v40 = vmul.f32 %v3904_v47, %v7372_v54  ;;  %v9938_v13 = vcombine.high %v7509_v22, %v7509_v22  ;;  %v3960_v43 = vmul.f32 %v3949_v53, %v7378_v16 }
 0x123   : > { %v4002_v41 = vrot.slane %v9937_v12, %v7191_v20  ;;  %v4474_v48 = vrot.slane %v4460_v0, %v7188_v19  ;;  %v4475_v2 = vcombine.high %v4467_v29, %v4467_v29  ;;  %v4480_v44 = vrot.slane %v4467_v29, %v7191_v20 }
 0x124   : > { %v4006_v25 = vrot.slane %v9938_v13, %v7191_v20  ;;  %v3961_v49 = vmul.f32 %v3953_v10, %v7378_v16  ;;  %v9939_v31 = vcombine.high %v7526_v61, %v7526_v61  ;;  %v3964_v47 = vadd.f32 %v3960_v43, %v3911_v7 }
 0x125   : > { %v4013_v54 = vmul.f32 %v4002_v41, %v7385_v59  ;;  %v4476_v22 = vcombine.high %v4474_v48, %v4474_v48  ;;  %v4484_v34 = vrot.slane %v4474_v48, %v7191_v20  ;;  %v4488_v50 = vrot.slane %v4475_v2, %v7191_v20 }
 0x126   : > { %v4014_v58 = vmul.f32 %v4006_v25, %v7385_v59  ;;  %v4055_v60 = vrot.slane %v9939_v31, %v7191_v20  ;;  %v4497_v55 = vsel %vm7802_vm12, %v4480_v44, 0.0  ;;  %v3965_v16 = vadd.f32 %v3961_v49, %v3912_v40 }
 0x127   : > { %v4501_v4 = vadd.f32 %v4497_v55, %v4424_v15  ;;  %v9940_v59 = vcombine.high %v7533_v3, %v7533_v3  ;;  %v4492_v29 = vrot.slane %v4476_v22, %v7191_v20  ;;  %v4498_v61 = vsel %vm7809_vm13, %v4484_v34, 0.0 }
 0x128   : > { %v4499_v53 = vsel %vm7814_vm14, %v4488_v50, 0.0  ;;  %v4066_v9 = vmul.f32 %v4055_v60, %v7389_v62  ;;  %v4502_v32 = vadd.f32 %v4498_v61, %v4425_v8  ;;  %v4017_v7 = vadd.f32 %v4013_v54, %v3964_v47 }
 0x129   : > { %v4059_v0 = vrot.slane %v9940_v59, %v7191_v20  ;;  %v4503_v10 = vadd.f32 %v4499_v53, %v4426_v1  ;;  %v4512_v15 = vrot.slane %v4501_v4, %v7188_v19  ;;  %v4500_v40 = vsel %vm7825_vm15, %v4492_v29, 0.0 }
 0x12a   : > { %v4018_v3 = vadd.f32 %v4014_v58, %v3965_v16  ;;  %v4504_v41 = vadd.f32 %v4500_v40, %v4427_v21  ;;  %v4561_v17 = vrot.slane %v4502_v32, %v7188_v19  ;;  %vm6816_vm0 = vmmov 0  }
 0x12b   : > { %v4067_v12 = vmul.f32 %v4059_v0, %v7389_v62  ;;  %v4513_v13 = vcombine.high %v4512_v15, %v4512_v15  ;;  %v4520_v18 = vrot.slane %v4512_v15, %v7188_v19  ;;  %v9941_v25 = vmov 0.0  }
 0x12c   : > { %6364 = vmatprep.mubr.msk.bf16.mxu0 %vm6816_vm0, %v9941_v25  ;;  %v9942_v8 = vsel %vm7682_vm3, %v7692_v11, 0.0  ;;  %v4614_v62 = vrot.slane %v4503_v10, %v7188_v19  ;;  %v4070_v21 = vadd.f32 %v4066_v9, %v4017_v7  ;;  %6384 = vmatprep.mubr.msk.bf16.mxu1 %vm6816_vm0, %v9941_v25  ;;  %v4562_v44 = vcombine.high %v4561_v17, %v4561_v17 }
 0x12d   : > { %v7896_v1 = vadd.f32 %v4354_v30, %v9942_v8  ;;  %v4071_v45 = vadd.f32 %v4067_v12, %v4018_v3  ;;  %v4527_v48 = vrot.slane %v4513_v13, %v7188_v19  ;;  %v4528_v2 = vcombine.high %v4520_v18, %v4520_v18 }
 0x12e   : > { %v4533_v46 = vrot.slane %v4520_v18, %v7191_v20  ;;  %vm4075_vm1 = vcmask 261120   ;;  %v4569_v11 = vrot.slane %v4561_v17, %v7188_v19  ;;  %v4615_v23 = vcombine.high %v4614_v62, %v4614_v62  ;;  %v4072_v18 = vld [vmem:[%s7926_s24] sm:$0xf] }
 0x12f   : > { %v4622_v26 = vrot.slane %v4614_v62, %v7188_v19  ;;  %v4667_v30 = vrot.slane %v4504_v41, %v7188_v19  ;;  %v4529_v43 = vcombine.high %v4527_v48, %v4527_v48  ;;  %v4537_v49 = vrot.slane %v4527_v48, %v7191_v20 }
 0x130   : > { %v4550_v54 = vmul.f32 %v4533_v46, %v7775_v38  ;;  %v4576_v58 = vrot.slane %v4562_v44, %v7188_v19  ;;  %v4577_v31 = vcombine.high %v4569_v11, %v4569_v11  ;;  %v4582_v60 = vrot.slane %v4569_v11, %v7191_v20 }
 0x131   : > { %v4629_v22 = vrot.slane %v4615_v23, %v7188_v19  ;;  %v4630_v34 = vcombine.high %v4622_v26, %v4622_v26  ;;  %v4551_v50 = vmul.f32 %v4537_v49, %v7775_v38  ;;  %v4635_v47 = vrot.slane %v4622_v26, %v7191_v20 }
 0x132   : > { %v4578_v55 = vcombine.high %v4576_v58, %v4576_v58  ;;  %v4586_v4 = vrot.slane %v4576_v58, %v7191_v20  ;;  %v4599_v16 = vmul.f32 %v4582_v60, %v7782_v56  ;;  %v4668_v29 = vcombine.high %v4667_v30, %v4667_v30 }
 0x133   : > { %v4631_v59 = vcombine.high %v4629_v22, %v4629_v22  ;;  %v4639_v0 = vrot.slane %v4629_v22, %v7191_v20  ;;  %v4652_v53 = vmul.f32 %v4635_v47, %v7786_v52  ;;  %v4675_v9 = vrot.slane %v4667_v30, %v7188_v19 }
 0x134   : > { %v4600_v61 = vmul.f32 %v4586_v4, %v7782_v56  ;;  %v4074_v32 = vpack.c.bf16 %v4071_v45, %v4070_v21  ;;  %v4603_v10 = vadd.f32 %v4599_v16, %v4550_v54  ;;  %v4682_v7 = vrot.slane %v4668_v29, %v7188_v19 }
 0x135   : > { %v4653_v15 = vmul.f32 %v4639_v0, %v7786_v52  ;;  %v4541_v40 = vrot.slane %v4528_v2, %v7191_v20  ;;  %v4683_v12 = vcombine.high %v4675_v9, %v4675_v9  ;;  %v4688_v41 = vrot.slane %v4675_v9, %v7191_v20 }
 0x136   : > { %v4604_v3 = vadd.f32 %v4600_v61, %v4551_v50  ;;  %6363 = vmatpush3.bf16.msra.mxu0 %v4074_v32  ;;  %v4545_v13 = vrot.slane %v4529_v43, %v7191_v20  ;;  %v4656_v17 = vadd.f32 %v4652_v53, %v4603_v10  ;;  %v4684_v8 = vcombine.high %v4682_v7, %v4682_v7 }
 0x137   : > { %v4692_v62 = vrot.slane %v4682_v7, %v7191_v20  ;;  %v4552_v21 = vmul.f32 %v4541_v40, %v7775_v38  ;;  %6368 = vmatprep.subr.bf16.mxu0 %v9941_v25  ;;  %v4705_v48 = vmul.f32 %v4688_v41, %v7896_v1  ;;  %v4590_v46 = vrot.slane %v4577_v31, %v7191_v20 }
 0x138   : > { %v4657_v45 = vadd.f32 %v4653_v15, %v4604_v3  ;;  %v4553_v2 = vmul.f32 %v4545_v13, %v7775_v38  ;;  %v4594_v11 = vrot.slane %v4578_v55, %v7191_v20  ;;  %v4643_v23 = vrot.slane %v4630_v34, %v7191_v20 }
 0x139   : > { %v4706_v44 = vmul.f32 %v4692_v62, %v7896_v1  ;;  %v4647_v26 = vrot.slane %v4631_v59, %v7191_v20  ;;  %6365 = vmatmul.mubr.msk.bf16.vlgmr.msra.gmra.mrb[0].mxu0 %vm4075_vm1, %v4072_v18  ;;  %v4709_v30 = vadd.f32 %v4705_v48, %v4656_v17  ;;  %v4601_v43 = vmul.f32 %v4590_v46, %v7782_v56 }
 0x13a   : > { %v4696_v49 = vrot.slane %v4683_v12, %v7191_v20  ;;  %v4700_v54 = vrot.slane %v4684_v8, %v7191_v20  ;;  %6376 = vmatprep.mubr.msk.bf16.mxu0 %vm6816_vm0, %v9941_v25  ;;  %v4602_v58 = vmul.f32 %v4594_v11, %v7782_v56  ;;  %v4654_v31 = vmul.f32 %v4643_v23, %v7786_v52 }
 0x13b   : > { %v4710_v38 = vadd.f32 %v4706_v44, %v4657_v45  ;;  %v4655_v60 = vmul.f32 %v4647_v26, %v7786_v52  ;;  %v4605_v22 = vadd.f32 %v4601_v43, %v4552_v21  ;;  %v505_v55 = vrot.slane %v7197_v24, %v7188_v19  ;;  %v6308_v44 = vld [vmem:[%s7926_s24 + $0x4] sm:$0xf] }
 0x13c   : > { %v4707_v34 = vmul.f32 %v4696_v49, %v7896_v1  ;;  %v4708_v50 = vmul.f32 %v4700_v54, %v7896_v1  ;;  %v4606_v47 = vadd.f32 %v4602_v58, %v4553_v2  ;;  %v696_v16 = vrot.slane %v7287_v37, %v7188_v19 }
 0x13d   : > { %v4715_v4 = vpack.c.bf16 %v4710_v38, %v4709_v30  ;;  %v769_v56 = vrot.slane %v7207_v28, %v7188_v19  ;;  %v4658_v59 = vadd.f32 %v4654_v31, %v4605_v22  ;;  %v506_v0 = vcombine.high %v505_v55, %v505_v55 }
 0x13e   : > { %v513_v52 = vrot.slane %v505_v55, %v7188_v19  ;;  %v7959_v29 = vrot.slane %v7398_v5, %v7188_v19  ;;  %v4659_v1 = vadd.f32 %v4655_v60, %v4606_v47  ;;  %v697_v61 = vcombine.high %v696_v16, %v696_v16 }
 0x13f   : > { %6381 = vmatpush3.bf16.msra.mxu1 %v4715_v4  ;;  %v704_v24 = vrot.slane %v696_v16, %v7188_v19  ;;  %v770_v53 = vcombine.high %v769_v56, %v769_v56  ;;  %v4711_v37 = vadd.f32 %v4707_v34, %v4658_v59  ;;  %v520_v9 = vrot.slane %v506_v0, %v7188_v19 }
 0x140   : > { %6382 = vmatprep.subr.bf16.mxu1 %v9941_v25  ;;  %v521_v28 = vcombine.high %v513_v52, %v513_v52  ;;  %v672_v32 = vrot.slane %v513_v52, %v7191_v20  ;;  %v4712_v10 = vadd.f32 %v4708_v50, %v4659_v1  ;;  %v711_v15 = vrot.slane %v697_v61, %v7188_v19 }
 0x141   : > { %v712_v7 = vcombine.high %v704_v24, %v704_v24  ;;  %v717_v5 = vrot.slane %v704_v24, %v7191_v20  ;;  %v522_v40 = vcombine.high %v520_v9, %v520_v9  ;;  %v676_v3 = vrot.slane %v520_v9, %v7191_v20 }
 0x142   : > { %v680_v12 = vrot.slane %v521_v28, %v7191_v20  ;;  %vm685_vm2 = vcmp.eq.s32.totalorder %v7176_v6, %v672_v32  ;;  %v4716_v41 = vpack.c.bf16 %v4712_v10, %v4711_v37  ;;  %v713_v13 = vcombine.high %v711_v15, %v711_v15 }
 0x143   : > { %v721_v18 = vrot.slane %v711_v15, %v7191_v20  ;;  %v725_v17 = vrot.slane %v712_v7, %v7191_v20  ;;  %v684_v8 = vrot.slane %v522_v40, %v7191_v20  ;;  %vm686_vm3 = vcmp.eq.s32.totalorder %v7176_v6, %v676_v3 }
 0x144   : > { %vm7975_vm4 = vcmp.eq.s32.totalorder %v7176_v6, %v680_v12  ;;  %v734_v21 = vsel %vm685_vm2, %v717_v5, 0.0  ;;  %6383 = vmatpush3.bf16.msra.mxu1 %v4716_v41  ;;  %v729_v45 = vrot.slane %v713_v13, %v7191_v20  ;;  %v738_v46 = vadd.s32 1, %v513_v52 }
 0x145   : > { %v735_v48 = vsel %vm686_vm3, %v721_v18, 0.0  ;;  %v736_v2 = vsel %vm7975_vm4, %v725_v17, 0.0  ;;  %6388 = vmatprep.subr.bf16.mxu1 %v9941_v25  ;;  %vm7985_vm5 = vcmp.eq.s32.totalorder %v7176_v6, %v684_v8  ;;  %v739_v23 = vadd.s32 1, %v520_v9 }
 0x146   : > { %v740_v26 = vadd.s32 1, %v521_v28  ;;  %v741_v30 = vadd.s32 1, %v522_v40  ;;  %v737_v43 = vsel %vm7985_vm5, %v729_v45, 0.0  ;;  %v745_v49 = vrot.slane %v738_v46, %v7191_v20 }
 0x147   : > { %v777_v54 = vrot.slane %v769_v56, %v7188_v19  ;;  %v784_v38 = vrot.slane %v770_v53, %v7188_v19  ;;  %v749_v58 = vrot.slane %v739_v23, %v7191_v20  ;;  %6385 = vmatmul.mubr.msk.bf16.vlgmr.msra.gmra.mrb[0].mxu1 %vm4075_vm1, %v6308_v44  ;;  %v1267_v22 = vcombine.high %v7959_v29, %v7959_v29 }
 0x148   : > { %v753_v31 = vrot.slane %v740_v26, %v7191_v20  ;;  %v757_v60 = vrot.slane %v741_v30, %v7191_v20  ;;  %vm758_vm6 = vcmp.eq.s32.totalorder %v7176_v6, %v745_v49  ;;  %6396 = vmatprep.mubr.msk.bf16.mxu1 %vm6816_vm0, %v9941_v25  ;;  %v1274_v59 = vrot.slane %v7959_v29, %v7188_v19 }
 0x149   : > { %v785_v34 = vcombine.high %v777_v54, %v777_v54  ;;  %v786_v50 = vcombine.high %v784_v38, %v784_v38  ;;  %v790_v55 = vrot.slane %v777_v54, %v7191_v20  ;;  %vm759_vm7 = vcmp.eq.s32.totalorder %v7176_v6, %v749_v58 }
 0x14a   : > { %vm760_vm8 = vcmp.eq.s32.totalorder %v7176_v6, %v753_v31  ;;  %vm761_vm9 = vcmp.eq.s32.totalorder %v7176_v6, %v757_v60  ;;  %v794_v4 = vrot.slane %v784_v38, %v7191_v20  ;;  %v1281_v1 = vrot.slane %v1267_v22, %v7188_v19 }
 0x14b   : > { %v798_v47 = vrot.slane %v785_v34, %v7191_v20  ;;  %v802_v16 = vrot.slane %v786_v50, %v7191_v20  ;;  %v807_v56 = vsel %vm758_vm6, %v790_v55, 0.0  ;;  %v1457_v37 = vrot.slane %v7464_v63, %v7188_v19 }
 0x14c   : > { %v808_v0 = vsel %vm759_vm7, %v794_v4, 0.0  ;;  %v8012_v52 = vadd.f32 %v807_v56, %v734_v21  ;;  %v1282_v29 = vcombine.high %v1274_v59, %v1274_v59  ;;  %v1283_v15 = vcombine.high %v1281_v1, %v1281_v1 }
 0x14d   : > { %v809_v61 = vsel %vm760_vm8, %v798_v47, 0.0  ;;  %v810_v24 = vsel %vm761_vm9, %v802_v16, 0.0  ;;  %v8015_v53 = vadd.f32 %v808_v0, %v735_v48  ;;  %v1433_v7 = vrot.slane %v1274_v59, %v7191_v20 }
 0x14e   : > { %v8019_v9 = vadd.f32 %v809_v61, %v736_v2  ;;  %v8021_v28 = vadd.f32 %v810_v24, %v737_v43  ;;  %v823_v32 = vrot.slane %v8012_v52, %v7188_v19  ;;  %v1437_v5 = vrot.slane %v1281_v1, %v7191_v20 }
 0x14f   : > { %v921_v10 = vrot.slane %v8015_v53, %v7188_v19  ;;  %v1441_v18 = vrot.slane %v1282_v29, %v7191_v20  ;;  %v1445_v17 = vrot.slane %v1283_v15, %v7191_v20  ;;  %vm8050_vm10 = vcmp.eq.s32.totalorder %v7176_v6, %v1433_v7 }
 0x150   : > { %v831_v40 = vcombine.high %v823_v32, %v823_v32  ;;  %v8030_v3 = vrot.slane %v823_v32, %v7188_v19  ;;  %v1027_v63 = vrot.slane %v8019_v9, %v7188_v19  ;;  %v1133_v12 = vrot.slane %v8021_v28, %v7188_v19 }
 0x151   : > { %v929_v41 = vcombine.high %v921_v10, %v921_v10  ;;  %v8037_v13 = vrot.slane %v921_v10, %v7188_v19  ;;  %vm8083_vm11 = vcmp.eq.s32.totalorder %v7176_v6, %v1437_v5  ;;  %vm8093_vm12 = vcmp.eq.s32.totalorder %v7176_v6, %v1441_v18 }
 0x152   : > { %v8042_v8 = vrot.slane %v831_v40, %v7188_v19  ;;  %v868_v62 = vrot.slane %v8030_v3, %v7191_v20  ;;  %v1035_v21 = vcombine.high %v1027_v63, %v1027_v63  ;;  %v8047_v45 = vrot.slane %v1027_v63, %v7188_v19 }
 0x153   : > { %v8055_v2 = vrot.slane %v929_v41, %v7188_v19  ;;  %v966_v46 = vrot.slane %v8037_v13, %v7191_v20  ;;  %v1141_v44 = vcombine.high %v1133_v12, %v1133_v12  ;;  %v8060_v11 = vrot.slane %v1133_v12, %v7188_v19 }
 0x154   : > { %v872_v23 = vrot.slane %v8042_v8, %v7191_v20  ;;  %v905_v26 = vmul.f32 %v868_v62, %v7265_v33  ;;  %v8066_v30 = vrot.slane %v1035_v21, %v7188_v19  ;;  %v1072_v43 = vrot.slane %v8047_v45, %v7191_v20 }
 0x155   : > { %v970_v49 = vrot.slane %v8055_v2, %v7191_v20  ;;  %v1003_v54 = vmul.f32 %v966_v46, %v7267_v35  ;;  %v8074_v38 = vrot.slane %v1141_v44, %v7188_v19  ;;  %v1178_v58 = vrot.slane %v8060_v11, %v7191_v20 }
 0x156   : > { %v906_v31 = vmul.f32 %v872_v23, %v7265_v33  ;;  %v1076_v60 = vrot.slane %v8066_v30, %v7191_v20  ;;  %v1109_v22 = vmul.f32 %v1072_v43, %v7269_v39  ;;  %vm8098_vm13 = vcmp.eq.s32.totalorder %v7176_v6, %v1445_v17 }
 0x157   : > { %v1004_v50 = vmul.f32 %v970_v49, %v7267_v35  ;;  %v1011_v55 = vadd.f32 %v1003_v54, %v905_v26  ;;  %v1182_v4 = vrot.slane %v8074_v38, %v7191_v20  ;;  %v1215_v47 = vmul.f32 %v1178_v58, %v7273_v42 }
 0x158   : > { %v1110_v16 = vmul.f32 %v1076_v60, %v7269_v39  ;;  %v1458_v61 = vcombine.high %v1457_v37, %v1457_v37  ;;  %v1465_v7 = vrot.slane %v1457_v37, %v7188_v19  ;;  %v1499_v40 = vadd.s32 1, %v1274_v59 }
 0x159   : > { %v1012_v24 = vadd.f32 %v1004_v50, %v906_v31  ;;  %v1117_v32 = vadd.f32 %v1109_v22, %v1011_v55  ;;  %v1216_v10 = vmul.f32 %v1182_v4, %v7273_v42  ;;  %v1500_v63 = vadd.s32 1, %v1281_v1 }
 0x15a   : > { %v1472_v5 = vrot.slane %v1458_v61, %v7188_v19  ;;  %v1501_v12 = vadd.s32 1, %v1282_v29  ;;  %v1473_v62 = vcombine.high %v1465_v7, %v1465_v7  ;;  %v1478_v17 = vrot.slane %v1465_v7, %v7191_v20 }
 0x15b   : > { %v1118_v41 = vadd.f32 %v1110_v16, %v1012_v24  ;;  %v1223_v18 = vadd.f32 %v1215_v47, %v1117_v32  ;;  %v1502_v44 = vadd.s32 1, %v1283_v15  ;;  %v1506_v23 = vrot.slane %v1499_v40, %v7191_v20 }
 0x15c   : > { %v1474_v21 = vcombine.high %v1472_v5, %v1472_v5  ;;  %v1482_v46 = vrot.slane %v1472_v5, %v7191_v20  ;;  %v1486_v43 = vrot.slane %v1473_v62, %v7191_v20  ;;  %v1495_v37 = vsel %vm8050_vm10, %v1478_v17, 0.0 }
 0x15d   : > { %v1224_v26 = vadd.f32 %v1216_v10, %v1118_v41  ;;  %v1510_v59 = vrot.slane %v1500_v63, %v7191_v20  ;;  %v1514_v49 = vrot.slane %v1501_v12, %v7191_v20  ;;  %v1518_v54 = vrot.slane %v1502_v44, %v7191_v20 }
 0x15e   : > { %v1490_v1 = vrot.slane %v1474_v21, %v7191_v20  ;;  %v1496_v29 = vsel %vm8083_vm11, %v1482_v46, 0.0  ;;  %v1497_v58 = vsel %vm8093_vm12, %v1486_v43, 0.0  ;;  %vm8120_vm14 = vcmp.eq.s32.totalorder %v7176_v6, %v1506_v23 }
 0x15f   : > { %v1232_v15 = vpack.c.bf16 %v1224_v26, %v1223_v18  ;;  %vm8125_vm15 = vcmp.eq.s32.totalorder %v7176_v6, %v1510_v59  ;;  %vm8132_vm2 = vcmp.eq.s32.totalorder %v7176_v6, %v1514_v49  ;;  %vm8137_vm3 = vcmp.eq.s32.totalorder %v7176_v6, %v1518_v54 }
 0x160   : > { %v1498_v60 = vsel %vm8098_vm13, %v1490_v1, 0.0  ;;  %v1530_v50 = vrot.slane %v7432_v36, %v7188_v19  ;;  %v861_v55 = vcombine.high %v8030_v3, %v8030_v3  ;;  %v863_v4 = vcombine.high %v8042_v8, %v8042_v8 }
 0x161   : > { %6369 = vmatpush3.bf16.msra.mxu0 %v1232_v15  ;;  %v959_v47 = vcombine.high %v8037_v13, %v8037_v13  ;;  %v961_v16 = vcombine.high %v8055_v2, %v8055_v2  ;;  %v1065_v36 = vcombine.high %v8047_v45, %v8047_v45  ;;  %v1067_v3 = vcombine.high %v8066_v30, %v8066_v30 }
 0x162   : > { %v1531_v56 = vcombine.high %v1530_v50, %v1530_v50  ;;  %v1538_v0 = vrot.slane %v1530_v50, %v7188_v19  ;;  %6370 = vmatprep.subr.bf16.mxu0 %v9941_v25  ;;  %v876_v61 = vrot.slane %v861_v55, %v7191_v20  ;;  %v880_v8 = vrot.slane %v863_v4, %v7191_v20 }
 0x163   : > { %v974_v13 = vrot.slane %v959_v47, %v7191_v20  ;;  %v978_v24 = vrot.slane %v961_v16, %v7191_v20  ;;  %v1080_v7 = vrot.slane %v1065_v36, %v7191_v20  ;;  %v1084_v46 = vrot.slane %v1067_v3, %v7191_v20 }
 0x164   : > { %v1545_v2 = vrot.slane %v1531_v56, %v7188_v19  ;;  %v1546_v32 = vcombine.high %v1538_v0, %v1538_v0  ;;  %v1551_v10 = vrot.slane %v1538_v0, %v7191_v20  ;;  %v907_v45 = vmul.f32 %v876_v61, %v7265_v33 }
 0x165   : > { %v908_v5 = vmul.f32 %v880_v8, %v7265_v33  ;;  %v1005_v30 = vmul.f32 %v974_v13, %v7267_v35  ;;  %v1006_v40 = vmul.f32 %v978_v24, %v7267_v35  ;;  %v1111_v43 = vmul.f32 %v1080_v7, %v7269_v39 }
 0x166   : > { %v1547_v63 = vcombine.high %v1545_v2, %v1545_v2  ;;  %v1555_v12 = vrot.slane %v1545_v2, %v7191_v20  ;;  %v1559_v41 = vrot.slane %v1546_v32, %v7191_v20  ;;  %v1568_v18 = vsel %vm8120_vm14, %v1551_v10, 0.0 }
 0x167   : > { %v8172_v62 = vadd.f32 %v1568_v18, %v1495_v37  ;;  %v1013_v17 = vadd.f32 %v1005_v30, %v907_v45  ;;  %v1014_v21 = vadd.f32 %v1006_v40, %v908_v5  ;;  %v1112_v49 = vmul.f32 %v1084_v46, %v7269_v39 }
 0x168   : > { %v1563_v44 = vrot.slane %v1547_v63, %v7191_v20  ;;  %v1569_v23 = vsel %vm8125_vm15, %v1555_v12, 0.0  ;;  %v1570_v26 = vsel %vm8132_vm2, %v1559_v41, 0.0  ;;  %v1171_v31 = vcombine.high %v8060_v11, %v8060_v11 }
 0x169   : > { %v8181_v59 = vadd.f32 %v1569_v23, %v1496_v29  ;;  %v8183_v1 = vadd.f32 %v1570_v26, %v1497_v58  ;;  %v1584_v37 = vrot.slane %v8172_v62, %v7188_v19  ;;  %v1119_v15 = vadd.f32 %v1111_v43, %v1013_v17 }
 0x16a   : > { %v1571_v54 = vsel %vm8137_vm3, %v1563_v44, 0.0  ;;  %v1173_v48 = vcombine.high %v8074_v38, %v8074_v38  ;;  %v1120_v34 = vadd.f32 %v1112_v49, %v1014_v21  ;;  %v1186_v4 = vrot.slane %v1171_v31, %v7191_v20 }
 0x16b   : > { %v8194_v22 = vadd.f32 %v1571_v54, %v1498_v60  ;;  %v1592_v29 = vcombine.high %v1584_v37, %v1584_v37  ;;  %v1600_v58 = vrot.slane %v1584_v37, %v7188_v19  ;;  %v1682_v50 = vrot.slane %v8181_v59, %v7188_v19 }
 0x16c   : > { %v1788_v55 = vrot.slane %v8183_v1, %v7188_v19  ;;  %v1190_v47 = vrot.slane %v1173_v48, %v7191_v20  ;;  %v1217_v3 = vmul.f32 %v1186_v4, %v7273_v42  ;;  %vm4119_vm4 = vcmask 523264  }
 0x16d   : > { %v1614_v11 = vrot.slane %v1592_v29, %v7188_v19  ;;  %v1629_v38 = vrot.slane %v1600_v58, %v7191_v20  ;;  %v1690_v60 = vcombine.high %v1682_v50, %v1682_v50  ;;  %v1698_v16 = vrot.slane %v1682_v50, %v7188_v19 }
 0x16e   : > { %v1796_v56 = vcombine.high %v1788_v55, %v1788_v55  ;;  %v1804_v0 = vrot.slane %v1788_v55, %v7188_v19  ;;  %v1894_v36 = vrot.slane %v8194_v22, %v7188_v19  ;;  %v1218_v40 = vmul.f32 %v1190_v47, %v7273_v42 }
 0x16f   : > { %v1633_v61 = vrot.slane %v1614_v11, %v7191_v20  ;;  %v1666_v8 = vmul.f32 %v1629_v38, %v7637_v51  ;;  %v1712_v13 = vrot.slane %v1690_v60, %v7188_v19  ;;  %v1727_v24 = vrot.slane %v1698_v16, %v7191_v20 }
 0x170   : > { %v1818_v2 = vrot.slane %v1796_v56, %v7188_v19  ;;  %v1833_v32 = vrot.slane %v1804_v0, %v7191_v20  ;;  %v1902_v10 = vcombine.high %v1894_v36, %v1894_v36  ;;  %v1910_v7 = vrot.slane %v1894_v36, %v7188_v19 }
 0x171   : > { %v1667_v45 = vmul.f32 %v1633_v61, %v7637_v51  ;;  %v1731_v5 = vrot.slane %v1712_v13, %v7191_v20  ;;  %v1764_v30 = vmul.f32 %v1727_v24, %v7648_v57  ;;  %v1225_v46 = vadd.f32 %v1217_v3, %v1119_v15 }
 0x172   : > { %v1837_v63 = vrot.slane %v1818_v2, %v7191_v20  ;;  %v1870_v12 = vmul.f32 %v1833_v32, %v7650_v27  ;;  %v1924_v41 = vrot.slane %v1902_v10, %v7188_v19  ;;  %v1939_v18 = vrot.slane %v1910_v7, %v7191_v20 }
 0x173   : > { %v1765_v17 = vmul.f32 %v1731_v5, %v7648_v57  ;;  %v1772_v21 = vadd.f32 %v1764_v30, %v1666_v8  ;;  %v1226_v44 = vadd.f32 %v1218_v40, %v1120_v34  ;;  %v1622_v37 = vcombine.high %v1600_v58, %v1600_v58 }
 0x174   : > { %v1871_v23 = vmul.f32 %v1837_v63, %v7650_v27  ;;  %v1943_v26 = vrot.slane %v1924_v41, %v7191_v20  ;;  %v1976_v43 = vmul.f32 %v1939_v18, %v7661_v14  ;;  %v1624_v48 = vcombine.high %v1614_v11, %v1614_v11 }
 0x175   : > { %v1773_v49 = vadd.f32 %v1765_v17, %v1667_v45  ;;  %v1878_v54 = vadd.f32 %v1870_v12, %v1772_v21  ;;  %v1233_v31 = vpack.c.bf16 %v1226_v44, %v1225_v46  ;;  %v1637_v50 = vrot.slane %v1622_v37, %v7191_v20 }
 0x176   : > { %v1977_v29 = vmul.f32 %v1943_v26, %v7661_v14  ;;  %v1720_v55 = vcombine.high %v1698_v16, %v1698_v16  ;;  %v1722_v4 = vcombine.high %v1712_v13, %v1712_v13  ;;  %v1641_v34 = vrot.slane %v1624_v48, %v7191_v20 }
 0x177   : > { %v1879_v47 = vadd.f32 %v1871_v23, %v1773_v49  ;;  %v1984_v15 = vadd.f32 %v1976_v43, %v1878_v54  ;;  %6371 = vmatpush3.bf16.msra.mxu0 %v1233_v31  ;;  %v1826_v38 = vcombine.high %v1804_v0, %v1804_v0  ;;  %v1668_v60 = vmul.f32 %v1637_v50, %v7637_v51 }
 0x178   : > { %v1735_v58 = vrot.slane %v1720_v55, %v7191_v20  ;;  %v1739_v56 = vrot.slane %v1722_v4, %v7191_v20  ;;  %v1828_v36 = vcombine.high %v1818_v2, %v1818_v2  ;;  %6372 = vmatprep.subr.bf16.mxu0 %v9941_v25  ;;  %v1669_v3 = vmul.f32 %v1641_v34, %v7637_v51 }
 0x179   : > { %v1985_v11 = vadd.f32 %v1977_v29, %v1879_v47  ;;  %v1841_v16 = vrot.slane %v1826_v38, %v7191_v20  ;;  %v1932_v61 = vcombine.high %v1910_v7, %v1910_v7  ;;  %v1934_v24 = vcombine.high %v1924_v41, %v1924_v41 }
 0x17a   : > { %v1766_v8 = vmul.f32 %v1735_v58, %v7648_v57  ;;  %v1767_v13 = vmul.f32 %v1739_v56, %v7648_v57  ;;  %v1845_v0 = vrot.slane %v1828_v36, %v7191_v20  ;;  %v816_v45 = vcombine.high %v8012_v52, %v8012_v52 }
 0x17b   : > { %v1994_v32 = vpack.c.bf16 %v1985_v11, %v1984_v15  ;;  %v1872_v10 = vmul.f32 %v1841_v16, %v7650_v27  ;;  %v1947_v2 = vrot.slane %v1932_v61, %v7191_v20  ;;  %v1951_v7 = vrot.slane %v1934_v24, %v7191_v20 }
 0x17c   : > { %v1774_v5 = vadd.f32 %v1766_v8, %v1668_v60  ;;  %v1775_v30 = vadd.f32 %v1767_v13, %v1669_v3  ;;  %v1873_v40 = vmul.f32 %v1845_v0, %v7650_v27  ;;  %v830_v12 = vrot.slane %v816_v45, %v7188_v19 }
 0x17d   : > { %6389 = vmatpush3.bf16.msra.mxu1 %v1994_v32  ;;  %v1978_v63 = vmul.f32 %v1947_v2, %v7661_v14  ;;  %v914_v41 = vcombine.high %v8015_v53, %v8015_v53  ;;  %v1020_v18 = vcombine.high %v8019_v9, %v8019_v9  ;;  %v1979_v21 = vmul.f32 %v1951_v7, %v7661_v14 }
 0x17e   : > { %6390 = vmatprep.subr.bf16.mxu1 %v9941_v25  ;;  %v1880_v52 = vadd.f32 %v1872_v10, %v1774_v5  ;;  %v1881_v17 = vadd.f32 %v1873_v40, %v1775_v30  ;;  %v1126_v46 = vcombine.high %v8021_v28, %v8021_v28  ;;  %v832_v44 = vcombine.high %v830_v12, %v830_v12 }
 0x17f   : > { %v846_v23 = vrot.slane %v830_v12, %v7188_v19  ;;  %v928_v26 = vrot.slane %v914_v41, %v7188_v19  ;;  %v1034_v43 = vrot.slane %v1020_v18, %v7188_v19  ;;  %v1577_v49 = vcombine.high %v8172_v62, %v8172_v62 }
 0x180   : > { %v1986_v53 = vadd.f32 %v1978_v63, %v1880_v52  ;;  %v1987_v37 = vadd.f32 %v1979_v21, %v1881_v17  ;;  %v1140_v9 = vrot.slane %v1126_v46, %v7188_v19  ;;  %v860_v54 = vrot.slane %v832_v44, %v7188_v19 }
 0x181   : > { %v884_v31 = vrot.slane %v846_v23, %v7191_v20  ;;  %v930_v48 = vcombine.high %v928_v26, %v928_v26  ;;  %v8266_v28 = vrot.slane %v928_v26, %v7188_v19  ;;  %v1036_v50 = vcombine.high %v1034_v43, %v1034_v43 }
 0x182   : > { %v1995_v29 = vpack.c.bf16 %v1987_v37, %v1986_v53  ;;  %v8269_v55 = vrot.slane %v1034_v43, %v7188_v19  ;;  %v1142_v4 = vcombine.high %v1140_v9, %v1140_v9  ;;  %v888_v47 = vrot.slane %v860_v54, %v7191_v20 }
 0x183   : > { %v909_v15 = vmul.f32 %v884_v31, %v7265_v33  ;;  %v8274_v62 = vrot.slane %v930_v48, %v7188_v19  ;;  %v982_v34 = vrot.slane %v8266_v28, %v7191_v20  ;;  %v8279_v38 = vrot.slane %v1036_v50, %v7188_v19 }
 0x184   : > { %6391 = vmatpush3.bf16.msra.mxu1 %v1995_v29  ;;  %v1088_v60 = vrot.slane %v8269_v55, %v7191_v20  ;;  %v8284_v58 = vrot.slane %v1140_v9, %v7188_v19  ;;  %v8287_v56 = vrot.slane %v1142_v4, %v7188_v19  ;;  %v910_v36 = vmul.f32 %v888_v47, %v7265_v33 }
 0x185   : > { %6392 = vmatprep.subr.bf16.mxu1 %v9941_v25  ;;  %v986_v11 = vrot.slane %v8274_v62, %v7191_v20  ;;  %v1007_v3 = vmul.f32 %v982_v34, %v7267_v35  ;;  %v1591_v16 = vrot.slane %v1577_v49, %v7188_v19  ;;  %v1092_v61 = vrot.slane %v8279_v38, %v7191_v20 }
 0x186   : > { %v1113_v8 = vmul.f32 %v1088_v60, %v7269_v39  ;;  %v1194_v13 = vrot.slane %v8284_v58, %v7191_v20  ;;  %v1198_v0 = vrot.slane %v8287_v56, %v7191_v20  ;;  %v1675_v40 = vcombine.high %v8181_v59, %v8181_v59 }
 0x187   : > { %v1008_v24 = vmul.f32 %v986_v11, %v7267_v35  ;;  %v1015_v32 = vadd.f32 %v1007_v3, %v909_v15  ;;  %v1593_v10 = vcombine.high %v1591_v16, %v1591_v16  ;;  %v8304_v2 = vrot.slane %v1591_v16, %v7188_v19 }
 0x188   : > { %v1114_v45 = vmul.f32 %v1092_v61, %v7269_v39  ;;  %v1219_v5 = vmul.f32 %v1194_v13, %v7273_v42  ;;  %v1220_v30 = vmul.f32 %v1198_v0, %v7273_v42  ;;  %v1689_v18 = vrot.slane %v1675_v40, %v7188_v19 }
 0x189   : > { %v1016_v7 = vadd.f32 %v1008_v24, %v910_v36  ;;  %v1121_v63 = vadd.f32 %v1113_v8, %v1015_v32  ;;  %v8312_v12 = vrot.slane %v1593_v10, %v7188_v19  ;;  %v1645_v41 = vrot.slane %v8304_v2, %v7191_v20 }
 0x18a   : > { %v1781_v52 = vcombine.high %v8183_v1, %v8183_v1  ;;  %v1887_v17 = vcombine.high %v8194_v22, %v8194_v22  ;;  %v862_v21 = vcombine.high %v846_v23, %v846_v23  ;;  %v1691_v43 = vcombine.high %v1689_v18, %v1689_v18 }
 0x18b   : > { %v1122_v46 = vadd.f32 %v1114_v45, %v1016_v7  ;;  %v1227_v44 = vadd.f32 %v1219_v5, %v1121_v63  ;;  %v1649_v59 = vrot.slane %v8312_v12, %v7191_v20  ;;  %v1670_v26 = vmul.f32 %v1645_v41, %v7637_v51 }
 0x18c   : > { %v8325_v53 = vrot.slane %v1689_v18, %v7188_v19  ;;  %v1795_v37 = vrot.slane %v1781_v52, %v7188_v19  ;;  %v1901_v9 = vrot.slane %v1887_v17, %v7188_v19  ;;  %v864_v22 = vcombine.high %v860_v54, %v860_v54 }
 0x18d   : > { %v1228_v1 = vadd.f32 %v1220_v30, %v1122_v46  ;;  %v1671_v49 = vmul.f32 %v1649_v59, %v7637_v51  ;;  %v892_v23 = vrot.slane %v862_v21, %v7191_v20  ;;  %v8332_v31 = vrot.slane %v1691_v43, %v7188_v19 }
 0x18e   : > { %v1743_v48 = vrot.slane %v8325_v53, %v7191_v20  ;;  %v1797_v29 = vcombine.high %v1795_v37, %v1795_v37  ;;  %v8337_v50 = vrot.slane %v1795_v37, %v7188_v19  ;;  %v1903_v47 = vcombine.high %v1901_v9, %v1901_v9 }
 0x18f   : > { %v1234_v4 = vpack.c.bf16 %v1228_v1, %v1227_v44  ;;  %v8340_v15 = vrot.slane %v1901_v9, %v7188_v19  ;;  %v896_v34 = vrot.slane %v864_v22, %v7191_v20  ;;  %v1747_v54 = vrot.slane %v8332_v31, %v7191_v20 }
 0x190   : > { %v1768_v60 = vmul.f32 %v1743_v48, %v7648_v57  ;;  %v8347_v36 = vrot.slane %v1797_v29, %v7188_v19  ;;  %v1849_v11 = vrot.slane %v8337_v50, %v7191_v20  ;;  %v8352_v3 = vrot.slane %v1903_v47, %v7188_v19 }
 0x191   : > { %6373 = vmatpush3.bf16.msra.mxu0 %v1234_v4  ;;  %v1955_v16 = vrot.slane %v8340_v15, %v7191_v20  ;;  %v911_v61 = vmul.f32 %v892_v23, %v7265_v33  ;;  %v912_v8 = vmul.f32 %v896_v34, %v7265_v33  ;;  %v1769_v13 = vmul.f32 %v1747_v54, %v7648_v57 }
 0x192   : > { %v1776_v0 = vadd.f32 %v1768_v60, %v1670_v26  ;;  %v1853_v24 = vrot.slane %v8347_v36, %v7191_v20  ;;  %v1874_v32 = vmul.f32 %v1849_v11, %v7650_v27  ;;  %6374 = vmatprep.subr.bf16.mxu0 %v9941_v25  ;;  %v1959_v10 = vrot.slane %v8352_v3, %v7191_v20 }
 0x193   : > { %v1980_v45 = vmul.f32 %v1955_v16, %v7661_v14  ;;  %v960_v5 = vcombine.high %v8266_v28, %v8266_v28  ;;  %v962_v33 = vcombine.high %v8274_v62, %v8274_v62  ;;  %v1777_v30 = vadd.f32 %v1769_v13, %v1671_v49 }
 0x194   : > { %v1875_v40 = vmul.f32 %v1853_v24, %v7650_v27  ;;  %v1882_v7 = vadd.f32 %v1874_v32, %v1776_v0  ;;  %v1066_v63 = vcombine.high %v8269_v55, %v8269_v55  ;;  %v1981_v41 = vmul.f32 %v1959_v10, %v7661_v14  ;;  %v427_v32 = vld [vmem:[%s7154_s8 + $0x10] sm:$0xff] }
 0x195   : > { %v990_v18 = vrot.slane %v960_v5, %v7191_v20  ;;  %v994_v52 = vrot.slane %v962_v33, %v7191_v20  ;;  %v1068_v17 = vcombine.high %v8279_v38, %v8279_v38  ;;  %v1172_v46 = vcombine.high %v8284_v58, %v8284_v58 }
 0x196   : > { %v1883_v28 = vadd.f32 %v1875_v40, %v1777_v30  ;;  %v1988_v21 = vadd.f32 %v1980_v45, %v1882_v7  ;;  %v1096_v62 = vrot.slane %v1066_v63, %v7191_v20  ;;  %v1174_v26 = vcombine.high %v8287_v56, %v8287_v56  ;;  %v1231_v30 = vld [vmem:[%s7166_s17] sm:$0xf]  ;;  %v8427_v7 = vld [vmem:[%s7146_s20 + $0x18] sm:$0xff] }
 0x197   : > { %v1009_v44 = vmul.f32 %v990_v18, %v7267_v35  ;;  %v1010_v55 = vmul.f32 %v994_v52, %v7267_v35  ;;  %v1100_v59 = vrot.slane %v1068_v17, %v7191_v20  ;;  %v1202_v38 = vrot.slane %v1172_v46, %v7191_v20 }
 0x198   : > { %v1989_v43 = vadd.f32 %v1981_v41, %v1883_v28  ;;  %v1115_v37 = vmul.f32 %v1096_v62, %v7269_v39  ;;  %v1623_v9 = vcombine.high %v8304_v2, %v8304_v2  ;;  %v1206_v22 = vrot.slane %v1174_v26, %v7191_v20 }
 0x199   : > { %v1017_v1 = vadd.f32 %v1009_v44, %v911_v61  ;;  %v1018_v49 = vadd.f32 %v1010_v55, %v912_v8  ;;  %v1116_v58 = vmul.f32 %v1100_v59, %v7269_v39  ;;  %v1221_v23 = vmul.f32 %v1202_v38, %v7273_v42  ;;  %v431_v55 = vld [vmem:[%s7162_s18 + $0x10] sm:$0xff] }
 0x19a   : > { %v1996_v35 = vpack.c.bf16 %v1989_v43, %v1988_v21  ;;  %v1625_v56 = vcombine.high %v8312_v12, %v8312_v12  ;;  %v1653_v48 = vrot.slane %v1623_v9, %v7191_v20  ;;  %v1222_v47 = vmul.f32 %v1206_v22, %v7273_v42 }
 0x19b   : > { %v1123_v29 = vadd.f32 %v1115_v37, %v1017_v1  ;;  %v1124_v4 = vadd.f32 %v1116_v58, %v1018_v49  ;;  %v1721_v2 = vcombine.high %v8325_v53, %v8325_v53  ;;  %v1723_v54 = vcombine.high %v8332_v31, %v8332_v31 }
 0x19c   : > { %6393 = vmatpush3.bf16.msra.mxu1 %v1996_v35  ;;  %v1657_v39 = vrot.slane %v1625_v56, %v7191_v20  ;;  %v1672_v34 = vmul.f32 %v1653_v48, %v7637_v51  ;;  %v1827_v12 = vcombine.high %v8337_v50, %v8337_v50  ;;  %v1829_v53 = vcombine.high %v8347_v36, %v8347_v36  ;;  %v423_v50 = vld [vmem:[%s7146_s20 + $0x10] sm:$0xff] }
 0x19d   : > { %6394 = vmatprep.subr.bf16.mxu1 %v9941_v25  ;;  %v1229_v60 = vadd.f32 %v1221_v23, %v1123_v29  ;;  %v1230_v42 = vadd.f32 %v1222_v47, %v1124_v4  ;;  %v1751_v11 = vrot.slane %v1721_v2, %v7191_v20  ;;  %v1755_v61 = vrot.slane %v1723_v54, %v7191_v20 }
 0x19e   : > { %v1673_v16 = vmul.f32 %v1657_v39, %v7637_v51  ;;  %v1857_v8 = vrot.slane %v1827_v12, %v7191_v20  ;;  %v1933_v31 = vcombine.high %v8340_v15, %v8340_v15  ;;  %v1861_v24 = vrot.slane %v1829_v53, %v7191_v20  ;;  %v6303_v39 = vld [vmem:[%s7166_s17 + $0x4] sm:$0xf] }
 0x19f   : > { %v1235_v13 = vpack.c.bf16 %v1230_v42, %v1229_v60  ;;  %v1770_v0 = vmul.f32 %v1751_v11, %v7648_v57  ;;  %v1935_v36 = vcombine.high %v8352_v3, %v8352_v3  ;;  %v1771_v51 = vmul.f32 %v1755_v61, %v7648_v57 }
 0x1a0   : > { %v1876_v10 = vmul.f32 %v1857_v8, %v7650_v27  ;;  %v1963_v45 = vrot.slane %v1933_v31, %v7191_v20  ;;  %v1877_v5 = vmul.f32 %v1861_v24, %v7650_v27  ;;  %v435_v40 = vfloor.f32 %v423_v50  ;;  %v8435_v27 = vld [vmem:[%s7154_s8 + $0x18] sm:$0xff] }
 0x1a1   : > { %6375 = vmatpush3.bf16.msra.mxu0 %v1235_v13  ;;  %v1778_v15 = vadd.f32 %v1770_v0, %v1672_v34  ;;  %v1967_v33 = vrot.slane %v1935_v36, %v7191_v20  ;;  %v1779_v3 = vadd.f32 %v1771_v51, %v1673_v16  ;;  %v439_v63 = vfloor.f32 %v427_v32 }
 0x1a2   : > { %v1982_v57 = vmul.f32 %v1963_v45, %v7661_v14  ;;  %6400 = vmatprep.subr.bf16.mxu0 %v9941_v25  ;;  %v8432_v52 = vsub.f32 %v423_v50, %v435_v40  ;;  %v6460_v17 = vtrunc.f32 %v435_v40  ;;  %v436_v46 = vfloor.f32 %v8427_v7 }
 0x1a3   : > { %v1884_v41 = vadd.f32 %v1876_v10, %v1778_v15  ;;  %v1983_v18 = vmul.f32 %v1967_v33, %v7661_v14  ;;  %v1885_v28 = vadd.f32 %v1877_v5, %v1779_v3  ;;  %v447_v21 = vsub.f32 %v427_v32, %v439_v63 }
 0x1a4   : > { %6377 = vmatmul.mubr.msk.bf16.vlgmr.msra.gmra.mrb[0].mxu0 %vm4119_vm4, %v1231_v30  ;;  %v6468_v62 = vtrunc.f32 %v439_v63  ;;  %v6461_v59 = vcvt.f32.s32 %v6460_v17  ;;  %v8441_v26 = vsub.f32 1.0, %v8432_v52  ;;  %v2146_v14 = vrot.slane %v8432_v52, %v7188_v19 }
 0x1a5   : > { %v1990_v44 = vadd.f32 %v1982_v57, %v1884_v41  ;;  %6404 = vmatprep.mubr.msk.bf16.mxu0 %vm6816_vm0, %v9941_v25  ;;  %v1991_v43 = vadd.f32 %v1983_v18, %v1885_v28  ;;  %v463_v38 = vsub.f32 1.0, %v447_v21  ;;  %v440_v9 = vfloor.f32 %v8435_v27 }
 0x1a6   : > { %v8447_v37 = vcvt.f32.s32 %v6468_v62  ;;  %v2004_v1 = vrot.slane %v6461_v59, %v7188_v19  ;;  %v2073_v49 = vrot.slane %v8441_v26, %v7188_v19  ;;  %v2147_v58 = vcombine.high %v2146_v14, %v2146_v14 }
 0x1a7   : > { %v8454_v22 = vrot.slane %v2146_v14, %v7188_v19  ;;  %v1997_v35 = vpack.c.bf16 %v1991_v43, %v1990_v44  ;;  %v8456_v23 = vmul.f32 %v463_v38, %v431_v55  ;;  %v8458_v56 = vmul.f32 %v447_v21, %v431_v55 }
 0x1a8   : > { %v4803_v48 = vcombine.high %v6461_v59, %v6461_v59  ;;  %v2005_v29 = vcombine.high %v2004_v1, %v2004_v1  ;;  %v2012_v4 = vrot.slane %v2004_v1, %v7188_v19  ;;  %v2074_v47 = vcombine.high %v2073_v49, %v2073_v49 }
 0x1a9   : > { %v2081_v2 = vrot.slane %v2073_v49, %v7188_v19  ;;  %6395 = vmatpush3.bf16.msra.mxu1 %v1997_v35  ;;  %v8464_v34 = vrot.slane %v2147_v58, %v7188_v19  ;;  %v2162_v54 = vcombine.high %v8454_v22, %v8454_v22  ;;  %v2167_v12 = vrot.slane %v8454_v22, %v7191_v20 }
 0x1aa   : > { %v4828_v60 = vcombine.high %v8447_v37, %v8447_v37  ;;  %6420 = vmatprep.subr.bf16.mxu1 %v9941_v25  ;;  %v2019_v42 = vrot.slane %v2005_v29, %v7188_v19  ;;  %v2020_v11 = vcombine.high %v2012_v4, %v2012_v4  ;;  %v2049_v53 = vrot.slane %v2012_v4, %v7191_v20 }
 0x1ab   : > { %v2088_v16 = vrot.slane %v2074_v47, %v7188_v19  ;;  %v2089_v61 = vcombine.high %v2081_v2, %v2081_v2  ;;  %v2094_v8 = vrot.slane %v2081_v2, %v7191_v20  ;;  %v2115_v31 = vadd.s32 1, %v2012_v4 }
 0x1ac   : > { %v4810_v50 = vrot.slane %v4803_v48, %v7188_v19  ;;  %6397 = vmatmul.mubr.msk.bf16.vlgmr.msra.gmra.mrb[0].mxu1 %vm4119_vm4, %v6303_v39  ;;  %v2053_v13 = vrot.slane %v2019_v42, %v7191_v20  ;;  %v2057_v0 = vrot.slane %v2020_v11, %v7191_v20  ;;  %vm2062_vm5 = vcmp.eq.s32.totalorder %v7176_v6, %v2049_v53 }
 0x1ad   : > { %v2090_v36 = vcombine.high %v2088_v16, %v2088_v16  ;;  %v2098_v32 = vrot.slane %v2088_v16, %v7191_v20  ;;  %v8486_v51 = vrot.slane %v2089_v61, %v7191_v20  ;;  %v2111_v10 = vsel %vm2062_vm5, %v2094_v8, 0.0  ;;  %6424 = vmatprep.mubr.msk.bf16.mxu1 %vm6816_vm0, %v9941_v25 }
 0x1ae   : > { %v8490_v45 = vcombine.high %v2019_v42, %v2019_v42  ;;  %vm2063_vm6 = vcmp.eq.s32.totalorder %v7176_v6, %v2053_v13  ;;  %vm8494_vm7 = vcmp.eq.s32.totalorder %v7176_v6, %v2057_v0  ;;  %v2116_v5 = vadd.s32 1, %v2019_v42 }
 0x1af   : > { %v2112_v33 = vsel %vm2063_vm6, %v2098_v32, 0.0  ;;  %v8501_v40 = vadd.s32 1, %v2020_v11  ;;  %v2122_v3 = vrot.slane %v2115_v31, %v7191_v20  ;;  %v8505_v57 = vrot.slane %v2090_v36, %v7191_v20 }
 0x1b0   : > { %v2126_v63 = vrot.slane %v2116_v5, %v7191_v20  ;;  %v2171_v41 = vrot.slane %v8464_v34, %v7191_v20  ;;  %v4811_v18 = vcombine.high %v4810_v50, %v4810_v50  ;;  %v4818_v17 = vrot.slane %v4810_v50, %v7188_v19 }
 0x1b1   : > { %vm2135_vm8 = vcmp.eq.s32.totalorder %v7176_v6, %v2122_v3  ;;  %v4835_v28 = vrot.slane %v4828_v60, %v7188_v19  ;;  %v4873_v21 = vcombine.high %v8441_v26, %v8441_v26  ;;  %v4946_v55 = vcombine.high %v8432_v52, %v8432_v52 }
 0x1b2   : > { %vm2136_vm9 = vcmp.eq.s32.totalorder %v7176_v6, %v2126_v63  ;;  %v2184_v62 = vsel %vm2135_vm8, %v2167_v12, 0.0  ;;  %v4825_v44 = vrot.slane %v4811_v18, %v7188_v19  ;;  %v4826_v43 = vcombine.high %v4818_v17, %v4818_v17 }
 0x1b3   : > { %v2185_v59 = vsel %vm2136_vm9, %v2171_v41, 0.0  ;;  %v8519_v14 = vadd.f32 %v2184_v62, %v2111_v10  ;;  %v4836_v38 = vcombine.high %v4835_v28, %v4835_v28  ;;  %v4843_v58 = vrot.slane %v4835_v28, %v7188_v19 }
 0x1b4   : > { %v8521_v1 = vadd.f32 %v2185_v59, %v2112_v33  ;;  %v4827_v49 = vcombine.high %v4825_v44, %v4825_v44  ;;  %v4856_v26 = vrot.slane %v4818_v17, %v7191_v20  ;;  %v4860_v35 = vrot.slane %v4825_v44, %v7191_v20 }
 0x1b5   : > { %9965 = vst [vmem:[#allocation22_spill] sm:$0xff] %v8519_v14  ;;  %v4850_v22 = vrot.slane %v4836_v38, %v7188_v19  ;;  %v4864_v48 = vrot.slane %v4826_v43, %v7191_v20  ;;  %v4880_v52 = vrot.slane %v4873_v21, %v7188_v19  ;;  %v8530_v29 = vrot.slane %v2162_v54, %v7191_v20 }
 0x1b6   : > { %9966 = vst [vmem:[#allocation23_spill] sm:$0xff] %v8521_v1  ;;  %v4851_v4 = vcombine.high %v4843_v58, %v4843_v58  ;;  %v4868_v47 = vrot.slane %v4827_v49, %v7191_v20  ;;  %v4922_v2 = vadd.s32 1, %v4818_v17  ;;  %vm8534_vm10 = vcmp.eq.s32.totalorder %v7176_v6, %v4856_v26 }
 0x1b7   : > { %v4852_v39 = vcombine.high %v4850_v22, %v4850_v22  ;;  %vm8539_vm11 = vcmp.eq.s32.totalorder %v7176_v6, %v4860_v35  ;;  %v4881_v42 = vcombine.high %v4880_v52, %v4880_v52  ;;  %vm8544_vm12 = vcmp.eq.s32.totalorder %v7176_v6, %v4864_v48 }
 0x1b8   : > { %v4888_v11 = vrot.slane %v4880_v52, %v7188_v19  ;;  %v4923_v53 = vadd.s32 1, %v4825_v44  ;;  %v4924_v16 = vadd.s32 1, %v4826_v43  ;;  %v4925_v8 = vadd.s32 1, %v4827_v49 }
 0x1b9   : > { %v4895_v61 = vrot.slane %v4881_v42, %v7188_v19  ;;  %v4929_v31 = vrot.slane %v4922_v2, %v7191_v20  ;;  %v4953_v50 = vrot.slane %v4946_v55, %v7188_v19  ;;  %vm8556_vm13 = vcmp.eq.s32.totalorder %v7176_v6, %v4868_v47 }
 0x1ba   : > { %v4896_v13 = vcombine.high %v4888_v11, %v4888_v11  ;;  %v4901_v0 = vrot.slane %v4888_v11, %v7191_v20  ;;  %v4933_v36 = vrot.slane %v4923_v53, %v7191_v20  ;;  %v4937_v32 = vrot.slane %v4924_v16, %v7191_v20 }
 0x1bb   : > { %v4897_v5 = vcombine.high %v4895_v61, %v4895_v61  ;;  %v4905_v33 = vrot.slane %v4895_v61, %v7191_v20  ;;  %v4941_v3 = vrot.slane %v4925_v8, %v7191_v20  ;;  %vm8566_vm14 = vcmp.eq.s32.totalorder %v7176_v6, %v4929_v31 }
 0x1bc   : > { %v4909_v63 = vrot.slane %v4896_v13, %v7191_v20  ;;  %v4918_v41 = vsel %vm8534_vm10, %v4901_v0, 0.0  ;;  %vm8571_vm15 = vcmp.eq.s32.totalorder %v7176_v6, %v4933_v36  ;;  %vm8579_vm2 = vcmp.eq.s32.totalorder %v7176_v6, %v4937_v32 }
 0x1bd   : > { %v4913_v28 = vrot.slane %v4897_v5, %v7191_v20  ;;  %v4919_v21 = vsel %vm8539_vm11, %v4905_v33, 0.0  ;;  %v4954_v44 = vcombine.high %v4953_v50, %v4953_v50  ;;  %vm8584_vm3 = vcmp.eq.s32.totalorder %v7176_v6, %v4941_v3 }
 0x1be   : > { %v4961_v59 = vrot.slane %v4953_v50, %v7188_v19  ;;  %v5002_v43 = vrot.slane %v4843_v58, %v7191_v20  ;;  %v5006_v38 = vrot.slane %v4850_v22, %v7191_v20  ;;  %v4920_v49 = vsel %vm8544_vm12, %v4909_v63, 0.0 }
 0x1bf   : > { %v4968_v26 = vrot.slane %v4954_v44, %v7188_v19  ;;  %v5010_v35 = vrot.slane %v4851_v4, %v7191_v20  ;;  %v5014_v48 = vrot.slane %v4852_v39, %v7191_v20  ;;  %v4921_v52 = vsel %vm8556_vm13, %v4913_v28, 0.0 }
 0x1c0   : > { %v4969_v47 = vcombine.high %v4961_v59, %v4961_v59  ;;  %v4974_v2 = vrot.slane %v4961_v59, %v7191_v20  ;;  %vm8600_vm5 = vcmp.eq.s32.totalorder %v7176_v6, %v5002_v43  ;;  %vm8606_vm6 = vcmp.eq.s32.totalorder %v7176_v6, %v5006_v38 }
 0x1c1   : > { %v4970_v60 = vcombine.high %v4968_v26, %v4968_v26  ;;  %v4978_v42 = vrot.slane %v4968_v26, %v7191_v20  ;;  %vm8611_vm8 = vcmp.eq.s32.totalorder %v7176_v6, %v5010_v35  ;;  %v5019_v61 = vcombine.high %v8456_v23, %v8456_v23 }
 0x1c2   : > { %v4982_v53 = vrot.slane %v4969_v47, %v7191_v20  ;;  %v4991_v16 = vsel %vm8566_vm14, %v4974_v2, 0.0  ;;  %v5068_v8 = vadd.s32 1, %v4843_v58  ;;  %vm8626_vm9 = vcmp.eq.s32.totalorder %v7176_v6, %v5014_v48 }
 0x1c3   : > { %v4986_v31 = vrot.slane %v4970_v60, %v7191_v20  ;;  %v4992_v50 = vsel %vm8571_vm15, %v4978_v42, 0.0  ;;  %v8623_v13 = vadd.f32 %v4991_v16, %v4918_v41  ;;  %v5069_v36 = vadd.s32 1, %v4850_v22 }
 0x1c4   : > { %v4993_v32 = vsel %vm8579_vm2, %v4982_v53, 0.0  ;;  %v8632_v10 = vadd.f32 %v4992_v50, %v4919_v21  ;;  %v5026_v58 = vrot.slane %v5019_v61, %v7188_v19  ;;  %v5070_v5 = vadd.s32 1, %v4851_v4 }
 0x1c5   : > { %v4994_v33 = vsel %vm8584_vm3, %v4986_v31, 0.0  ;;  %v8637_v3 = vadd.f32 %v4993_v32, %v4920_v49  ;;  %v5071_v63 = vadd.s32 1, %v4852_v39  ;;  %v5075_v41 = vrot.slane %v5068_v8, %v7191_v20 }
 0x1c6   : > { %v8640_v18 = vadd.f32 %v4994_v33, %v4921_v52  ;;  %v5027_v17 = vcombine.high %v5026_v58, %v5026_v58  ;;  %v5034_v22 = vrot.slane %v5026_v58, %v7188_v19  ;;  %v5079_v28 = vrot.slane %v5069_v36, %v7191_v20  ;;  %v432_v58 = vld [vmem:[%s7162_s18 + $0x18] sm:$0xff] }
 0x1c7   : > { %v5083_v21 = vrot.slane %v5070_v5, %v7191_v20  ;;  %v5087_v62 = vrot.slane %v5071_v63, %v7191_v20  ;;  %vm8647_vm10 = vcmp.eq.s32.totalorder %v7176_v6, %v5075_v41  ;;  %v5092_v39 = vcombine.high %v8458_v56, %v8458_v56 }
 0x1c8   : > { %v5041_v44 = vrot.slane %v5027_v17, %v7188_v19  ;;  %v5042_v55 = vcombine.high %v5034_v22, %v5034_v22  ;;  %v5047_v59 = vrot.slane %v5034_v22, %v7191_v20  ;;  %vm8656_vm11 = vcmp.eq.s32.totalorder %v7176_v6, %v5079_v28 }
 0x1c9   : > { %vm8661_vm12 = vcmp.eq.s32.totalorder %v7176_v6, %v5083_v21  ;;  %vm8666_vm13 = vcmp.eq.s32.totalorder %v7176_v6, %v5087_v62  ;;  %v5099_v26 = vrot.slane %v5092_v39, %v7188_v19  ;;  %v8674_v35 = vsub.f32 %v8427_v7, %v436_v46 }
 0x1ca   : > { %v5043_v48 = vcombine.high %v5041_v44, %v5041_v44  ;;  %v5051_v52 = vrot.slane %v5041_v44, %v7191_v20  ;;  %v5055_v47 = vrot.slane %v5042_v55, %v7191_v20  ;;  %v5064_v2 = vsel %vm8600_vm5, %v5047_v59, 0.0 }
 0x1cb   : > { %v5100_v60 = vcombine.high %v5099_v26, %v5099_v26  ;;  %v5107_v42 = vrot.slane %v5099_v26, %v7188_v19  ;;  %v448_v53 = vsub.f32 %v8435_v27, %v440_v9  ;;  %v6462_v16 = vtrunc.f32 %v436_v46 }
 0x1cc   : > { %v5059_v61 = vrot.slane %v5043_v48, %v7191_v20  ;;  %v5065_v8 = vsel %vm8606_vm6, %v5051_v52, 0.0  ;;  %v5066_v31 = vsel %vm8611_vm8, %v5055_v47, 0.0  ;;  %v6470_v12 = vtrunc.f32 %v440_v9 }
 0x1cd   : > { %v5114_v50 = vrot.slane %v5100_v60, %v7188_v19  ;;  %v5115_v36 = vcombine.high %v5107_v42, %v5107_v42  ;;  %v5120_v32 = vrot.slane %v5107_v42, %v7191_v20  ;;  %v8696_v5 = vcvt.f32.s32 %v6462_v16 }
 0x1ce   : > { %v5067_v7 = vsel %vm8626_vm9, %v5059_v61, 0.0  ;;  %v8700_v46 = vcvt.f32.s32 %v6470_v12  ;;  %v8703_v54 = vsub.f32 1.0, %v8674_v35  ;;  %v464_v11 = vsub.f32 1.0, %v448_v53 }
 0x1cf   : > { %v5116_v33 = vcombine.high %v5114_v50, %v5114_v50  ;;  %v5124_v27 = vrot.slane %v5114_v50, %v7191_v20  ;;  %v5128_v9 = vrot.slane %v5115_v36, %v7191_v20  ;;  %v5137_v63 = vsel %vm8647_vm10, %v5120_v32, 0.0 }
 0x1d0   : > { %v5141_v41 = vadd.f32 %v5137_v63, %v5064_v2  ;;  %v8709_v17 = vmul.f32 %v464_v11, %v432_v58  ;;  %v8711_v22 = vmul.f32 %v448_v53, %v432_v58  ;;  %v2766_v0 = vrot.slane %v8696_v5, %v7188_v19 }
 0x1d1   : > { %v5132_v28 = vrot.slane %v5116_v33, %v7191_v20  ;;  %v5138_v21 = vsel %vm8656_vm11, %v5124_v27, 0.0  ;;  %v5139_v62 = vsel %vm8661_vm12, %v5128_v9, 0.0  ;;  %v2835_v4 = vrot.slane %v8703_v54, %v7188_v19 }
 0x1d2   : > { %9999 = vst [vmem:[#allocation24_spill] sm:$0xff] %v8709_v17  ;;  %v5142_v39 = vadd.f32 %v5138_v21, %v5065_v8  ;;  %v5143_v44 = vadd.f32 %v5139_v62, %v5066_v31  ;;  %v5152_v55 = vrot.slane %v5141_v41, %v7188_v19  ;;  %v2767_v59 = vcombine.high %v2766_v0, %v2766_v0 }
 0x1d3   : > { %v5140_v26 = vsel %vm8666_vm13, %v5132_v28, 0.0  ;;  %v2774_v48 = vrot.slane %v2766_v0, %v7188_v19  ;;  %v2836_v52 = vcombine.high %v2835_v4, %v2835_v4  ;;  %v2843_v43 = vrot.slane %v2835_v4, %v7188_v19 }
 0x1d4   : > { %v5144_v47 = vadd.f32 %v5140_v26, %v5067_v7  ;;  %v5153_v2 = vcombine.high %v5152_v55, %v5152_v55  ;;  %v8728_v38 = vrot.slane %v5152_v55, %v7188_v19  ;;  %v5201_v60 = vrot.slane %v5142_v39, %v7188_v19 }
 0x1d5   : > { %v5254_v42 = vrot.slane %v5143_v44, %v7188_v19  ;;  %v2781_v53 = vrot.slane %v2767_v59, %v7188_v19  ;;  %v2782_v16 = vcombine.high %v2774_v48, %v2774_v48  ;;  %v2811_v49 = vrot.slane %v2774_v48, %v7191_v20 }
 0x1d6   : > { %v8735_v61 = vrot.slane %v5153_v2, %v7188_v19  ;;  %v5173_v8 = vrot.slane %v8728_v38, %v7191_v20  ;;  %v5202_v31 = vcombine.high %v5201_v60, %v5201_v60  ;;  %v8740_v12 = vrot.slane %v5201_v60, %v7188_v19 }
 0x1d7   : > { %v5255_v50 = vcombine.high %v5254_v42, %v5254_v42  ;;  %v8743_v36 = vrot.slane %v5254_v42, %v7188_v19  ;;  %v5307_v32 = vrot.slane %v5144_v47, %v7188_v19  ;;  %v8746_v58 = vcombine.high %v2781_v53, %v2781_v53 }
 0x1d8   : > { %v5177_v7 = vrot.slane %v8735_v61, %v7191_v20  ;;  %v5190_v11 = vmul.f32 %v5173_v8, %v8623_v13  ;;  %v8752_v33 = vrot.slane %v5202_v31, %v7188_v19  ;;  %v5222_v27 = vrot.slane %v8740_v12, %v7191_v20 }
 0x1d9   : > { %v8757_v9 = vrot.slane %v5255_v50, %v7188_v19  ;;  %v5275_v63 = vrot.slane %v8743_v36, %v7191_v20  ;;  %v5308_v41 = vcombine.high %v5307_v32, %v5307_v32  ;;  %v8762_v0 = vrot.slane %v5307_v32, %v7188_v19 }
 0x1da   : > { %v5191_v28 = vmul.f32 %v5177_v7, %v8623_v13  ;;  %v5226_v21 = vrot.slane %v8752_v33, %v7191_v20  ;;  %v5239_v62 = vmul.f32 %v5222_v27, %v8632_v10  ;;  %v2815_v4 = vrot.slane %v2781_v53, %v7191_v20 }
 0x1db   : > { %v5279_v39 = vrot.slane %v8757_v9, %v7191_v20  ;;  %v5292_v44 = vmul.f32 %v5275_v63, %v8637_v3  ;;  %v8773_v55 = vrot.slane %v5308_v41, %v7188_v19  ;;  %v5328_v59 = vrot.slane %v8762_v0, %v7191_v20 }
 0x1dc   : > { %v5240_v26 = vmul.f32 %v5226_v21, %v8632_v10  ;;  %v5243_v47 = vadd.f32 %v5239_v62, %v5190_v11  ;;  %v2819_v2 = vrot.slane %v2782_v16, %v7191_v20  ;;  %vm8780_vm14 = vcmp.eq.s32.totalorder %v7176_v6, %v2811_v49 }
 0x1dd   : > { %v5293_v42 = vmul.f32 %v5279_v39, %v8637_v3  ;;  %v5332_v8 = vrot.slane %v8773_v55, %v7191_v20  ;;  %v5345_v31 = vmul.f32 %v5328_v59, %v8640_v18  ;;  %vm8789_vm15 = vcmp.eq.s32.totalorder %v7176_v6, %v2815_v4 }
 0x1de   : > { %v5244_v32 = vadd.f32 %v5240_v26, %v5191_v28  ;;  %v5296_v7 = vadd.f32 %v5292_v44, %v5243_v47  ;;  %vm8794_vm2 = vcmp.eq.s32.totalorder %v7176_v6, %v2819_v2  ;;  %v10004_v49 = vmov 0 }
 0x1df   : > { %v10005_v49 = vsel %vm8794_vm2, 4294967295, %v10004_v49  ;;  %v2850_v11 = vrot.slane %v2836_v52, %v7188_v19  ;;  %v5346_v27 = vmul.f32 %v5332_v8, %v8640_v18  ;;  %v2851_v63 = vcombine.high %v2843_v43, %v2843_v43 }
 0x1e0   : > { %10006 = vst [vmem:[#allocation25_spill] sm:$0xff] %v10005_v49  ;;  %v2856_v41 = vrot.slane %v2843_v43, %v7191_v20  ;;  %v2877_v21 = vadd.s32 1, %v2774_v48  ;;  %v5297_v62 = vadd.f32 %v5293_v42, %v5244_v32  ;;  %v5349_v4 = vadd.f32 %v5345_v31, %v5296_v7 }
 0x1e1   : > { %v2852_v39 = vcombine.high %v2850_v11, %v2850_v11  ;;  %v2860_v59 = vrot.slane %v2850_v11, %v7191_v20  ;;  %v8803_v28 = vrot.slane %v2851_v63, %v7191_v20  ;;  %v2878_v26 = vadd.s32 1, %v2781_v53 }
 0x1e2   : > { %v2873_v44 = vsel %vm8780_vm14, %v2856_v41, 0.0  ;;  %v8807_v47 = vadd.s32 1, %v2782_v16  ;;  %v5350_v52 = vadd.f32 %v5346_v27, %v5297_v62  ;;  %v2884_v43 = vrot.slane %v2877_v21, %v7191_v20 }
 0x1e3   : > { %10007 = vst [vmem:[#allocation26_spill] sm:$0xff] %v8803_v28  ;;  %v8810_v2 = vrot.slane %v2852_v39, %v7191_v20  ;;  %v2874_v48 = vsel %vm8789_vm15, %v2860_v59, 0.0  ;;  %v2888_v8 = vrot.slane %v2878_v26, %v7191_v20  ;;  %v2908_v53 = vrot.slane %v8674_v35, %v7188_v19 }
 0x1e4   : > { %v5443_v16 = vcombine.high %v8696_v5, %v8696_v5  ;;  %v5355_v60 = vpack.c.bf16 %v5350_v52, %v5349_v4  ;;  %vm8824_vm3 = vcmp.eq.s32.totalorder %v7176_v6, %v2884_v43  ;;  %v5468_v50 = vcombine.high %v8700_v46, %v8700_v46 }
 0x1e5   : > { %v5513_v32 = vcombine.high %v8703_v54, %v8703_v54  ;;  %vm8833_vm5 = vcmp.eq.s32.totalorder %v7176_v6, %v2888_v8  ;;  %v2909_v11 = vcombine.high %v2908_v53, %v2908_v53  ;;  %v2916_v5 = vrot.slane %v2908_v53, %v7188_v19 }
 0x1e6   : > { %v5450_v27 = vrot.slane %v5443_v16, %v7188_v19  ;;  %6401 = vmatpush3.bf16.msra.mxu0 %v5355_v60  ;;  %v5475_v63 = vrot.slane %v5468_v50, %v7188_v19  ;;  %v5586_v21 = vcombine.high %v8674_v35, %v8674_v35  ;;  %v2219_v15 = vrot.slane %v8456_v23, %v7188_v19 }
 0x1e7   : > { %v5520_v41 = vrot.slane %v5513_v32, %v7188_v19  ;;  %v8846_v62 = vrot.slane %v2909_v11, %v7188_v19  ;;  %v2924_v4 = vcombine.high %v2916_v5, %v2916_v5  ;;  %v2929_v39 = vrot.slane %v2916_v5, %v7191_v20  ;;  %6402 = vmatprep.subr.bf16.mxu0 %v9941_v25 }
 0x1e8   : > { %v5451_v59 = vcombine.high %v5450_v27, %v5450_v27  ;;  %v5458_v26 = vrot.slane %v5450_v27, %v7188_v19  ;;  %v5476_v52 = vcombine.high %v5475_v63, %v5475_v63  ;;  %v8852_v43 = vrot.slane %v5475_v63, %v7188_v19 }
 0x1e9   : > { %v5521_v8 = vcombine.high %v5520_v41, %v5520_v41  ;;  %v2933_v53 = vrot.slane %v8846_v62, %v7191_v20  ;;  %v8859_v16 = vrot.slane %v2924_v4, %v7191_v20  ;;  %v2946_v60 = vsel %vm8824_vm3, %v2929_v39, 0.0 }
 0x1ea   : > { %v8863_v50 = vadd.f32 %v2946_v60, %v2873_v44  ;;  %v5465_v32 = vrot.slane %v5451_v59, %v7188_v19  ;;  %v5466_v11 = vcombine.high %v5458_v26, %v5458_v26  ;;  %v5490_v5 = vrot.slane %v5476_v52, %v7188_v19 }
 0x1eb   : > { %10012 = vst [vmem:[#allocation27_spill] sm:$0xff] %v8859_v16  ;;  %v2947_v27 = vsel %vm8833_vm5, %v2933_v53, 0.0  ;;  %v8871_v63 = vcombine.high %v8852_v43, %v8852_v43  ;;  %v5496_v4 = vrot.slane %v5458_v26, %v7191_v20  ;;  %v5528_v42 = vrot.slane %v5520_v41, %v7188_v19 }
 0x1ec   : > { %10013 = vst [vmem:[#allocation28_spill] sm:$0xff] %v8863_v50  ;;  %v8875_v31 = vadd.f32 %v2947_v27, %v2874_v48  ;;  %v5467_v44 = vcombine.high %v5465_v32, %v5465_v32  ;;  %v8877_v39 = vcombine.high %v5490_v5, %v5490_v5  ;;  %v5500_v59 = vrot.slane %v5465_v32, %v7191_v20 }
 0x1ed   : > { %v5504_v52 = vrot.slane %v5466_v11, %v7191_v20  ;;  %vm5509_vm6 = vcmp.eq.s32.totalorder %v7176_v6, %v5496_v4  ;;  %v5535_v7 = vrot.slane %v5521_v8, %v7188_v19  ;;  %v5536_v53 = vcombine.high %v5528_v42, %v5528_v42 }
 0x1ee   : > { %10014 = vst [vmem:[#allocation29_spill] sm:$0xff] %v8875_v31  ;;  %v5508_v60 = vrot.slane %v5467_v44, %v7191_v20  ;;  %vm5510_vm8 = vcmp.eq.s32.totalorder %v7176_v6, %v5500_v59  ;;  %v5541_v41 = vrot.slane %v5528_v42, %v7191_v20  ;;  %v5562_v48 = vadd.s32 1, %v5458_v26 }
 0x1ef   : > { %vm8887_vm9 = vcmp.eq.s32.totalorder %v7176_v6, %v5504_v52  ;;  %v5537_v35 = vcombine.high %v5535_v7, %v5535_v7  ;;  %v5545_v30 = vrot.slane %v5535_v7, %v7191_v20  ;;  %v5549_v4 = vrot.slane %v5536_v53, %v7191_v20 }
 0x1f0   : > { %vm8894_vm10 = vcmp.eq.s32.totalorder %v7176_v6, %v5508_v60  ;;  %v5558_v24 = vsel %vm5509_vm6, %v5541_v41, 0.0  ;;  %v5563_v59 = vadd.s32 1, %v5465_v32  ;;  %v5564_v54 = vadd.s32 1, %v5466_v11 }
 0x1f1   : > { %v5553_v42 = vrot.slane %v5537_v35, %v7191_v20  ;;  %v5559_v26 = vsel %vm5510_vm8, %v5545_v30, 0.0  ;;  %v5560_v52 = vsel %vm8887_vm9, %v5549_v4, 0.0  ;;  %v5565_v31 = vadd.s32 1, %v5467_v44 }
 0x1f2   : > { %v5569_v50 = vrot.slane %v5562_v48, %v7191_v20  ;;  %v5573_v7 = vrot.slane %v5563_v59, %v7191_v20  ;;  %v5577_v53 = vrot.slane %v5564_v54, %v7191_v20  ;;  %v5593_v60 = vrot.slane %v5586_v21, %v7188_v19 }
 0x1f3   : > { %v5561_v41 = vsel %vm8894_vm10, %v5553_v42, 0.0  ;;  %v5581_v32 = vrot.slane %v5565_v31, %v7191_v20  ;;  %v5642_v30 = vrot.slane %v8852_v43, %v7191_v20  ;;  %v5646_v35 = vrot.slane %v5490_v5, %v7191_v20 }
 0x1f4   : > { %vm8912_vm11 = vcmp.eq.s32.totalorder %v7176_v6, %v5569_v50  ;;  %vm8917_vm12 = vcmp.eq.s32.totalorder %v7176_v6, %v5573_v7  ;;  %vm8922_vm13 = vcmp.eq.s32.totalorder %v7176_v6, %v5577_v53  ;;  %v5594_v31 = vcombine.high %v5593_v60, %v5593_v60 }
 0x1f5   : > { %vm8927_vm14 = vcmp.eq.s32.totalorder %v7176_v6, %v5581_v32  ;;  %v5601_v50 = vrot.slane %v5593_v60, %v7188_v19  ;;  %v5650_v48 = vrot.slane %v8871_v63, %v7191_v20  ;;  %v5654_v27 = vrot.slane %v8877_v39, %v7191_v20 }
 0x1f6   : > { %v5608_v4 = vrot.slane %v5594_v31, %v7188_v19  ;;  %vm8938_vm15 = vcmp.eq.s32.totalorder %v7176_v6, %v5642_v30  ;;  %vm8943_vm3 = vcmp.eq.s32.totalorder %v7176_v6, %v5646_v35  ;;  %v10031_v42 = vcombine.high %v8709_v17, %v8709_v17 }
 0x1f7   : > { %v5609_v53 = vcombine.high %v5601_v50, %v5601_v50  ;;  %v5614_v60 = vrot.slane %v5601_v50, %v7191_v20  ;;  %vm8953_vm5 = vcmp.eq.s32.totalorder %v7176_v6, %v5650_v48  ;;  %vm8958_vm6 = vcmp.eq.s32.totalorder %v7176_v6, %v5654_v27 }
 0x1f8   : > { %v5666_v7 = vrot.slane %v10031_v42, %v7188_v19  ;;  %v5610_v35 = vcombine.high %v5608_v4, %v5608_v4  ;;  %v5618_v31 = vrot.slane %v5608_v4, %v7191_v20  ;;  %v5708_v48 = vadd.s32 1, %v8852_v43 }
 0x1f9   : > { %v5622_v42 = vrot.slane %v5609_v53, %v7191_v20  ;;  %v5631_v50 = vsel %vm8912_vm11, %v5614_v60, 0.0  ;;  %v5709_v49 = vadd.s32 1, %v5490_v5  ;;  %v5732_v8 = vcombine.high %v8711_v22, %v8711_v22 }
 0x1fa   : > { %v5667_v28 = vcombine.high %v5666_v7, %v5666_v7  ;;  %v5674_v17 = vrot.slane %v5666_v7, %v7188_v19  ;;  %v5626_v16 = vrot.slane %v5610_v35, %v7191_v20  ;;  %v5632_v27 = vsel %vm8917_vm12, %v5618_v31, 0.0 }
 0x1fb   : > { %v8971_v1 = vadd.f32 %v5631_v50, %v5558_v24  ;;  %v5633_v7 = vsel %vm8922_vm13, %v5622_v42, 0.0  ;;  %v8976_v14 = vadd.f32 %v5632_v27, %v5559_v26  ;;  %v5710_v26 = vadd.s32 1, %v8871_v63 }
 0x1fc   : > { %v5681_v4 = vrot.slane %v5667_v28, %v7188_v19  ;;  %v5682_v53 = vcombine.high %v5674_v17, %v5674_v17  ;;  %v5687_v11 = vrot.slane %v5674_v17, %v7191_v20  ;;  %v5634_v43 = vsel %vm8927_vm14, %v5626_v16, 0.0 }
 0x1fd   : > { %v8981_v5 = vadd.f32 %v5633_v7, %v5560_v52  ;;  %v8984_v24 = vadd.f32 %v5634_v43, %v5561_v41  ;;  %v5711_v16 = vadd.s32 1, %v8877_v39  ;;  %v5715_v52 = vrot.slane %v5708_v48, %v7191_v20 }
 0x1fe   : > { %v5683_v60 = vcombine.high %v5681_v4, %v5681_v4  ;;  %v5691_v54 = vrot.slane %v5681_v4, %v7191_v20  ;;  %v5695_v28 = vrot.slane %v5682_v53, %v7191_v20  ;;  %v5704_v21 = vsel %vm8938_vm15, %v5687_v11, 0.0 }
 0x1ff   : > { %v5719_v44 = vrot.slane %v5709_v49, %v7191_v20  ;;  %v5723_v31 = vrot.slane %v5710_v26, %v7191_v20  ;;  %v5727_v59 = vrot.slane %v5711_v16, %v7191_v20  ;;  %vm9005_vm8 = vcmp.eq.s32.totalorder %v7176_v6, %v5715_v52 }
 0x200   : > { %v5699_v35 = vrot.slane %v5683_v60, %v7191_v20  ;;  %v5705_v17 = vsel %vm8943_vm3, %v5691_v54, 0.0  ;;  %v5706_v41 = vsel %vm8953_vm5, %v5695_v28, 0.0  ;;  %v5168_v32 = vcombine.high %v8728_v38, %v8728_v38 }
 0x201   : > { %vm9012_vm9 = vcmp.eq.s32.totalorder %v7176_v6, %v5719_v44  ;;  %vm9017_vm10 = vcmp.eq.s32.totalorder %v7176_v6, %v5723_v31  ;;  %v5739_v30 = vrot.slane %v5732_v8, %v7188_v19  ;;  %v5169_v50 = vcombine.high %v8735_v61, %v8735_v61 }
 0x202   : > { %v5707_v63 = vsel %vm8958_vm6, %v5699_v35, 0.0  ;;  %vm9025_vm11 = vcmp.eq.s32.totalorder %v7176_v6, %v5727_v59  ;;  %v5181_v38 = vrot.slane %v5168_v32, %v7191_v20  ;;  %v5217_v27 = vcombine.high %v8740_v12, %v8740_v12 }
 0x203   : > { %v5218_v4 = vcombine.high %v8752_v33, %v8752_v33  ;;  %v5740_v7 = vcombine.high %v5739_v30, %v5739_v30  ;;  %v5747_v53 = vrot.slane %v5739_v30, %v7188_v19  ;;  %v5185_v11 = vrot.slane %v5169_v50, %v7191_v20 }
 0x204   : > { %v5270_v61 = vcombine.high %v8743_v36, %v8743_v36  ;;  %v5192_v43 = vmul.f32 %v5181_v38, %v8623_v13  ;;  %v5230_v60 = vrot.slane %v5217_v27, %v7191_v20  ;;  %v5271_v12 = vcombine.high %v8757_v9, %v8757_v9 }
 0x205   : > { %v5234_v54 = vrot.slane %v5218_v4, %v7191_v20  ;;  %v5754_v28 = vrot.slane %v5740_v7, %v7188_v19  ;;  %v5755_v33 = vcombine.high %v5747_v53, %v5747_v53  ;;  %v5760_v26 = vrot.slane %v5747_v53, %v7191_v20 }
 0x206   : > { %v5193_v35 = vmul.f32 %v5185_v11, %v8623_v13  ;;  %v5241_v16 = vmul.f32 %v5230_v60, %v8632_v10  ;;  %v5283_v52 = vrot.slane %v5270_v61, %v7191_v20  ;;  %v5287_v44 = vrot.slane %v5271_v12, %v7191_v20 }
 0x207   : > { %v5242_v36 = vmul.f32 %v5234_v54, %v8632_v10  ;;  %v5756_v31 = vcombine.high %v5754_v28, %v5754_v28  ;;  %v5764_v8 = vrot.slane %v5754_v28, %v7191_v20  ;;  %v5768_v9 = vrot.slane %v5755_v33, %v7191_v20 }
 0x208   : > { %v5777_v59 = vsel %vm9005_vm8, %v5760_v26, 0.0  ;;  %v5245_v30 = vadd.f32 %v5241_v16, %v5192_v43  ;;  %v5294_v13 = vmul.f32 %v5283_v52, %v8637_v3  ;;  %v5295_v4 = vmul.f32 %v5287_v44, %v8637_v3 }
 0x209   : > { %v5781_v32 = vadd.f32 %v5777_v59, %v5704_v21  ;;  %v5246_v50 = vadd.f32 %v5242_v36, %v5193_v35  ;;  %v5772_v38 = vrot.slane %v5756_v31, %v7191_v20  ;;  %v5778_v10 = vsel %vm9012_vm9, %v5764_v8, 0.0 }
 0x20a   : > { %v5779_v27 = vsel %vm9017_vm10, %v5768_v9, 0.0  ;;  %v5782_v7 = vadd.f32 %v5778_v10, %v5705_v17  ;;  %v5298_v11 = vadd.f32 %v5294_v13, %v5245_v30  ;;  %v5323_v43 = vcombine.high %v8762_v0, %v8762_v0 }
 0x20b   : > { %v5783_v53 = vadd.f32 %v5779_v27, %v5706_v41  ;;  %v5792_v39 = vrot.slane %v5781_v32, %v7188_v19  ;;  %v5780_v21 = vsel %vm9025_vm11, %v5772_v38, 0.0  ;;  %v5299_v61 = vadd.f32 %v5295_v4, %v5246_v50 }
 0x20c   : > { %v5324_v49 = vcombine.high %v8773_v55, %v8773_v55  ;;  %v5784_v60 = vadd.f32 %v5780_v21, %v5707_v63  ;;  %v5841_v3 = vrot.slane %v5782_v7, %v7188_v19  ;;  %v5336_v41 = vrot.slane %v5323_v43, %v7191_v20 }
 0x20d   : > { %v5793_v42 = vcombine.high %v5792_v39, %v5792_v39  ;;  %v5800_v54 = vrot.slane %v5792_v39, %v7188_v19  ;;  %v5894_v17 = vrot.slane %v5783_v53, %v7188_v19  ;;  %v9075_v12 = vrot.slane %v8447_v37, %v7188_v19 }
 0x20e   : > { %v5340_v48 = vrot.slane %v5324_v49, %v7191_v20  ;;  %v5842_v63 = vcombine.high %v5841_v3, %v5841_v3  ;;  %v5849_v28 = vrot.slane %v5841_v3, %v7188_v19  ;;  %v5947_v35 = vrot.slane %v5784_v60, %v7188_v19 }
 0x20f   : > { %v5807_v0 = vrot.slane %v5793_v42, %v7188_v19  ;;  %v5813_v55 = vrot.slane %v5800_v54, %v7191_v20  ;;  %v5895_v33 = vcombine.high %v5894_v17, %v5894_v17  ;;  %v5902_v26 = vrot.slane %v5894_v17, %v7188_v19 }
 0x210   : > { %v5347_v16 = vmul.f32 %v5336_v41, %v8640_v18  ;;  %v5856_v37 = vrot.slane %v5842_v63, %v7188_v19  ;;  %v5862_v44 = vrot.slane %v5849_v28, %v7191_v20  ;;  %v5948_v9 = vcombine.high %v5947_v35, %v5947_v35 }
 0x211   : > { %v5817_v36 = vrot.slane %v5807_v0, %v7191_v20  ;;  %v5830_v52 = vmul.f32 %v5813_v55, %v8971_v1  ;;  %v5909_v31 = vrot.slane %v5895_v33, %v7188_v19  ;;  %v5915_v8 = vrot.slane %v5902_v26, %v7191_v20 }
 0x212   : > { %v5955_v59 = vrot.slane %v5947_v35, %v7188_v19  ;;  %v5866_v30 = vrot.slane %v5856_v37, %v7191_v20  ;;  %v5879_v50 = vmul.f32 %v5862_v44, %v8976_v14  ;;  %v5348_v13 = vmul.f32 %v5340_v48, %v8640_v18 }
 0x213   : > { %v5831_v32 = vmul.f32 %v5817_v36, %v8971_v1  ;;  %v5919_v38 = vrot.slane %v5909_v31, %v7191_v20  ;;  %v5932_v10 = vmul.f32 %v5915_v8, %v8981_v5  ;;  %v5962_v27 = vrot.slane %v5948_v9, %v7188_v19  ;;  %v6311_v36 = vld [vmem:[%s7926_s24 + $0x8] sm:$0xf] }
 0x214   : > { %v5968_v4 = vrot.slane %v5955_v59, %v7191_v20  ;;  %v5880_v7 = vmul.f32 %v5866_v30, %v8976_v14  ;;  %v5883_v53 = vadd.f32 %v5879_v50, %v5830_v52  ;;  %v5351_v39 = vadd.f32 %v5347_v16, %v5298_v11 }
 0x215   : > { %v5352_v21 = vadd.f32 %v5348_v13, %v5299_v61  ;;  %v5933_v43 = vmul.f32 %v5919_v38, %v8981_v5  ;;  %v5972_v49 = vrot.slane %v5962_v27, %v7191_v20  ;;  %v5808_v60 = vcombine.high %v5800_v54, %v5800_v54 }
 0x216   : > { %v5985_v18 = vmul.f32 %v5968_v4, %v8984_v24  ;;  %v5884_v42 = vadd.f32 %v5880_v7, %v5831_v32  ;;  %v5936_v3 = vadd.f32 %v5932_v10, %v5883_v53  ;;  %v5809_v41 = vcombine.high %v5807_v0, %v5807_v0 }
 0x217   : > { %v5356_v17 = vpack.c.bf16 %v5352_v21, %v5351_v39  ;;  %v5986_v48 = vmul.f32 %v5972_v49, %v8984_v24  ;;  %v5821_v55 = vrot.slane %v5808_v60, %v7191_v20  ;;  %v5857_v63 = vcombine.high %v5849_v28, %v5849_v28 }
 0x218   : > { %v5858_v33 = vcombine.high %v5856_v37, %v5856_v37  ;;  %v5937_v11 = vadd.f32 %v5933_v43, %v5884_v42  ;;  %v5989_v61 = vadd.f32 %v5985_v18, %v5936_v3  ;;  %v5825_v35 = vrot.slane %v5809_v41, %v7191_v20 }
 0x219   : > { %6403 = vmatpush3.bf16.msra.mxu0 %v5356_v17  ;;  %v5910_v16 = vcombine.high %v5902_v26, %v5902_v26  ;;  %v5832_v52 = vmul.f32 %v5821_v55, %v8971_v1  ;;  %v5870_v54 = vrot.slane %v5857_v63, %v7191_v20  ;;  %v5911_v0 = vcombine.high %v5909_v31, %v5909_v31 }
 0x21a   : > { %v5874_v44 = vrot.slane %v5858_v33, %v7191_v20  ;;  %6408 = vmatprep.subr.bf16.mxu0 %v9941_v25  ;;  %v5990_v8 = vadd.f32 %v5986_v48, %v5937_v11  ;;  %v5833_v28 = vmul.f32 %v5825_v35, %v8971_v1  ;;  %v5963_v9 = vcombine.high %v5955_v59, %v5955_v59 }
 0x21b   : > { %v5923_v37 = vrot.slane %v5910_v16, %v7191_v20  ;;  %v5881_v32 = vmul.f32 %v5870_v54, %v8976_v14  ;;  %v5927_v30 = vrot.slane %v5911_v0, %v7191_v20  ;;  %v5964_v50 = vcombine.high %v5962_v27, %v5962_v27 }
 0x21c   : > { %v5882_v26 = vmul.f32 %v5874_v44, %v8976_v14  ;;  %6405 = vmatmul.mubr.msk.bf16.vlgmr.msra.gmra.mrb[4].mxu0 %vm4075_vm1, %v6311_v36  ;;  %v5995_v13 = vpack.c.bf16 %v5990_v8, %v5989_v61  ;;  %v5976_v38 = vrot.slane %v5963_v9, %v7191_v20  ;;  %v2029_v1 = vcombine.high %v9075_v12, %v9075_v12 }
 0x21d   : > { %v5934_v31 = vmul.f32 %v5923_v37, %v8981_v5  ;;  %6416 = vmatprep.mubr.msk.bf16.mxu0 %vm6816_vm0, %v9941_v25  ;;  %v5885_v59 = vadd.f32 %v5881_v32, %v5832_v52  ;;  %v5935_v14 = vmul.f32 %v5927_v30, %v8981_v5  ;;  %v5980_v4 = vrot.slane %v5964_v50, %v7191_v20  ;;  %v6314_v52 = vld [vmem:[%s7926_s24 + $0xc] sm:$0xf] }
 0x21e   : > { %v5886_v10 = vadd.f32 %v5882_v26, %v5833_v28  ;;  %6421 = vmatpush3.bf16.msra.mxu1 %v5995_v13  ;;  %v5987_v27 = vmul.f32 %v5976_v38, %v8984_v24  ;;  %v2036_v7 = vrot.slane %v9075_v12, %v7188_v19  ;;  %v2043_v53 = vrot.slane %v2029_v1, %v7188_v19 }
 0x21f   : > { %v2061_v39 = vrot.slane %v8490_v45, %v7191_v20  ;;  %6422 = vmatprep.subr.bf16.mxu1 %v9941_v25  ;;  %v5938_v21 = vadd.f32 %v5934_v31, %v5885_v59  ;;  %v5988_v49 = vmul.f32 %v5980_v4, %v8984_v24  ;;  %v2118_v5 = vadd.s32 1, %v8490_v45 }
 0x220   : > { %v5939_v43 = vadd.f32 %v5935_v14, %v5886_v10  ;;  %v2044_v18 = vcombine.high %v2036_v7, %v2036_v7  ;;  %v2045_v60 = vcombine.high %v2043_v53, %v2043_v53  ;;  %v2130_v12 = vrot.slane %v8501_v40, %v7191_v20 }
 0x221   : > { %vm9134_vm12 = vcmp.eq.s32.totalorder %v7176_v6, %v2061_v39  ;;  %v5991_v3 = vadd.f32 %v5987_v27, %v5938_v21  ;;  %v2134_v24 = vrot.slane %v2118_v5, %v7191_v20  ;;  %v10046_v45 = vcombine.high %v8464_v34, %v8464_v34 }
 0x222   : > { %v5992_v17 = vadd.f32 %v5988_v49, %v5939_v43  ;;  %v2114_v41 = vsel %vm9134_vm12, %v8505_v57, 0.0  ;;  %vm2137_vm13 = vcmp.eq.s32.totalorder %v7176_v6, %v2130_v12  ;;  %v2195_v55 = vrot.slane %v2036_v7, %v7191_v20 }
 0x223   : > { %v2179_v48 = vrot.slane %v10046_v45, %v7191_v20  ;;  %v2199_v40 = vrot.slane %v2043_v53, %v7191_v20  ;;  %vm2138_vm14 = vcmp.eq.s32.totalorder %v7176_v6, %v2134_v24  ;;  %v2186_v33 = vsel %vm2137_vm13, %v8530_v29, 0.0 }
 0x224   : > { %v5996_v63 = vpack.c.bf16 %v5992_v17, %v5991_v3  ;;  %v2203_v57 = vrot.slane %v2044_v18, %v7191_v20  ;;  %v10047_v61 = vsel %vm8494_vm7, %v8486_v51, 0.0  ;;  %v2207_v34 = vrot.slane %v2045_v60, %v7191_v20 }
 0x225   : > { %v2187_v11 = vsel %vm2138_vm14, %v2179_v48, 0.0  ;;  %v9158_v35 = vadd.f32 %v2186_v33, %v10047_v61  ;;  %vm9162_vm15 = vcmp.eq.s32.totalorder %v7176_v6, %v2195_v55  ;;  %vm9169_vm3 = vcmp.eq.s32.totalorder %v7176_v6, %v2199_v40 }
 0x226   : > { %6423 = vmatpush3.bf16.msra.mxu1 %v5996_v63  ;;  %v9166_v36 = vadd.f32 %v2187_v11, %v2114_v41  ;;  %vm9174_vm5 = vcmp.eq.s32.totalorder %v7176_v6, %v2203_v57  ;;  %vm9183_vm7 = vcmp.eq.s32.totalorder %v7176_v6, %v2207_v34  ;;  %v2261_v44 = vadd.s32 1, %v2036_v7 }
 0x227   : > { %6428 = vmatprep.subr.bf16.mxu1 %v9941_v25  ;;  %v2262_v0 = vadd.s32 1, %v2043_v53  ;;  %v2263_v8 = vadd.s32 1, %v2044_v18  ;;  %v2220_v28 = vcombine.high %v2219_v15, %v2219_v15  ;;  %v2227_v37 = vrot.slane %v2219_v15, %v7188_v19  ;;  %v10072_v53 = vld [vmem:[#allocation23_spill] sm:$0xff] }
 0x228   : > { %v2264_v9 = vadd.s32 1, %v2045_v60  ;;  %v2292_v32 = vrot.slane %v8458_v56, %v7188_v19  ;;  %v2268_v23 = vrot.slane %v2261_v44, %v7191_v20  ;;  %v2790_v50 = vrot.slane %v8700_v46, %v7188_v19 }
 0x229   : > { %v2272_v26 = vrot.slane %v2262_v0, %v7191_v20  ;;  %v2276_v30 = vrot.slane %v2263_v8, %v7191_v20  ;;  %6425 = vmatmul.mubr.msk.bf16.vlgmr.msra.gmra.mrb[4].mxu1 %vm4075_vm1, %v6314_v52  ;;  %v2234_v13 = vrot.slane %v2220_v28, %v7188_v19  ;;  %v2235_v31 = vcombine.high %v2227_v37, %v2227_v37 }
 0x22a   : > { %v2240_v38 = vrot.slane %v2227_v37, %v7191_v20  ;;  %v2280_v1 = vrot.slane %v2264_v9, %v7191_v20  ;;  %6436 = vmatprep.mubr.msk.bf16.mxu1 %vm6816_vm0, %v9941_v25  ;;  %vm9202_vm6 = vcmp.eq.s32.totalorder %v7176_v6, %v2268_v23  ;;  %v2293_v10 = vcombine.high %v2292_v32, %v2292_v32 }
 0x22b   : > { %vm9207_vm1 = vcmp.eq.s32.totalorder %v7176_v6, %v2272_v26  ;;  %vm9212_vm8 = vcmp.eq.s32.totalorder %v7176_v6, %v2276_v30  ;;  %v2236_v14 = vcombine.high %v2234_v13, %v2234_v13  ;;  %v2244_v4 = vrot.slane %v2234_v13, %v7191_v20 }
 0x22c   : > { %v2248_v27 = vrot.slane %v2235_v31, %v7191_v20  ;;  %v2257_v7 = vsel %vm9162_vm15, %v2240_v38, 0.0  ;;  %vm9221_vm0 = vcmp.eq.s32.totalorder %v7176_v6, %v2280_v1  ;;  %v2300_v39 = vrot.slane %v2292_v32, %v7188_v19 }
 0x22d   : > { %v2307_v21 = vrot.slane %v2293_v10, %v7188_v19  ;;  %v2791_v43 = vcombine.high %v2790_v50, %v2790_v50  ;;  %v2252_v49 = vrot.slane %v2236_v14, %v7191_v20  ;;  %v2258_v5 = vsel %vm9169_vm3, %v2244_v4, 0.0  ;;  %v10071_v4 = vld [vmem:[#allocation22_spill] sm:$0xff] }
 0x22e   : > { %v2259_v18 = vsel %vm9174_vm5, %v2248_v27, 0.0  ;;  %v9233_v60 = vrot.slane %v2790_v50, %v7188_v19  ;;  %v2308_v42 = vcombine.high %v2300_v39, %v2300_v39  ;;  %v2313_v3 = vrot.slane %v2300_v39, %v7191_v20 }
 0x22f   : > { %v2309_v12 = vcombine.high %v2307_v21, %v2307_v21  ;;  %v2317_v17 = vrot.slane %v2307_v21, %v7191_v20  ;;  %v2260_v41 = vsel %vm9183_vm7, %v2252_v49, 0.0  ;;  %v9240_v24 = vrot.slane %v2791_v43, %v7188_v19 }
 0x230   : > { %v9244_v45 = vcombine.high %v9233_v60, %v9233_v60  ;;  %v2823_v48 = vrot.slane %v8746_v58, %v7191_v20  ;;  %v2321_v55 = vrot.slane %v2308_v42, %v7191_v20  ;;  %v2330_v63 = vsel %vm9202_vm6, %v2313_v3, 0.0  ;;  %v10073_v3 = vld [vmem:[#allocation27_spill] sm:$0xff] }
 0x231   : > { %v2325_v40 = vrot.slane %v2309_v12, %v7191_v20  ;;  %v2331_v33 = vsel %vm9207_vm1, %v2317_v17, 0.0  ;;  %v9254_v57 = vadd.f32 %v2330_v63, %v2257_v7  ;;  %v9260_v61 = vcombine.high %v9240_v24, %v9240_v24 }
 0x232   : > { %v9256_v11 = vadd.f32 %v2331_v33, %v2258_v5  ;;  %vm9263_vm9 = vcmp.eq.s32.totalorder %v7176_v6, %v2823_v48  ;;  %v2332_v16 = vsel %vm9212_vm8, %v2321_v55, 0.0  ;;  %v2880_v15 = vadd.s32 1, %v8746_v58 }
 0x233   : > { %v2333_v29 = vsel %vm9221_vm0, %v2325_v40, 0.0  ;;  %v2876_v51 = vsel %vm9263_vm9, %v8810_v2, 0.0  ;;  %v9275_v52 = vadd.f32 %v2332_v16, %v2259_v18  ;;  %v2346_v44 = vrot.slane %v9254_v57, %v7188_v19  ;;  %v10075_v16 = vld [vmem:[#allocation26_spill] sm:$0xff] }
 0x234   : > { %v9277_v54 = vadd.f32 %v2333_v29, %v2260_v41  ;;  %v2444_v0 = vrot.slane %v9256_v11, %v7188_v19  ;;  %v2892_v8 = vrot.slane %v8807_v47, %v7191_v20  ;;  %v2896_v28 = vrot.slane %v2880_v15, %v7191_v20 }
 0x235   : > { %v10066_v2 = vcombine.high %v8846_v62, %v8846_v62  ;;  %v2957_v37 = vrot.slane %v9233_v60, %v7191_v20  ;;  %v2354_v9 = vcombine.high %v2346_v44, %v2346_v44  ;;  %v9293_v32 = vrot.slane %v2346_v44, %v7188_v19 }
 0x236   : > { %v2452_v23 = vcombine.high %v2444_v0, %v2444_v0  ;;  %v9296_v26 = vrot.slane %v2444_v0, %v7188_v19  ;;  %v2550_v47 = vrot.slane %v9275_v52, %v7188_v19  ;;  %v2656_v30 = vrot.slane %v9277_v54, %v7188_v19 }
 0x237   : > { %v2941_v58 = vrot.slane %v10066_v2, %v7191_v20  ;;  %vm9303_vm10 = vcmp.eq.s32.totalorder %v7176_v6, %v2892_v8  ;;  %vm9308_vm11 = vcmp.eq.s32.totalorder %v7176_v6, %v2896_v28  ;;  %v9313_v13 = vrot.slane %v2354_v9, %v7188_v19 }
 0x238   : > { %v2391_v31 = vrot.slane %v9293_v32, %v7191_v20  ;;  %v9318_v38 = vrot.slane %v2452_v23, %v7188_v19  ;;  %v2489_v1 = vrot.slane %v9296_v26, %v7191_v20  ;;  %v2558_v56 = vcombine.high %v2550_v47, %v2550_v47 }
 0x239   : > { %v9323_v59 = vrot.slane %v2550_v47, %v7188_v19  ;;  %v2664_v46 = vcombine.high %v2656_v30, %v2656_v30  ;;  %v9326_v10 = vrot.slane %v2656_v30, %v7188_v19  ;;  %v2395_v14 = vrot.slane %v9313_v13, %v7191_v20 }
 0x23a   : > { %v2428_v27 = vmul.f32 %v2391_v31, %v10071_v4  ;;  %v2493_v7 = vrot.slane %v9318_v38, %v7191_v20  ;;  %v2526_v39 = vmul.f32 %v2489_v1, %v10072_v53  ;;  %v9335_v21 = vrot.slane %v2558_v56, %v7188_v19 }
 0x23b   : > { %v2595_v43 = vrot.slane %v9323_v59, %v7191_v20  ;;  %v9340_v49 = vrot.slane %v2664_v46, %v7188_v19  ;;  %v2701_v5 = vrot.slane %v9326_v10, %v7191_v20  ;;  %v2429_v18 = vmul.f32 %v2395_v14, %v10071_v4 }
 0x23c   : > { %v2527_v42 = vmul.f32 %v2493_v7, %v10072_v53  ;;  %v2534_v12 = vadd.f32 %v2526_v39, %v2428_v27  ;;  %v2948_v17 = vsel %vm9303_vm10, %v10073_v3, 0.0  ;;  %v2599_v41 = vrot.slane %v9335_v21, %v7191_v20 }
 0x23d   : > { %v2632_v48 = vmul.f32 %v2595_v43, %v9158_v35  ;;  %v2705_v55 = vrot.slane %v9340_v49, %v7191_v20  ;;  %v2738_v40 = vmul.f32 %v2701_v5, %v9166_v36  ;;  %v2949_v33 = vsel %vm9308_vm11, %v2941_v58, 0.0 }
 0x23e   : > { %v2535_v63 = vadd.f32 %v2527_v42, %v2429_v18  ;;  %v10076_v29 = vsel %vm8794_vm2, %v10075_v16, 0.0  ;;  %v2961_v44 = vrot.slane %v9240_v24, %v7191_v20  ;;  %v2633_v0 = vmul.f32 %v2599_v41, %v9158_v35 }
 0x23f   : > { %v9361_v15 = vadd.f32 %v2948_v17, %v10076_v29  ;;  %v2640_v8 = vadd.f32 %v2632_v48, %v2534_v12  ;;  %v2739_v28 = vmul.f32 %v2705_v55, %v9166_v36  ;;  %v9367_v2 = vadd.f32 %v2949_v33, %v2876_v51  ;;  %v10081_v51 = vld [vmem:[#allocation24_spill] sm:$0xff] }
 0x240   : > { %v2965_v9 = vrot.slane %v9244_v45, %v7191_v20  ;;  %v2969_v58 = vrot.slane %v9260_v61, %v7191_v20  ;;  %vm9374_vm2 = vcmp.eq.s32.totalorder %v7176_v6, %v2957_v37  ;;  %vm9379_vm12 = vcmp.eq.s32.totalorder %v7176_v6, %v2961_v44 }
 0x241   : > { %v2641_v30 = vadd.f32 %v2633_v0, %v2535_v63  ;;  %v2746_v62 = vadd.f32 %v2738_v40, %v2640_v8  ;;  %v2981_v50 = vrot.slane %v10081_v51, %v7188_v19  ;;  %v3023_v31 = vadd.s32 1, %v9233_v60 }
 0x242   : > { %vm9387_vm13 = vcmp.eq.s32.totalorder %v7176_v6, %v2965_v9  ;;  %vm9392_vm14 = vcmp.eq.s32.totalorder %v7176_v6, %v2969_v58  ;;  %v3024_v56 = vadd.s32 1, %v9240_v24  ;;  %v3025_v46 = vadd.s32 1, %v9244_v45 }
 0x243   : > { %v2747_v14 = vadd.f32 %v2739_v28, %v2641_v30  ;;  %v2982_v27 = vcombine.high %v2981_v50, %v2981_v50  ;;  %v2989_v7 = vrot.slane %v2981_v50, %v7188_v19  ;;  %v3026_v60 = vadd.s32 1, %v9260_v61 }
 0x244   : > { %v3030_v39 = vrot.slane %v3023_v31, %v7191_v20  ;;  %v3034_v43 = vrot.slane %v3024_v56, %v7191_v20  ;;  %v3038_v5 = vrot.slane %v3025_v46, %v7191_v20  ;;  %v3054_v18 = vrot.slane %v8711_v22, %v7188_v19 }
 0x245   : > { %v2756_v42 = vpack.c.bf16 %v2747_v14, %v2746_v62  ;;  %v2996_v24 = vrot.slane %v2982_v27, %v7188_v19  ;;  %v2997_v12 = vcombine.high %v2989_v7, %v2989_v7  ;;  %v3002_v45 = vrot.slane %v2989_v7, %v7191_v20 }
 0x246   : > { %v3042_v3 = vrot.slane %v3026_v60, %v7191_v20  ;;  %vm9409_vm15 = vcmp.eq.s32.totalorder %v7176_v6, %v3030_v39  ;;  %vm9414_vm3 = vcmp.eq.s32.totalorder %v7176_v6, %v3034_v43  ;;  %vm9419_vm5 = vcmp.eq.s32.totalorder %v7176_v6, %v3038_v5 }
 0x247   : > { %6409 = vmatpush3.bf16.msra.mxu0 %v2756_v42  ;;  %v2998_v41 = vcombine.high %v2996_v24, %v2996_v24  ;;  %v3006_v48 = vrot.slane %v2996_v24, %v7191_v20  ;;  %v3010_v55 = vrot.slane %v2997_v12, %v7191_v20  ;;  %v3019_v40 = vsel %vm9374_vm2, %v3002_v45, 0.0 }
 0x248   : > { %vm9428_vm7 = vcmp.eq.s32.totalorder %v7176_v6, %v3042_v3  ;;  %v3055_v33 = vcombine.high %v3054_v18, %v3054_v18  ;;  %v3062_v34 = vrot.slane %v3054_v18, %v7188_v19  ;;  %6410 = vmatprep.subr.bf16.mxu0 %v9941_v25  ;;  %v2384_v16 = vcombine.high %v9293_v32, %v9293_v32 }
 0x249   : > { %v3014_v29 = vrot.slane %v2998_v41, %v7191_v20  ;;  %v3020_v44 = vsel %vm9379_vm12, %v3006_v48, 0.0  ;;  %v3021_v0 = vsel %vm9387_vm13, %v3010_v55, 0.0  ;;  %v2386_v6 = vcombine.high %v9313_v13, %v9313_v13 }
 0x24a   : > { %v3069_v8 = vrot.slane %v3055_v33, %v7188_v19  ;;  %v3070_v28 = vcombine.high %v3062_v34, %v3062_v34  ;;  %v3075_v9 = vrot.slane %v3062_v34, %v7191_v20  ;;  %v2399_v58 = vrot.slane %v2384_v16, %v7191_v20 }
 0x24b   : > { %v3022_v32 = vsel %vm9392_vm14, %v3014_v29, 0.0  ;;  %v2403_v23 = vrot.slane %v2386_v6, %v7191_v20  ;;  %v2482_v47 = vcombine.high %v9296_v26, %v9296_v26  ;;  %v2484_v30 = vcombine.high %v9318_v38, %v9318_v38  ;;  %v10094_v29 = vld [vmem:[#allocation28_spill] sm:$0xff] }
 0x24c   : > { %v3071_v62 = vcombine.high %v3069_v8, %v3069_v8  ;;  %v3079_v13 = vrot.slane %v3069_v8, %v7191_v20  ;;  %v3083_v51 = vrot.slane %v3070_v28, %v7191_v20  ;;  %v3092_v50 = vsel %vm9409_vm15, %v3075_v9, 0.0 }
 0x24d   : > { %v9457_v31 = vadd.f32 %v3092_v50, %v3019_v40  ;;  %v2430_v1 = vmul.f32 %v2399_v58, %v10071_v4  ;;  %v2431_v37 = vmul.f32 %v2403_v23, %v10071_v4  ;;  %v2497_v56 = vrot.slane %v2482_v47, %v7191_v20  ;;  %v10095_v47 = vld [vmem:[#allocation29_spill] sm:$0xff] }
 0x24e   : > { %v3087_v26 = vrot.slane %v3071_v62, %v7191_v20  ;;  %v3093_v38 = vsel %vm9414_vm3, %v3079_v13, 0.0  ;;  %v3094_v46 = vsel %vm9419_vm5, %v3083_v51, 0.0  ;;  %v2501_v14 = vrot.slane %v2484_v30, %v7191_v20 }
 0x24f   : > { %v9468_v27 = vadd.f32 %v3093_v38, %v3020_v44  ;;  %v9470_v7 = vadd.f32 %v3094_v46, %v3021_v0  ;;  %v3108_v60 = vrot.slane %v9457_v31, %v7188_v19  ;;  %v2528_v39 = vmul.f32 %v2497_v56, %v10072_v53 }
 0x250   : > { %v3095_v43 = vsel %vm9428_vm7, %v3087_v26, 0.0  ;;  %v2529_v5 = vmul.f32 %v2501_v14, %v10072_v53  ;;  %v2588_v18 = vcombine.high %v9323_v59, %v9323_v59  ;;  %v2590_v42 = vcombine.high %v9335_v21, %v9335_v21 }
 0x251   : > { %v9482_v24 = vadd.f32 %v3095_v43, %v3022_v32  ;;  %v3116_v12 = vcombine.high %v3108_v60, %v3108_v60  ;;  %v3124_v45 = vrot.slane %v3108_v60, %v7188_v19  ;;  %v3206_v3 = vrot.slane %v9468_v27, %v7188_v19 }
 0x252   : > { %v3312_v61 = vrot.slane %v9470_v7, %v7188_v19  ;;  %v2536_v17 = vadd.f32 %v2528_v39, %v2430_v1  ;;  %v2537_v22 = vadd.f32 %v2529_v5, %v2431_v37  ;;  %v2603_v41 = vrot.slane %v2588_v18, %v7191_v20 }
 0x253   : > { %v3138_v59 = vrot.slane %v3116_v12, %v7188_v19  ;;  %v3153_v48 = vrot.slane %v3124_v45, %v7191_v20  ;;  %v3214_v21 = vcombine.high %v3206_v3, %v3206_v3  ;;  %v3222_v55 = vrot.slane %v3206_v3, %v7188_v19 }
 0x254   : > { %v3320_v40 = vcombine.high %v3312_v61, %v3312_v61  ;;  %v3328_v63 = vrot.slane %v3312_v61, %v7188_v19  ;;  %v3418_v33 = vrot.slane %v9482_v24, %v7188_v19  ;;  %v2607_v34 = vrot.slane %v2590_v42, %v7191_v20 }
 0x255   : > { %v3157_v16 = vrot.slane %v3138_v59, %v7191_v20  ;;  %v3190_v44 = vmul.f32 %v3153_v48, %v10094_v29  ;;  %v3236_v0 = vrot.slane %v3214_v21, %v7188_v19  ;;  %v3251_v6 = vrot.slane %v3222_v55, %v7191_v20 }
 0x256   : > { %v3342_v8 = vrot.slane %v3320_v40, %v7188_v19  ;;  %v3357_v28 = vrot.slane %v3328_v63, %v7191_v20  ;;  %v3426_v9 = vcombine.high %v3418_v33, %v3418_v33  ;;  %v3434_v58 = vrot.slane %v3418_v33, %v7188_v19 }
 0x257   : > { %v3191_v32 = vmul.f32 %v3157_v16, %v10094_v29  ;;  %v3255_v23 = vrot.slane %v3236_v0, %v7191_v20  ;;  %v3288_v30 = vmul.f32 %v3251_v6, %v10095_v47  ;;  %v2634_v62 = vmul.f32 %v2603_v41, %v9158_v35 }
 0x258   : > { %v3361_v13 = vrot.slane %v3342_v8, %v7191_v20  ;;  %v3394_v51 = vmul.f32 %v3357_v28, %v9361_v15  ;;  %v3448_v50 = vrot.slane %v3426_v9, %v7188_v19  ;;  %v3463_v1 = vrot.slane %v3434_v58, %v7191_v20 }
 0x259   : > { %v3289_v37 = vmul.f32 %v3255_v23, %v10095_v47  ;;  %v3296_v56 = vadd.f32 %v3288_v30, %v3190_v44  ;;  %v2635_v26 = vmul.f32 %v2607_v34, %v9158_v35  ;;  %v2642_v38 = vadd.f32 %v2634_v62, %v2536_v17 }
 0x25a   : > { %v3395_v46 = vmul.f32 %v3361_v13, %v9361_v15  ;;  %v3467_v14 = vrot.slane %v3448_v50, %v7191_v20  ;;  %v3500_v60 = vmul.f32 %v3463_v1, %v9367_v2  ;;  %v2694_v39 = vcombine.high %v9326_v10, %v9326_v10 }
 0x25b   : > { %v3297_v43 = vadd.f32 %v3289_v37, %v3191_v32  ;;  %v3402_v5 = vadd.f32 %v3394_v51, %v3296_v56  ;;  %v2643_v18 = vadd.f32 %v2635_v26, %v2537_v22  ;;  %v2696_v42 = vcombine.high %v9340_v49, %v9340_v49 }
 0x25c   : > { %v3501_v12 = vmul.f32 %v3467_v14, %v9367_v2  ;;  %v2709_v3 = vrot.slane %v2694_v39, %v7191_v20  ;;  %v3146_v61 = vcombine.high %v3124_v45, %v3124_v45  ;;  %v3148_v17 = vcombine.high %v3138_v59, %v3138_v59 }
 0x25d   : > { %v3403_v41 = vadd.f32 %v3395_v46, %v3297_v43  ;;  %v3508_v48 = vadd.f32 %v3500_v60, %v3402_v5  ;;  %v2713_v21 = vrot.slane %v2696_v42, %v7191_v20  ;;  %v3244_v40 = vcombine.high %v3222_v55, %v3222_v55 }
 0x25e   : > { %v2740_v33 = vmul.f32 %v2709_v3, %v9166_v36  ;;  %v3161_v10 = vrot.slane %v3146_v61, %v7191_v20  ;;  %v3165_v22 = vrot.slane %v3148_v17, %v7191_v20  ;;  %v3246_v34 = vcombine.high %v3236_v0, %v3236_v0 }
 0x25f   : > { %v3509_v16 = vadd.f32 %v3501_v12, %v3403_v41  ;;  %v2741_v49 = vmul.f32 %v2713_v21, %v9166_v36  ;;  %v3259_v44 = vrot.slane %v3244_v40, %v7191_v20  ;;  %v3350_v6 = vcombine.high %v3328_v63, %v3328_v63 }
 0x260   : > { %v2748_v45 = vadd.f32 %v2740_v33, %v2642_v38  ;;  %v3192_v59 = vmul.f32 %v3161_v10, %v10094_v29  ;;  %v3193_v28 = vmul.f32 %v3165_v22, %v10094_v29  ;;  %v3263_v55 = vrot.slane %v3246_v34, %v7191_v20 }
 0x261   : > { %v3518_v9 = vpack.c.bf16 %v3509_v16, %v3508_v48  ;;  %v2749_v32 = vadd.f32 %v2741_v49, %v2643_v18  ;;  %v3290_v23 = vmul.f32 %v3259_v44, %v10095_v47  ;;  %v3352_v30 = vcombine.high %v3342_v8, %v3342_v8 }
 0x262   : > { %v3291_v0 = vmul.f32 %v3263_v55, %v10095_v47  ;;  %v3365_v62 = vrot.slane %v3350_v6, %v7191_v20  ;;  %v3456_v13 = vcombine.high %v3434_v58, %v3434_v58  ;;  %v3458_v51 = vcombine.high %v3448_v50, %v3448_v50 }
 0x263   : > { %6429 = vmatpush3.bf16.msra.mxu1 %v3518_v9  ;;  %v2757_v63 = vpack.c.bf16 %v2749_v32, %v2748_v45  ;;  %v3298_v1 = vadd.f32 %v3290_v23, %v3192_v59  ;;  %v3369_v37 = vrot.slane %v3352_v30, %v7191_v20  ;;  %v2339_v56 = vcombine.high %v9254_v57, %v9254_v57 }
 0x264   : > { %6430 = vmatprep.subr.bf16.mxu1 %v9941_v25  ;;  %v3299_v26 = vadd.f32 %v3291_v0, %v3193_v28  ;;  %v3396_v38 = vmul.f32 %v3365_v62, %v9361_v15  ;;  %v3471_v8 = vrot.slane %v3456_v13, %v7191_v20  ;;  %v3475_v46 = vrot.slane %v3458_v51, %v7191_v20 }
 0x265   : > { %6411 = vmatpush3.bf16.msra.mxu0 %v2757_v63  ;;  %v3397_v58 = vmul.f32 %v3369_v37, %v9361_v15  ;;  %v2353_v50 = vrot.slane %v2339_v56, %v7188_v19  ;;  %v2437_v14 = vcombine.high %v9256_v11, %v9256_v11  ;;  %v2543_v57 = vcombine.high %v9275_v52, %v9275_v52 }
 0x266   : > { %v3404_v60 = vadd.f32 %v3396_v38, %v3298_v1  ;;  %v3502_v39 = vmul.f32 %v3471_v8, %v9367_v2  ;;  %v3503_v43 = vmul.f32 %v3475_v46, %v9367_v2  ;;  %6412 = vmatprep.subr.bf16.mxu0 %v9941_v25  ;;  %v2649_v5 = vcombine.high %v9277_v54, %v9277_v54 }
 0x267   : > { %v3405_v18 = vadd.f32 %v3397_v58, %v3299_v26  ;;  %v2355_v42 = vcombine.high %v2353_v50, %v2353_v50  ;;  %v9554_v12 = vrot.slane %v2353_v50, %v7188_v19  ;;  %v2451_v11 = vrot.slane %v2437_v14, %v7188_v19 }
 0x268   : > { %v3510_v3 = vadd.f32 %v3502_v39, %v3404_v60  ;;  %v2557_v52 = vrot.slane %v2543_v57, %v7188_v19  ;;  %v2663_v61 = vrot.slane %v2649_v5, %v7188_v19  ;;  %v3101_v17 = vcombine.high %v9457_v31, %v9457_v31 }
 0x269   : > { %v3511_v41 = vadd.f32 %v3503_v43, %v3405_v18  ;;  %v9562_v48 = vrot.slane %v2355_v42, %v7188_v19  ;;  %v2407_v54 = vrot.slane %v9554_v12, %v7191_v20  ;;  %v2453_v21 = vcombine.high %v2451_v11, %v2451_v11 }
 0x26a   : > { %v9567_v40 = vrot.slane %v2451_v11, %v7188_v19  ;;  %v2559_v33 = vcombine.high %v2557_v52, %v2557_v52  ;;  %v9570_v10 = vrot.slane %v2557_v52, %v7188_v19  ;;  %v2665_v22 = vcombine.high %v2663_v61, %v2663_v61 }
 0x26b   : > { %v3519_v34 = vpack.c.bf16 %v3511_v41, %v3510_v3  ;;  %v2411_v31 = vrot.slane %v9562_v48, %v7191_v20  ;;  %v2432_v16 = vmul.f32 %v2407_v54, %v10071_v4  ;;  %v9576_v49 = vrot.slane %v2453_v21, %v7188_v19 }
 0x26c   : > { %v2505_v44 = vrot.slane %v9567_v40, %v7191_v20  ;;  %v9581_v6 = vrot.slane %v2559_v33, %v7188_v19  ;;  %v2611_v45 = vrot.slane %v9570_v10, %v7191_v20  ;;  %v9586_v59 = vrot.slane %v2663_v61, %v7188_v19 }
 0x26d   : > { %6431 = vmatpush3.bf16.msra.mxu1 %v3519_v34  ;;  %v2433_v28 = vmul.f32 %v2411_v31, %v10071_v4  ;;  %v2509_v55 = vrot.slane %v9576_v49, %v7191_v20  ;;  %v9592_v9 = vrot.slane %v2665_v22, %v7188_v19  ;;  %v3115_v32 = vrot.slane %v3101_v17, %v7188_v19 }
 0x26e   : > { %6432 = vmatprep.subr.bf16.mxu1 %v9941_v25  ;;  %v2530_v23 = vmul.f32 %v2505_v44, %v10072_v53  ;;  %v2615_v30 = vrot.slane %v9581_v6, %v7191_v20  ;;  %v2636_v0 = vmul.f32 %v2611_v45, %v9158_v35  ;;  %v2717_v62 = vrot.slane %v9586_v59, %v7191_v20 }
 0x26f   : > { %v2531_v13 = vmul.f32 %v2509_v55, %v10072_v53  ;;  %v2721_v51 = vrot.slane %v9592_v9, %v7191_v20  ;;  %v3117_v63 = vcombine.high %v3115_v32, %v3115_v32  ;;  %v9606_v1 = vrot.slane %v3115_v32, %v7188_v19 }
 0x270   : > { %v2538_v37 = vadd.f32 %v2530_v23, %v2432_v16  ;;  %v2637_v56 = vmul.f32 %v2615_v30, %v9158_v35  ;;  %v2742_v26 = vmul.f32 %v2717_v62, %v9166_v36  ;;  %v3199_v38 = vcombine.high %v9468_v27, %v9468_v27 }
 0x271   : > { %v2539_v8 = vadd.f32 %v2531_v13, %v2433_v28  ;;  %v2743_v46 = vmul.f32 %v2721_v51, %v9166_v36  ;;  %v9614_v58 = vrot.slane %v3117_v63, %v7188_v19  ;;  %v3169_v50 = vrot.slane %v9606_v1, %v7191_v20 }
 0x272   : > { %v2644_v14 = vadd.f32 %v2636_v0, %v2538_v37  ;;  %v3213_v57 = vrot.slane %v3199_v38, %v7188_v19  ;;  %v3305_v60 = vcombine.high %v9470_v7, %v9470_v7  ;;  %v3411_v39 = vcombine.high %v9482_v24, %v9482_v24 }
 0x273   : > { %v2645_v43 = vadd.f32 %v2637_v56, %v2539_v8  ;;  %v3173_v27 = vrot.slane %v9614_v58, %v7191_v20  ;;  %v3194_v5 = vmul.f32 %v3169_v50, %v10094_v29  ;;  %v2385_v18 = vcombine.high %v9554_v12, %v9554_v12 }
 0x274   : > { %v2750_v42 = vadd.f32 %v2742_v26, %v2644_v14  ;;  %v3215_v11 = vcombine.high %v3213_v57, %v3213_v57  ;;  %v9629_v3 = vrot.slane %v3213_v57, %v7188_v19  ;;  %v3319_v52 = vrot.slane %v3305_v60, %v7188_v19 }
 0x275   : > { %v2751_v7 = vadd.f32 %v2743_v46, %v2645_v43  ;;  %v3195_v61 = vmul.f32 %v3173_v27, %v10094_v29  ;;  %v3425_v24 = vrot.slane %v3411_v39, %v7188_v19  ;;  %v2387_v17 = vcombine.high %v9562_v48, %v9562_v48 }
 0x276   : > { %v9637_v41 = vrot.slane %v3215_v11, %v7188_v19  ;;  %v3267_v12 = vrot.slane %v9629_v3, %v7191_v20  ;;  %v3321_v54 = vcombine.high %v3319_v52, %v3319_v52  ;;  %v9642_v21 = vrot.slane %v3319_v52, %v7188_v19 }
 0x277   : > { %v2758_v33 = vpack.c.bf16 %v2751_v7, %v2750_v42  ;;  %v3427_v22 = vcombine.high %v3425_v24, %v3425_v24  ;;  %v9645_v34 = vrot.slane %v3425_v24, %v7188_v19  ;;  %v2415_v31 = vrot.slane %v2385_v18, %v7191_v20  ;;  %v4157_v16 = vpop.f32.mrb[0].mxu0 }
 0x278   : > { %v3271_v48 = vrot.slane %v9637_v41, %v7191_v20  ;;  %v3292_v44 = vmul.f32 %v3267_v12, %v10095_v47  ;;  %v9652_v45 = vrot.slane %v3321_v54, %v7188_v19  ;;  %v3373_v28 = vrot.slane %v9642_v21, %v7191_v20  ;;  %6083 = vst [vmem:[%s9657_s30] sm:$0xff] %v4157_v16  ;;  %v6378_v55 = vpop.f32.mrb[1].mxu0 }
 0x279   : > { %6413 = vmatpush3.bf16.msra.mxu0 %v2758_v33  ;;  %v9661_v32 = vrot.slane %v3427_v22, %v7188_v19  ;;  %v3479_v23 = vrot.slane %v9645_v34, %v7191_v20  ;;  %v2419_v30 = vrot.slane %v2387_v17, %v7191_v20  ;;  %v2434_v0 = vmul.f32 %v2415_v31, %v10071_v4  ;;  %v4160_v62 = vpop.f32.mrb[2].mxu0 }
 0x27a   : > { %v3293_v13 = vmul.f32 %v3271_v48, %v10095_v47  ;;  %v3300_v51 = vadd.f32 %v3292_v44, %v3194_v5  ;;  %v3377_v63 = vrot.slane %v9652_v45, %v7191_v20  ;;  %v3398_v37 = vmul.f32 %v3373_v28, %v9361_v15  ;;  %6414 = vmatprep.subr.bf16.mxu0 %v9941_v25  ;;  %v6379_v19 = vpop.f32.mrb[3].mxu0 }
 0x27b   : > { %v3483_v56 = vrot.slane %v9661_v32, %v7191_v20  ;;  %v3504_v26 = vmul.f32 %v3479_v23, %v9367_v2  ;;  %v2435_v38 = vmul.f32 %v2419_v30, %v10071_v4  ;;  %v2483_v8 = vcombine.high %v9567_v40, %v9567_v40 }
 0x27c   : > { %v3301_v46 = vadd.f32 %v3293_v13, %v3195_v61  ;;  %v3399_v50 = vmul.f32 %v3377_v63, %v9361_v15  ;;  %v3406_v14 = vadd.f32 %v3398_v37, %v3300_v51  ;;  %v2485_v57 = vcombine.high %v9576_v49, %v9576_v49 }
 0x27d   : > { %v3505_v60 = vmul.f32 %v3483_v56, %v9367_v2  ;;  %v2513_v39 = vrot.slane %v2483_v8, %v7191_v20  ;;  %v2589_v43 = vcombine.high %v9570_v10, %v9570_v10  ;;  %v2591_v4 = vcombine.high %v9581_v6, %v9581_v6 }
 0x27e   : > { %v3407_v27 = vadd.f32 %v3399_v50, %v3301_v46  ;;  %v3512_v5 = vadd.f32 %v3504_v26, %v3406_v14  ;;  %v2517_v40 = vrot.slane %v2485_v57, %v7191_v20  ;;  %v2695_v18 = vcombine.high %v9586_v59, %v9586_v59 }
 0x27f   : > { %v2532_v49 = vmul.f32 %v2513_v39, %v10072_v53  ;;  %v2619_v42 = vrot.slane %v2589_v43, %v7191_v20  ;;  %v2623_v11 = vrot.slane %v2591_v4, %v7191_v20  ;;  %v2697_v10 = vcombine.high %v9592_v9, %v9592_v9  ;;  %v4797_v24 = vpop.f32.mrb[0].mxu1 }
 0x280   : > { %v3513_v52 = vadd.f32 %v3505_v60, %v3407_v27  ;;  %v2533_v6 = vmul.f32 %v2517_v40, %v10072_v53  ;;  %v2725_v7 = vrot.slane %v2695_v18, %v7191_v20  ;;  %v3147_v61 = vcombine.high %v9606_v1, %v9606_v1  ;;  %6084 = vst [vmem:[%s9657_s30 + $0x8] sm:$0xff] %v4797_v24  ;;  %v6398_v33 = vpop.f32.mrb[1].mxu1 }
 0x281   : > { %v2540_v17 = vadd.f32 %v2532_v49, %v2434_v0  ;;  %v2638_v59 = vmul.f32 %v2619_v42, %v9158_v35  ;;  %v2639_v12 = vmul.f32 %v2623_v11, %v9158_v35  ;;  %v2729_v54 = vrot.slane %v2697_v10, %v7191_v20  ;;  %v4800_v16 = vpop.f32.mrb[2].mxu1 }
 0x282   : > { %v3520_v22 = vpack.c.bf16 %v3513_v52, %v3512_v5  ;;  %v2541_v9 = vadd.f32 %v2533_v6, %v2435_v38  ;;  %v2744_v31 = vmul.f32 %v2725_v7, %v9166_v36  ;;  %v3149_v53 = vcombine.high %v9614_v58, %v9614_v58  ;;  %v6399_v28 = vpop.f32.mrb[3].mxu1 }
 0x283   : > { %v2646_v48 = vadd.f32 %v2638_v59, %v2540_v17  ;;  %v2745_v1 = vmul.f32 %v2729_v54, %v9166_v36  ;;  %v3177_v44 = vrot.slane %v3147_v61, %v7191_v20  ;;  %v3245_v35 = vcombine.high %v9629_v3, %v9629_v3 }
 0x284   : > { %6433 = vmatpush3.bf16.msra.mxu1 %v3520_v22  ;;  %v2647_v55 = vadd.f32 %v2639_v12, %v2541_v9  ;;  %v3181_v23 = vrot.slane %v3149_v53, %v7191_v20  ;;  %v3247_v30 = vcombine.high %v9637_v41, %v9637_v41  ;;  %v3351_v58 = vcombine.high %v9642_v21, %v9642_v21 }
 0x285   : > { %6434 = vmatprep.subr.bf16.mxu1 %v9941_v25  ;;  %v2752_v0 = vadd.f32 %v2744_v31, %v2646_v48  ;;  %v3196_v36 = vmul.f32 %v3177_v44, %v10094_v29  ;;  %v3275_v62 = vrot.slane %v3245_v35, %v7191_v20  ;;  %v3353_v3 = vcombine.high %v9652_v45, %v9652_v45 }
 0x286   : > { %v2753_v13 = vadd.f32 %v2745_v1, %v2647_v55  ;;  %v3197_v51 = vmul.f32 %v3181_v23, %v10094_v29  ;;  %v3279_v63 = vrot.slane %v3247_v30, %v7191_v20  ;;  %v3381_v41 = vrot.slane %v3351_v58, %v7191_v20 }
 0x287   : > { %v3294_v21 = vmul.f32 %v3275_v62, %v10095_v47  ;;  %v3385_v25 = vrot.slane %v3353_v3, %v7191_v20  ;;  %v3457_v37 = vcombine.high %v9645_v34, %v9645_v34  ;;  %v3459_v19 = vcombine.high %v9661_v32, %v9661_v32  ;;  %v6304_v34 = vld [vmem:[%s7166_s17 + $0x8] sm:$0xf] }
 0x288   : > { %v2759_v56 = vpack.c.bf16 %v2753_v13, %v2752_v0  ;;  %v3295_v45 = vmul.f32 %v3279_v63, %v10095_v47  ;;  %v3400_v29 = vmul.f32 %v3381_v41, %v9361_v15 }
 0x289   : > { %v3302_v26 = vadd.f32 %v3294_v21, %v3196_v36  ;;  %v3401_v38 = vmul.f32 %v3385_v25, %v9361_v15  ;;  %v3487_v8 = vrot.slane %v3457_v37, %v7191_v20  ;;  %v3491_v46 = vrot.slane %v3459_v19, %v7191_v20  ;;  %v6305_v20 = vld [vmem:[%s7166_s17 + $0xc] sm:$0xf] }
 0x28a   : > { %6415 = vmatpush3.bf16.msra.mxu0 %v2759_v56  ;;  %v3303_v50 = vadd.f32 %v3295_v45, %v3197_v51 }
 0x28b   : > { %v3408_v14 = vadd.f32 %v3400_v29, %v3302_v26  ;;  %v3506_v32 = vmul.f32 %v3487_v8, %v9367_v2  ;;  %v3507_v47 = vmul.f32 %v3491_v46, %v9367_v2 }
 0x28c   : > { %v3409_v57 = vadd.f32 %v3401_v38, %v3303_v50 }
 0x28d   : > { %v3514_v60 = vadd.f32 %v3506_v32, %v3408_v14  ;;  %6417 = vmatmul.mubr.msk.bf16.vlgmr.msra.gmra.mrb[4].mxu0 %vm4119_vm4, %v6304_v34 }
 0x28e   : > { %v3515_v15 = vadd.f32 %v3507_v47, %v3409_v57 }
 0x290   : > { %v3521_v39 = vpack.c.bf16 %v3515_v15, %v3514_v60 }
 0x292   : > { %6435 = vmatpush3.bf16.msra.mxu1 %v3521_v39 }
 0x295   : > { %6437 = vmatmul.mubr.msk.bf16.vlgmr.msra.gmra.mrb[4].mxu1 %vm4119_vm4, %v6305_v20 }
 0x360   : > { %v5437_v43 = vpop.f32.mrb[4].mxu0 }
 0x361   : > { %6085 = vst [vmem:[%s9657_s30 + $0x10] sm:$0xff] %v5437_v43  ;;  %v6418_v4 = vpop.f32.mrb[5].mxu0 }
 0x362   : > { %v5440_v27 = vpop.f32.mrb[6].mxu0 }
 0x363   : > { %v6419_v5 = vpop.f32.mrb[7].mxu0 }
 0x368   : > { %v6077_v2 = vpop.f32.mrb[4].mxu1 }
 0x369   : > { %6086 = vst [vmem:[%s9657_s30 + $0x18] sm:$0xff] %v6077_v2  ;;  %v6438_v40 = vpop.f32.mrb[5].mxu1 }
 0x36a   : > { %v6080_v18 = vpop.f32.mrb[6].mxu1 }
 0x36b   : > { %6726 = shalt.err (!%p6723_p12)
}
 0x36c   : > { %s6727_s23 = scalar_lea.hbm %s9748_s11, 512  ;;  %s6731_s20 = scalar_lea.hbm %s10096_s14, 1024 }
 0x36d   : > { %p6728_p8 = scmp.ne.s32.totalorder %s9748_s11, %s6727_s23  ;;  %p6732_p11 = scmp.lt.u32.totalorder %s9748_s11, %s10096_s14 }
 0x36e   : > { %p6733_p4 = scmp.lt.u32.totalorder %s6731_s20, %s6727_s23  ;;  %p6735_p0 = scmp.lt.u32.totalorder %s6727_s23, %s9748_s11 }
 0x36f   : > { %p6729_p1 = pnand %p6728_p8, %p10097_p2 }
 0x370   : > { %p6734_p6 = por %p6733_p4, %p6732_p11 }
 0x371   : > { %p6730_p13 = pneg %p6729_p1 }
 0x372   : > { %p6736_p5 = por %p6735_p0, %p6734_p6 }
 0x374   : > { %p6737_p7 = pnand %p6736_p5, %p6730_p13 }
 0x376   : > { %6740 = shalt.err (!%p6737_p7)
}
 0x377   : > { %s6818_s8 = smov 128   ;;  %s6819_s16 = smov 8   ;;  %v6439_v49 = vpop.f32.mrb[7].mxu1 }
 0x378   : > { %6482 = dma.vmem_to_hbm [thread:$0]  (%p10097_p2), %s9743_s7, 512, %s9748_s11, %s6088_s27, %s6818_s8, %s6818_s8, %s6819_s16  }
 0x379 PF: > { %s10098_s18 = sld [smem:[#allocation16_spill]]  ;;  %s10099_s15 = sld [smem:[#allocation21_spill]] }
 0x37a   : > { %s10100_s17 = sld [smem:[#allocation18_spill]] }
 0x37f   : > { %s6117_s24 = sand.u32 1, %s10098_s18   ;;  %p10101_p3 = scmp.ne.s32.totalorder %s10099_s15, 0 }
 0x380   : > { %p10102_p10 = scmp.ge.s32.totalorder %s10100_s17, 2  ;;  %s6118_s30 = scalar_lea.sflag [#allocation4], %s6117_s24 }
 0x382   : > { %p6501_p9 = pnand %p10102_p10, %p10101_p3 }
 0x384   : > { %6778 = dma.done.wait (!%p6501_p9), %s6118_s30, 512  }
 0x385   : > { %6780 = vsyncadd (!%p6501_p9), %s6118_s30, 4294966784  ;;  %s27_s23 = sadd.s32 1, %s10100_s17   ;;  %s10103_s9 = sld [smem:[#allocation17_spill]] }
 0x386   : > { %p24_p12 = scmp.ge.s32.totalorder %s27_s23, 4   ;;  %s10104_s20 = sld [smem:[#allocation20_spill]] }
 0x387   : > { %s10105_s6 = sld [smem:[#allocation19_spill]]  ;;  %s10106_s18 = smov %s6787_s19 }
 0x388   : > { %s10108_s21 = smov %s6799_s22  ;;  %26 = sbr.rel (!%p24_p12) target bundleno = 14 (0xe), region = 139 }
 0x38b   : > { %s10107_s19 = smov %s10103_s9 }
 0x38d   : > { %s10109_s22 = smov %s10105_s6 }
 0x38f   :  { %6123 = vsyncpa [#allocation3], 1 }
 0x390   :  { %6125 = vsyncpa [#allocation3 + $0x1], 1 }
 0x391   :  { %6126 = vsyncpa [#allocation6], 1 }
 0x392   :  { %6128 = vsyncpa [#allocation6 + $0x1], 1 }
 0x393   :  { %6129 = vsyncpa [#allocation9], 1 }
 0x394   :  { %6131 = vsyncpa [#allocation9 + $0x1], 1 }
 0x395   :  { %6132 = vsyncpa [#allocation4], 1 }
 0x396   :  { %6134 = vsyncpa [#allocation4 + $0x1], 1 }

</bundles_post_ra>
